<compile_context>
chip_gen: v5e
topology: v5e:2x2
jax: 0.10.0
libtpu: 0.0.40
codegen_flags: <defaults>
</compile_context>

<pallas_src>
import functools

import jax
import jax.numpy as jnp
from jax.experimental import pallas as pl
from jax.experimental.pallas import tpu as pltpu  # noqa: F401  (TPU backend assumed)

# ----------------------------- small config ---------------------------------
EMBED_DIM = (8, 4)                                  # -> class_dim = 32
CLASS_DIM = EMBED_DIM[0] * EMBED_DIM[1]
FULL_SIZE = (16, 16)                                # full_input_size
MODEL_SIZE = (8, 8)                                 # model_input_size
SHIFT_PERCENT = 0.9
MAX_TRANSLATION = int((min(FULL_SIZE) - max(MODEL_SIZE)) * SHIFT_PERCENT)
AFFINE_EMBED_DIM = 4   # TODO(synk): SaccadeCropper.affine_embed_dim not given; using (dy1,dx1,dy2,dx2)/max_t
IMG_CHANNELS = 3
ENC_CHANNELS = 32                                   # stand-in encoder width


def _gelu(x):
    # exact (erf based) GELU == torch.nn.GELU() default
    return 0.5 * x * (1.0 + jax.lax.erf(x * 0.7071067811865476))


# ------------------------------ fused Pallas kernel --------------------------
def _saccade_jepa_kernel(
    # inputs
    x1_ref, x2_ref, pool_ref, aff_ref,
    c_cw_ref, c_cb_ref, c_hw_ref, c_hb_ref,          # context encoder params
    t_cw_ref, t_cb_ref, t_hw_ref, t_hb_ref,          # target  encoder params
    ae_w_ref, ae_b_ref, p_w1_ref, p_b1_ref, p_w2_ref, p_b2_ref,
    # outputs
    target_ref, tpred_ref, loss_ref,
    *, h, w,
):
    wp = w + 2                                       # padded width (SAME 3x3 conv)
    n_anchors = pool_ref.shape[1]                    # B * (h+2) * (w+2)
    pool = pool_ref[...]                             # (B, n_anchors) avg-pool matrix

    def encode(xflat_ref, cw_ref, cb_ref, hw_ref, hb_ref):
        # xflat_ref: (n_flat, Cin) flattened zero-padded view; conv via 9 shifted
        # matmuls -> ReLU -> global-avg-pool (as a matmul) -> linear head.
        cw = cw_ref[...]                             # (9, Cin, ENC)
        acc = jnp.zeros((n_anchors, ENC_CHANNELS), jnp.float32)
        for t in range(9):
            dy, dx = divmod(t, 3)
            s = dy * wp + dx                         # static row shift for this tap
            patch = xflat_ref[s:s + n_anchors, :]    # (n_anchors, Cin) sliced VMEM load
            acc = acc + jnp.dot(patch, cw[t], preferred_element_type=jnp.float32)
        feats = jnp.maximum(acc + cb_ref[...], 0.0)  # (n_anchors, ENC) stays in VMEM
        pooled = jnp.dot(pool, feats, preferred_element_type=jnp.float32)     # (B, ENC)
        return jnp.dot(pooled, hw_ref[...], preferred_element_type=jnp.float32) + hb_ref[...]

    context = encode(x1_ref, c_cw_ref, c_cb_ref, c_hw_ref, c_hb_ref)          # (B, D)
    target = encode(x2_ref, t_cw_ref, t_cb_ref, t_hw_ref, t_hb_ref)           # (B, D)

    # affine_embedder = Sequential(GELU(), Linear(affine_dim, class_dim))
    aff = aff_ref[...]
    ae_w = ae_w_ref[...]
    ae_b = ae_b_ref[...]
    emb_plus = jnp.dot(_gelu(aff), ae_w, preferred_element_type=jnp.float32) + ae_b
    emb_minus = jnp.dot(_gelu(-aff), ae_w, preferred_element_type=jnp.float32) + ae_b

    # NOTE: the PyTorch '[Linear, GELU] * (depth-1)' repeats the SAME Linear
    # object, so the first two Linear layers share (w1, b1).
    w1 = p_w1_ref[...]
    b1 = p_b1_ref[...]
    w2 = p_w2_ref[...]
    b2 = p_b2_ref[...]

    def predictor(z):
        hdn = _gelu(jnp.dot(z, w1, preferred_element_type=jnp.float32) + b1)
        hdn = _gelu(jnp.dot(hdn, w1, preferred_element_type=jnp.float32) + b1)
        return jnp.dot(hdn, w2, preferred_element_type=jnp.float32) + b2

    tpred = predictor(context + emb_plus)            # context += affines_emb ; predictor
    cycled = predictor(tpred + emb_minus)            # cycle consistency path
    diff = cycled - context                          # context_copy == context (detached clone)

    target_ref[...] = target
    tpred_ref[...] = tpred
    # keep (1,1) VMEM output (scalar->SMEM stores of vector reductions not relied upon)
    loss_ref[...] = jnp.sum(diff * diff, keepdims=True) / float(diff.size)


# ------------------------------ glue (plain JAX) -----------------------------
def saccade_cropper(x_nchw, key):
    # TODO(synk): SaccadeCropper source not provided; using random translated crops
    # around the image center and normalized per-view translations as the "affines".
    B, C, H, W = x_nchw.shape
    th, tw = MODEL_SIZE
    x_nhwc = jnp.transpose(x_nchw, (0, 2, 3, 1))
    cy, cx = (H - th) // 2, (W - tw) // 2
    lim = max(1, min(MAX_TRANSLATION, cy, H - th - cy, cx, W - tw - cx))
    k1, k2 = jax.random.split(key)
    t1 = jax.random.randint(k1, (B, 2), -lim, lim + 1)
    t2 = jax.random.randint(k2, (B, 2), -lim, lim + 1)
    off1 = jnp.stack([cy + t1[:, 0], cx + t1[:, 1]], axis=1)
    off2 = jnp.stack([cy + t2[:, 0], cx + t2[:, 1]], axis=1)

    def crop_one(img, off):
        return jax.lax.dynamic_slice(img, (off[0], off[1], 0), (th, tw, C))

    v1 = jax.vmap(crop_one)(x_nhwc, off1)
    v2 = jax.vmap(crop_one)(x_nhwc, off2)
    affines = jnp.concatenate([t1, t2], axis=1).astype(jnp.float32) / float(max(MAX_TRANSLATION, 1))
    return v1, v2, affines


def _pool_matrix(B, h, w):
    # (B, B*(h+2)*(w+2)) matrix: 1/(h*w) on the valid conv-anchor rows of each batch.
    hp, wp = h + 2, w + 2
    a = jnp.arange(B * hp * wp)
    b_of_a = a // (hp * wp)
    r = (a % (hp * wp)) // wp
    c = a % wp
    valid = (r < h) & (c < w)
    sel = (b_of_a[None, :] == jnp.arange(B)[:, None]) & valid[None, :]
    return sel.astype(jnp.float32) / float(h * w)


def _flatten_pad_view(view_nhwc, n_flat):
    # zero-pad spatially (SAME conv) and flatten (b, hp, wp) -> rows; pad extra zero
    # rows so every anchor row can read all 9 tap offsets without going OOB.
    B, h, w, C = view_nhwc.shape
    xp = jnp.pad(view_nhwc, ((0, 0), (1, 1), (1, 1), (0, 0)))
    flat = xp.reshape(B * (h + 2) * (w + 2), C)
    return jnp.pad(flat, ((0, n_flat - flat.shape[0]), (0, 0)))


def init_params(key):
    ks = jax.random.split(key, 5)

    def lin(k, fan_in, fan_out):
        kw, kb = jax.random.split(k)
        bound = 1.0 / float(fan_in) ** 0.5
        wgt = jax.random.uniform(kw, (fan_in, fan_out), jnp.float32, -bound, bound)
        bia = jax.random.uniform(kb, (1, fan_out), jnp.float32, -bound, bound)
        return wgt, bia

    conv_w, conv_b = lin(ks[0], 9 * IMG_CHANNELS, ENC_CHANNELS)
    conv_w = conv_w.reshape(9, IMG_CHANNELS, ENC_CHANNELS)        # per-tap (Cin, ENC)
    head_w, head_b = lin(ks[1], ENC_CHANNELS, CLASS_DIM)
    encoder = dict(conv_w=conv_w, conv_b=conv_b, head_w=head_w, head_b=head_b)
    ae_w, ae_b = lin(ks[2], AFFINE_EMBED_DIM, CLASS_DIM)
    p_w1, p_b1 = lin(ks[3], CLASS_DIM, CLASS_DIM)
    p_w2, p_b2 = lin(ks[4], CLASS_DIM, CLASS_DIM)
    return dict(
        context_encoder=encoder,
        target_encoder=jax.tree_util.tree_map(jnp.copy, encoder),  # true (frozen) copy
        ae_w=ae_w, ae_b=ae_b,
        p_w1=p_w1, p_b1=p_b1, p_w2=p_w2, p_b2=p_b2,
    )


def saccade_jepa_forward(params, x_nchw, crop_key):
    # predict_affines=False, transformer_predictor=False, use_cycle_consistency=True
    # TODO(synk): full ResNet-50 backbone not reproduced; stand-in encoder is
    # conv3x3(SAME)+ReLU -> global-avg-pool -> Linear(class_dim), fully in-kernel.
    x1, x2, affines = saccade_cropper(x_nchw, crop_key)           # (B, h, w, C) each
    B, h, w, _ = x1.shape
    hp, wp = h + 2, w + 2
    n_anchors = B * hp * wp
    n_flat = ((n_anchors + 2 * wp + 2 + 7) // 8) * 8              # room for max tap shift

    x1f = _flatten_pad_view(x1, n_flat)
    x2f = _flatten_pad_view(x2, n_flat)
    pool = _pool_matrix(B, h, w)
    enc_c = params["context_encoder"]
    enc_t = params["target_encoder"]

    kernel = functools.partial(_saccade_jepa_kernel, h=h, w=w)
    target, target_pred, loss = pl.pallas_call(
        kernel,
        out_shape=(
            jax.ShapeDtypeStruct((B, CLASS_DIM), jnp.float32),    # target
            jax.ShapeDtypeStruct((B, CLASS_DIM), jnp.float32),    # target_pred
            jax.ShapeDtypeStruct((1, 1), jnp.float32),            # cycle_loss
        ),
    )(
        x1f, x2f, pool, affines,
        enc_c["conv_w"], enc_c["conv_b"], enc_c["head_w"], enc_c["head_b"],
        enc_t["conv_w"], enc_t["conv_b"], enc_t["head_w"], enc_t["head_b"],
        params["ae_w"], params["ae_b"],
        params["p_w1"], params["p_b1"], params["p_w2"], params["p_b2"],
    )
    return target, target_pred, loss[0, 0]


if __name__ == "__main__":
    root = jax.random.PRNGKey(0)
    k_x, k_params, k_crop = jax.random.split(root, 3)
    x = jax.random.normal(k_x, (2, IMG_CHANNELS, FULL_SIZE[0], FULL_SIZE[1]), jnp.float32)
    params = init_params(k_params)

    fwd = jax.jit(saccade_jepa_forward)
    target, target_pred, cycle_loss = fwd(params, x, k_crop)
    jax.block_until_ready((target, target_pred, cycle_loss))

    assert target.shape == (2, CLASS_DIM)
    assert target_pred.shape == (2, CLASS_DIM)
    assert cycle_loss.shape == ()
    assert bool(jnp.isfinite(cycle_loss))
    print("KERNEL_OK")
</pallas_src>

<mosaic_0001>
module attributes {stable_mosaic.version = 11 : i64} {
  func.func @_saccade_jepa_kernel(%arg0: memref<224x3xf32, #tpu.memory_space<vmem>>, %arg1: memref<224x3xf32, #tpu.memory_space<vmem>>, %arg2: memref<2x200xf32, #tpu.memory_space<vmem>>, %arg3: memref<2x4xf32, #tpu.memory_space<vmem>>, %arg4: memref<9x3x32xf32, #tpu.memory_space<vmem>>, %arg5: memref<1x32xf32, #tpu.memory_space<vmem>>, %arg6: memref<32x32xf32, #tpu.memory_space<vmem>>, %arg7: memref<1x32xf32, #tpu.memory_space<vmem>>, %arg8: memref<9x3x32xf32, #tpu.memory_space<vmem>>, %arg9: memref<1x32xf32, #tpu.memory_space<vmem>>, %arg10: memref<32x32xf32, #tpu.memory_space<vmem>>, %arg11: memref<1x32xf32, #tpu.memory_space<vmem>>, %arg12: memref<4x32xf32, #tpu.memory_space<vmem>>, %arg13: memref<1x32xf32, #tpu.memory_space<vmem>>, %arg14: memref<32x32xf32, #tpu.memory_space<vmem>>, %arg15: memref<1x32xf32, #tpu.memory_space<vmem>>, %arg16: memref<32x32xf32, #tpu.memory_space<vmem>>, %arg17: memref<1x32xf32, #tpu.memory_space<vmem>>, %arg18: memref<2x32xf32, #tpu.memory_space<vmem>>, %arg19: memref<2x32xf32, #tpu.memory_space<vmem>>, %arg20: memref<1x1xf32, #tpu.memory_space<vmem>>) attributes {dimension_semantics = [], scalar_prefetch = 0 : i64, scratch_operands = 0 : i64, tpu.core_type = #tpu.core_type<tc>} {
    %c0 = arith.constant 0 : index
    %c0_0 = arith.constant 0 : index
    %0 = vector.load %arg2[%c0, %c0_0] : memref<2x200xf32, #tpu.memory_space<vmem>>, vector<2x200xf32>
    %c0_1 = arith.constant 0 : index
    %c0_2 = arith.constant 0 : index
    %c0_3 = arith.constant 0 : index
    %1 = vector.load %arg4[%c0_1, %c0_2, %c0_3] : memref<9x3x32xf32, #tpu.memory_space<vmem>>, vector<9x3x32xf32>
    %cst = arith.constant 0.000000e+00 : f32
    %2 = vector.broadcast %cst : f32 to vector<200x32xf32>
    %c0_4 = arith.constant 0 : index
    %c0_5 = arith.constant 0 : index
    %3 = vector.load %arg0[%c0_4, %c0_5] : memref<224x3xf32, #tpu.memory_space<vmem>>, vector<200x3xf32>
    %4 = vector.extract_strided_slice %1 {offsets = [0, 0, 0], sizes = [1, 3, 32], strides = [1, 1, 1]} : vector<9x3x32xf32> to vector<1x3x32xf32>
    %5 = vector.shape_cast %4 : vector<1x3x32xf32> to vector<3x32xf32>
    %cst_6 = arith.constant dense<0.000000e+00> : vector<200x32xf32>
    %6 = tpu.matmul %3, %5, %cst_6 {dimension_numbers = #tpu.dot_dimension_numbers<[1], [0], [0], [1], [0, 0, 1, 1], [], []>} : vector<200x3xf32>, vector<3x32xf32>, vector<200x32xf32> -> vector<200x32xf32>
    %7 = arith.addf %2, %6 : vector<200x32xf32>
    %c1 = arith.constant 1 : index
    %c0_7 = arith.constant 0 : index
    %8 = vector.load %arg0[%c1, %c0_7] : memref<224x3xf32, #tpu.memory_space<vmem>>, vector<200x3xf32>
    %9 = vector.extract_strided_slice %1 {offsets = [1, 0, 0], sizes = [1, 3, 32], strides = [1, 1, 1]} : vector<9x3x32xf32> to vector<1x3x32xf32>
    %10 = vector.shape_cast %9 : vector<1x3x32xf32> to vector<3x32xf32>
    %cst_8 = arith.constant dense<0.000000e+00> : vector<200x32xf32>
    %11 = tpu.matmul %8, %10, %cst_8 {dimension_numbers = #tpu.dot_dimension_numbers<[1], [0], [0], [1], [0, 0, 1, 1], [], []>} : vector<200x3xf32>, vector<3x32xf32>, vector<200x32xf32> -> vector<200x32xf32>
    %12 = arith.addf %7, %11 : vector<200x32xf32>
    %c2 = arith.constant 2 : index
    %c0_9 = arith.constant 0 : index
    %13 = vector.load %arg0[%c2, %c0_9] : memref<224x3xf32, #tpu.memory_space<vmem>>, vector<200x3xf32>
    %14 = vector.extract_strided_slice %1 {offsets = [2, 0, 0], sizes = [1, 3, 32], strides = [1, 1, 1]} : vector<9x3x32xf32> to vector<1x3x32xf32>
    %15 = vector.shape_cast %14 : vector<1x3x32xf32> to vector<3x32xf32>
    %cst_10 = arith.constant dense<0.000000e+00> : vector<200x32xf32>
    %16 = tpu.matmul %13, %15, %cst_10 {dimension_numbers = #tpu.dot_dimension_numbers<[1], [0], [0], [1], [0, 0, 1, 1], [], []>} : vector<200x3xf32>, vector<3x32xf32>, vector<200x32xf32> -> vector<200x32xf32>
    %17 = arith.addf %12, %16 : vector<200x32xf32>
    %c10 = arith.constant 10 : index
    %c0_11 = arith.constant 0 : index
    %18 = vector.load %arg0[%c10, %c0_11] : memref<224x3xf32, #tpu.memory_space<vmem>>, vector<200x3xf32>
    %19 = vector.extract_strided_slice %1 {offsets = [3, 0, 0], sizes = [1, 3, 32], strides = [1, 1, 1]} : vector<9x3x32xf32> to vector<1x3x32xf32>
    %20 = vector.shape_cast %19 : vector<1x3x32xf32> to vector<3x32xf32>
    %cst_12 = arith.constant dense<0.000000e+00> : vector<200x32xf32>
    %21 = tpu.matmul %18, %20, %cst_12 {dimension_numbers = #tpu.dot_dimension_numbers<[1], [0], [0], [1], [0, 0, 1, 1], [], []>} : vector<200x3xf32>, vector<3x32xf32>, vector<200x32xf32> -> vector<200x32xf32>
    %22 = arith.addf %17, %21 : vector<200x32xf32>
    %c11 = arith.constant 11 : index
    %c0_13 = arith.constant 0 : index
    %23 = vector.load %arg0[%c11, %c0_13] : memref<224x3xf32, #tpu.memory_space<vmem>>, vector<200x3xf32>
    %24 = vector.extract_strided_slice %1 {offsets = [4, 0, 0], sizes = [1, 3, 32], strides = [1, 1, 1]} : vector<9x3x32xf32> to vector<1x3x32xf32>
    %25 = vector.shape_cast %24 : vector<1x3x32xf32> to vector<3x32xf32>
    %cst_14 = arith.constant dense<0.000000e+00> : vector<200x32xf32>
    %26 = tpu.matmul %23, %25, %cst_14 {dimension_numbers = #tpu.dot_dimension_numbers<[1], [0], [0], [1], [0, 0, 1, 1], [], []>} : vector<200x3xf32>, vector<3x32xf32>, vector<200x32xf32> -> vector<200x32xf32>
    %27 = arith.addf %22, %26 : vector<200x32xf32>
    %c12 = arith.constant 12 : index
    %c0_15 = arith.constant 0 : index
    %28 = vector.load %arg0[%c12, %c0_15] : memref<224x3xf32, #tpu.memory_space<vmem>>, vector<200x3xf32>
    %29 = vector.extract_strided_slice %1 {offsets = [5, 0, 0], sizes = [1, 3, 32], strides = [1, 1, 1]} : vector<9x3x32xf32> to vector<1x3x32xf32>
    %30 = vector.shape_cast %29 : vector<1x3x32xf32> to vector<3x32xf32>
    %cst_16 = arith.constant dense<0.000000e+00> : vector<200x32xf32>
    %31 = tpu.matmul %28, %30, %cst_16 {dimension_numbers = #tpu.dot_dimension_numbers<[1], [0], [0], [1], [0, 0, 1, 1], [], []>} : vector<200x3xf32>, vector<3x32xf32>, vector<200x32xf32> -> vector<200x32xf32>
    %32 = arith.addf %27, %31 : vector<200x32xf32>
    %c20 = arith.constant 20 : index
    %c0_17 = arith.constant 0 : index
    %33 = vector.load %arg0[%c20, %c0_17] : memref<224x3xf32, #tpu.memory_space<vmem>>, vector<200x3xf32>
    %34 = vector.extract_strided_slice %1 {offsets = [6, 0, 0], sizes = [1, 3, 32], strides = [1, 1, 1]} : vector<9x3x32xf32> to vector<1x3x32xf32>
    %35 = vector.shape_cast %34 : vector<1x3x32xf32> to vector<3x32xf32>
    %cst_18 = arith.constant dense<0.000000e+00> : vector<200x32xf32>
    %36 = tpu.matmul %33, %35, %cst_18 {dimension_numbers = #tpu.dot_dimension_numbers<[1], [0], [0], [1], [0, 0, 1, 1], [], []>} : vector<200x3xf32>, vector<3x32xf32>, vector<200x32xf32> -> vector<200x32xf32>
    %37 = arith.addf %32, %36 : vector<200x32xf32>
    %c21 = arith.constant 21 : index
    %c0_19 = arith.constant 0 : index
    %38 = vector.load %arg0[%c21, %c0_19] : memref<224x3xf32, #tpu.memory_space<vmem>>, vector<200x3xf32>
    %39 = vector.extract_strided_slice %1 {offsets = [7, 0, 0], sizes = [1, 3, 32], strides = [1, 1, 1]} : vector<9x3x32xf32> to vector<1x3x32xf32>
    %40 = vector.shape_cast %39 : vector<1x3x32xf32> to vector<3x32xf32>
    %cst_20 = arith.constant dense<0.000000e+00> : vector<200x32xf32>
    %41 = tpu.matmul %38, %40, %cst_20 {dimension_numbers = #tpu.dot_dimension_numbers<[1], [0], [0], [1], [0, 0, 1, 1], [], []>} : vector<200x3xf32>, vector<3x32xf32>, vector<200x32xf32> -> vector<200x32xf32>
    %42 = arith.addf %37, %41 : vector<200x32xf32>
    %c22 = arith.constant 22 : index
    %c0_21 = arith.constant 0 : index
    %43 = vector.load %arg0[%c22, %c0_21] : memref<224x3xf32, #tpu.memory_space<vmem>>, vector<200x3xf32>
    %44 = vector.extract_strided_slice %1 {offsets = [8, 0, 0], sizes = [1, 3, 32], strides = [1, 1, 1]} : vector<9x3x32xf32> to vector<1x3x32xf32>
    %45 = vector.shape_cast %44 : vector<1x3x32xf32> to vector<3x32xf32>
    %cst_22 = arith.constant dense<0.000000e+00> : vector<200x32xf32>
    %46 = tpu.matmul %43, %45, %cst_22 {dimension_numbers = #tpu.dot_dimension_numbers<[1], [0], [0], [1], [0, 0, 1, 1], [], []>} : vector<200x3xf32>, vector<3x32xf32>, vector<200x32xf32> -> vector<200x32xf32>
    %47 = arith.addf %42, %46 : vector<200x32xf32>
    %c0_23 = arith.constant 0 : index
    %c0_24 = arith.constant 0 : index
    %48 = vector.load %arg5[%c0_23, %c0_24] : memref<1x32xf32, #tpu.memory_space<vmem>>, vector<1x32xf32>
    %49 = vector.broadcast %48 : vector<1x32xf32> to vector<200x32xf32>
    %50 = arith.addf %47, %49 : vector<200x32xf32>
    %cst_25 = arith.constant 0.000000e+00 : f32
    %51 = vector.broadcast %cst_25 : f32 to vector<200x32xf32>
    %52 = arith.maximumf %50, %51 : vector<200x32xf32>
    %cst_26 = arith.constant dense<0.000000e+00> : vector<2x32xf32>
    %53 = tpu.matmul %0, %52, %cst_26 {dimension_numbers = #tpu.dot_dimension_numbers<[1], [0], [0], [1], [0, 0, 1, 1], [], []>} : vector<2x200xf32>, vector<200x32xf32>, vector<2x32xf32> -> vector<2x32xf32>
    %c0_27 = arith.constant 0 : index
    %c0_28 = arith.constant 0 : index
    %54 = vector.load %arg6[%c0_27, %c0_28] : memref<32x32xf32, #tpu.memory_space<vmem>>, vector<32x32xf32>
    %cst_29 = arith.constant dense<0.000000e+00> : vector<2x32xf32>
    %55 = tpu.matmul %53, %54, %cst_29 {dimension_numbers = #tpu.dot_dimension_numbers<[1], [0], [0], [1], [0, 0, 1, 1], [], []>} : vector<2x32xf32>, vector<32x32xf32>, vector<2x32xf32> -> vector<2x32xf32>
    %c0_30 = arith.constant 0 : index
    %c0_31 = arith.constant 0 : index
    %56 = vector.load %arg7[%c0_30, %c0_31] : memref<1x32xf32, #tpu.memory_space<vmem>>, vector<1x32xf32>
    %57 = vector.broadcast %56 : vector<1x32xf32> to vector<2x32xf32>
    %58 = arith.addf %55, %57 : vector<2x32xf32>
    %c0_32 = arith.constant 0 : index
    %c0_33 = arith.constant 0 : index
    %c0_34 = arith.constant 0 : index
    %59 = vector.load %arg8[%c0_32, %c0_33, %c0_34] : memref<9x3x32xf32, #tpu.memory_space<vmem>>, vector<9x3x32xf32>
    %cst_35 = arith.constant 0.000000e+00 : f32
    %60 = vector.broadcast %cst_35 : f32 to vector<200x32xf32>
    %c0_36 = arith.constant 0 : index
    %c0_37 = arith.constant 0 : index
    %61 = vector.load %arg1[%c0_36, %c0_37] : memref<224x3xf32, #tpu.memory_space<vmem>>, vector<200x3xf32>
    %62 = vector.extract_strided_slice %59 {offsets = [0, 0, 0], sizes = [1, 3, 32], strides = [1, 1, 1]} : vector<9x3x32xf32> to vector<1x3x32xf32>
    %63 = vector.shape_cast %62 : vector<1x3x32xf32> to vector<3x32xf32>
    %cst_38 = arith.constant dense<0.000000e+00> : vector<200x32xf32>
    %64 = tpu.matmul %61, %63, %cst_38 {dimension_numbers = #tpu.dot_dimension_numbers<[1], [0], [0], [1], [0, 0, 1, 1], [], []>} : vector<200x3xf32>, vector<3x32xf32>, vector<200x32xf32> -> vector<200x32xf32>
    %65 = arith.addf %60, %64 : vector<200x32xf32>
    %c1_39 = arith.constant 1 : index
    %c0_40 = arith.constant 0 : index
    %66 = vector.load %arg1[%c1_39, %c0_40] : memref<224x3xf32, #tpu.memory_space<vmem>>, vector<200x3xf32>
    %67 = vector.extract_strided_slice %59 {offsets = [1, 0, 0], sizes = [1, 3, 32], strides = [1, 1, 1]} : vector<9x3x32xf32> to vector<1x3x32xf32>
    %68 = vector.shape_cast %67 : vector<1x3x32xf32> to vector<3x32xf32>
    %cst_41 = arith.constant dense<0.000000e+00> : vector<200x32xf32>
    %69 = tpu.matmul %66, %68, %cst_41 {dimension_numbers = #tpu.dot_dimension_numbers<[1], [0], [0], [1], [0, 0, 1, 1], [], []>} : vector<200x3xf32>, vector<3x32xf32>, vector<200x32xf32> -> vector<200x32xf32>
    %70 = arith.addf %65, %69 : vector<200x32xf32>
    %c2_42 = arith.constant 2 : index
    %c0_43 = arith.constant 0 : index
    %71 = vector.load %arg1[%c2_42, %c0_43] : memref<224x3xf32, #tpu.memory_space<vmem>>, vector<200x3xf32>
    %72 = vector.extract_strided_slice %59 {offsets = [2, 0, 0], sizes = [1, 3, 32], strides = [1, 1, 1]} : vector<9x3x32xf32> to vector<1x3x32xf32>
    %73 = vector.shape_cast %72 : vector<1x3x32xf32> to vector<3x32xf32>
    %cst_44 = arith.constant dense<0.000000e+00> : vector<200x32xf32>
    %74 = tpu.matmul %71, %73, %cst_44 {dimension_numbers = #tpu.dot_dimension_numbers<[1], [0], [0], [1], [0, 0, 1, 1], [], []>} : vector<200x3xf32>, vector<3x32xf32>, vector<200x32xf32> -> vector<200x32xf32>
    %75 = arith.addf %70, %74 : vector<200x32xf32>
    %c10_45 = arith.constant 10 : index
    %c0_46 = arith.constant 0 : index
    %76 = vector.load %arg1[%c10_45, %c0_46] : memref<224x3xf32, #tpu.memory_space<vmem>>, vector<200x3xf32>
    %77 = vector.extract_strided_slice %59 {offsets = [3, 0, 0], sizes = [1, 3, 32], strides = [1, 1, 1]} : vector<9x3x32xf32> to vector<1x3x32xf32>
    %78 = vector.shape_cast %77 : vector<1x3x32xf32> to vector<3x32xf32>
    %cst_47 = arith.constant dense<0.000000e+00> : vector<200x32xf32>
    %79 = tpu.matmul %76, %78, %cst_47 {dimension_numbers = #tpu.dot_dimension_numbers<[1], [0], [0], [1], [0, 0, 1, 1], [], []>} : vector<200x3xf32>, vector<3x32xf32>, vector<200x32xf32> -> vector<200x32xf32>
    %80 = arith.addf %75, %79 : vector<200x32xf32>
    %c11_48 = arith.constant 11 : index
    %c0_49 = arith.constant 0 : index
    %81 = vector.load %arg1[%c11_48, %c0_49] : memref<224x3xf32, #tpu.memory_space<vmem>>, vector<200x3xf32>
    %82 = vector.extract_strided_slice %59 {offsets = [4, 0, 0], sizes = [1, 3, 32], strides = [1, 1, 1]} : vector<9x3x32xf32> to vector<1x3x32xf32>
    %83 = vector.shape_cast %82 : vector<1x3x32xf32> to vector<3x32xf32>
    %cst_50 = arith.constant dense<0.000000e+00> : vector<200x32xf32>
    %84 = tpu.matmul %81, %83, %cst_50 {dimension_numbers = #tpu.dot_dimension_numbers<[1], [0], [0], [1], [0, 0, 1, 1], [], []>} : vector<200x3xf32>, vector<3x32xf32>, vector<200x32xf32> -> vector<200x32xf32>
    %85 = arith.addf %80, %84 : vector<200x32xf32>
    %c12_51 = arith.constant 12 : index
    %c0_52 = arith.constant 0 : index
    %86 = vector.load %arg1[%c12_51, %c0_52] : memref<224x3xf32, #tpu.memory_space<vmem>>, vector<200x3xf32>
    %87 = vector.extract_strided_slice %59 {offsets = [5, 0, 0], sizes = [1, 3, 32], strides = [1, 1, 1]} : vector<9x3x32xf32> to vector<1x3x32xf32>
    %88 = vector.shape_cast %87 : vector<1x3x32xf32> to vector<3x32xf32>
    %cst_53 = arith.constant dense<0.000000e+00> : vector<200x32xf32>
    %89 = tpu.matmul %86, %88, %cst_53 {dimension_numbers = #tpu.dot_dimension_numbers<[1], [0], [0], [1], [0, 0, 1, 1], [], []>} : vector<200x3xf32>, vector<3x32xf32>, vector<200x32xf32> -> vector<200x32xf32>
    %90 = arith.addf %85, %89 : vector<200x32xf32>
    %c20_54 = arith.constant 20 : index
    %c0_55 = arith.constant 0 : index
    %91 = vector.load %arg1[%c20_54, %c0_55] : memref<224x3xf32, #tpu.memory_space<vmem>>, vector<200x3xf32>
    %92 = vector.extract_strided_slice %59 {offsets = [6, 0, 0], sizes = [1, 3, 32], strides = [1, 1, 1]} : vector<9x3x32xf32> to vector<1x3x32xf32>
    %93 = vector.shape_cast %92 : vector<1x3x32xf32> to vector<3x32xf32>
    %cst_56 = arith.constant dense<0.000000e+00> : vector<200x32xf32>
    %94 = tpu.matmul %91, %93, %cst_56 {dimension_numbers = #tpu.dot_dimension_numbers<[1], [0], [0], [1], [0, 0, 1, 1], [], []>} : vector<200x3xf32>, vector<3x32xf32>, vector<200x32xf32> -> vector<200x32xf32>
    %95 = arith.addf %90, %94 : vector<200x32xf32>
    %c21_57 = arith.constant 21 : index
    %c0_58 = arith.constant 0 : index
    %96 = vector.load %arg1[%c21_57, %c0_58] : memref<224x3xf32, #tpu.memory_space<vmem>>, vector<200x3xf32>
    %97 = vector.extract_strided_slice %59 {offsets = [7, 0, 0], sizes = [1, 3, 32], strides = [1, 1, 1]} : vector<9x3x32xf32> to vector<1x3x32xf32>
    %98 = vector.shape_cast %97 : vector<1x3x32xf32> to vector<3x32xf32>
    %cst_59 = arith.constant dense<0.000000e+00> : vector<200x32xf32>
    %99 = tpu.matmul %96, %98, %cst_59 {dimension_numbers = #tpu.dot_dimension_numbers<[1], [0], [0], [1], [0, 0, 1, 1], [], []>} : vector<200x3xf32>, vector<3x32xf32>, vector<200x32xf32> -> vector<200x32xf32>
    %100 = arith.addf %95, %99 : vector<200x32xf32>
    %c22_60 = arith.constant 22 : index
    %c0_61 = arith.constant 0 : index
    %101 = vector.load %arg1[%c22_60, %c0_61] : memref<224x3xf32, #tpu.memory_space<vmem>>, vector<200x3xf32>
    %102 = vector.extract_strided_slice %59 {offsets = [8, 0, 0], sizes = [1, 3, 32], strides = [1, 1, 1]} : vector<9x3x32xf32> to vector<1x3x32xf32>
    %103 = vector.shape_cast %102 : vector<1x3x32xf32> to vector<3x32xf32>
    %cst_62 = arith.constant dense<0.000000e+00> : vector<200x32xf32>
    %104 = tpu.matmul %101, %103, %cst_62 {dimension_numbers = #tpu.dot_dimension_numbers<[1], [0], [0], [1], [0, 0, 1, 1], [], []>} : vector<200x3xf32>, vector<3x32xf32>, vector<200x32xf32> -> vector<200x32xf32>
    %105 = arith.addf %100, %104 : vector<200x32xf32>
    %c0_63 = arith.constant 0 : index
    %c0_64 = arith.constant 0 : index
    %106 = vector.load %arg9[%c0_63, %c0_64] : memref<1x32xf32, #tpu.memory_space<vmem>>, vector<1x32xf32>
    %107 = vector.broadcast %106 : vector<1x32xf32> to vector<200x32xf32>
    %108 = arith.addf %105, %107 : vector<200x32xf32>
    %cst_65 = arith.constant 0.000000e+00 : f32
    %109 = vector.broadcast %cst_65 : f32 to vector<200x32xf32>
    %110 = arith.maximumf %108, %109 : vector<200x32xf32>
    %cst_66 = arith.constant dense<0.000000e+00> : vector<2x32xf32>
    %111 = tpu.matmul %0, %110, %cst_66 {dimension_numbers = #tpu.dot_dimension_numbers<[1], [0], [0], [1], [0, 0, 1, 1], [], []>} : vector<2x200xf32>, vector<200x32xf32>, vector<2x32xf32> -> vector<2x32xf32>
    %c0_67 = arith.constant 0 : index
    %c0_68 = arith.constant 0 : index
    %112 = vector.load %arg10[%c0_67, %c0_68] : memref<32x32xf32, #tpu.memory_space<vmem>>, vector<32x32xf32>
    %cst_69 = arith.constant dense<0.000000e+00> : vector<2x32xf32>
    %113 = tpu.matmul %111, %112, %cst_69 {dimension_numbers = #tpu.dot_dimension_numbers<[1], [0], [0], [1], [0, 0, 1, 1], [], []>} : vector<2x32xf32>, vector<32x32xf32>, vector<2x32xf32> -> vector<2x32xf32>
    %c0_70 = arith.constant 0 : index
    %c0_71 = arith.constant 0 : index
    %114 = vector.load %arg11[%c0_70, %c0_71] : memref<1x32xf32, #tpu.memory_space<vmem>>, vector<1x32xf32>
    %115 = vector.broadcast %114 : vector<1x32xf32> to vector<2x32xf32>
    %116 = arith.addf %113, %115 : vector<2x32xf32>
    %c0_72 = arith.constant 0 : index
    %c0_73 = arith.constant 0 : index
    %117 = vector.load %arg3[%c0_72, %c0_73] : memref<2x4xf32, #tpu.memory_space<vmem>>, vector<2x4xf32>
    %c0_74 = arith.constant 0 : index
    %c0_75 = arith.constant 0 : index
    %118 = vector.load %arg12[%c0_74, %c0_75] : memref<4x32xf32, #tpu.memory_space<vmem>>, vector<4x32xf32>
    %c0_76 = arith.constant 0 : index
    %c0_77 = arith.constant 0 : index
    %119 = vector.load %arg13[%c0_76, %c0_77] : memref<1x32xf32, #tpu.memory_space<vmem>>, vector<1x32xf32>
    %cst_78 = arith.constant 5.000000e-01 : f32
    %120 = vector.broadcast %cst_78 : f32 to vector<2x4xf32>
    %121 = arith.mulf %120, %117 : vector<2x4xf32>
    %cst_79 = arith.constant 0.707106769 : f32
    %122 = vector.broadcast %cst_79 : f32 to vector<2x4xf32>
    %123 = arith.mulf %117, %122 : vector<2x4xf32>
    %124 = math.erf %123 : vector<2x4xf32>
    %cst_80 = arith.constant 1.000000e+00 : f32
    %125 = vector.broadcast %cst_80 : f32 to vector<2x4xf32>
    %126 = arith.addf %125, %124 : vector<2x4xf32>
    %127 = arith.mulf %121, %126 : vector<2x4xf32>
    %cst_81 = arith.constant dense<0.000000e+00> : vector<2x32xf32>
    %128 = tpu.matmul %127, %118, %cst_81 {dimension_numbers = #tpu.dot_dimension_numbers<[1], [0], [0], [1], [0, 0, 1, 1], [], []>} : vector<2x4xf32>, vector<4x32xf32>, vector<2x32xf32> -> vector<2x32xf32>
    %129 = vector.broadcast %119 : vector<1x32xf32> to vector<2x32xf32>
    %130 = arith.addf %128, %129 : vector<2x32xf32>
    %cst_82 = arith.constant 0.000000e+00 : f32
    %131 = vector.broadcast %cst_82 : f32 to vector<2x4xf32>
    %132 = arith.subf %131, %117 : vector<2x4xf32>
    %cst_83 = arith.constant 5.000000e-01 : f32
    %133 = vector.broadcast %cst_83 : f32 to vector<2x4xf32>
    %134 = arith.mulf %133, %132 : vector<2x4xf32>
    %cst_84 = arith.constant 0.707106769 : f32
    %135 = vector.broadcast %cst_84 : f32 to vector<2x4xf32>
    %136 = arith.mulf %132, %135 : vector<2x4xf32>
    %137 = math.erf %136 : vector<2x4xf32>
    %cst_85 = arith.constant 1.000000e+00 : f32
    %138 = vector.broadcast %cst_85 : f32 to vector<2x4xf32>
    %139 = arith.addf %138, %137 : vector<2x4xf32>
    %140 = arith.mulf %134, %139 : vector<2x4xf32>
    %cst_86 = arith.constant dense<0.000000e+00> : vector<2x32xf32>
    %141 = tpu.matmul %140, %118, %cst_86 {dimension_numbers = #tpu.dot_dimension_numbers<[1], [0], [0], [1], [0, 0, 1, 1], [], []>} : vector<2x4xf32>, vector<4x32xf32>, vector<2x32xf32> -> vector<2x32xf32>
    %142 = vector.broadcast %119 : vector<1x32xf32> to vector<2x32xf32>
    %143 = arith.addf %141, %142 : vector<2x32xf32>
    %c0_87 = arith.constant 0 : index
    %c0_88 = arith.constant 0 : index
    %144 = vector.load %arg14[%c0_87, %c0_88] : memref<32x32xf32, #tpu.memory_space<vmem>>, vector<32x32xf32>
    %c0_89 = arith.constant 0 : index
    %c0_90 = arith.constant 0 : index
    %145 = vector.load %arg15[%c0_89, %c0_90] : memref<1x32xf32, #tpu.memory_space<vmem>>, vector<1x32xf32>
    %c0_91 = arith.constant 0 : index
    %c0_92 = arith.constant 0 : index
    %146 = vector.load %arg16[%c0_91, %c0_92] : memref<32x32xf32, #tpu.memory_space<vmem>>, vector<32x32xf32>
    %c0_93 = arith.constant 0 : index
    %c0_94 = arith.constant 0 : index
    %147 = vector.load %arg17[%c0_93, %c0_94] : memref<1x32xf32, #tpu.memory_space<vmem>>, vector<1x32xf32>
    %148 = arith.addf %58, %130 : vector<2x32xf32>
    %cst_95 = arith.constant dense<0.000000e+00> : vector<2x32xf32>
    %149 = tpu.matmul %148, %144, %cst_95 {dimension_numbers = #tpu.dot_dimension_numbers<[1], [0], [0], [1], [0, 0, 1, 1], [], []>} : vector<2x32xf32>, vector<32x32xf32>, vector<2x32xf32> -> vector<2x32xf32>
    %150 = vector.broadcast %145 : vector<1x32xf32> to vector<2x32xf32>
    %151 = arith.addf %149, %150 : vector<2x32xf32>
    %cst_96 = arith.constant 5.000000e-01 : f32
    %152 = vector.broadcast %cst_96 : f32 to vector<2x32xf32>
    %153 = arith.mulf %152, %151 : vector<2x32xf32>
    %cst_97 = arith.constant 0.707106769 : f32
    %154 = vector.broadcast %cst_97 : f32 to vector<2x32xf32>
    %155 = arith.mulf %151, %154 : vector<2x32xf32>
    %156 = math.erf %155 : vector<2x32xf32>
    %cst_98 = arith.constant 1.000000e+00 : f32
    %157 = vector.broadcast %cst_98 : f32 to vector<2x32xf32>
    %158 = arith.addf %157, %156 : vector<2x32xf32>
    %159 = arith.mulf %153, %158 : vector<2x32xf32>
    %cst_99 = arith.constant dense<0.000000e+00> : vector<2x32xf32>
    %160 = tpu.matmul %159, %144, %cst_99 {dimension_numbers = #tpu.dot_dimension_numbers<[1], [0], [0], [1], [0, 0, 1, 1], [], []>} : vector<2x32xf32>, vector<32x32xf32>, vector<2x32xf32> -> vector<2x32xf32>
    %161 = vector.broadcast %145 : vector<1x32xf32> to vector<2x32xf32>
    %162 = arith.addf %160, %161 : vector<2x32xf32>
    %cst_100 = arith.constant 5.000000e-01 : f32
    %163 = vector.broadcast %cst_100 : f32 to vector<2x32xf32>
    %164 = arith.mulf %163, %162 : vector<2x32xf32>
    %cst_101 = arith.constant 0.707106769 : f32
    %165 = vector.broadcast %cst_101 : f32 to vector<2x32xf32>
    %166 = arith.mulf %162, %165 : vector<2x32xf32>
    %167 = math.erf %166 : vector<2x32xf32>
    %cst_102 = arith.constant 1.000000e+00 : f32
    %168 = vector.broadcast %cst_102 : f32 to vector<2x32xf32>
    %169 = arith.addf %168, %167 : vector<2x32xf32>
    %170 = arith.mulf %164, %169 : vector<2x32xf32>
    %cst_103 = arith.constant dense<0.000000e+00> : vector<2x32xf32>
    %171 = tpu.matmul %170, %146, %cst_103 {dimension_numbers = #tpu.dot_dimension_numbers<[1], [0], [0], [1], [0, 0, 1, 1], [], []>} : vector<2x32xf32>, vector<32x32xf32>, vector<2x32xf32> -> vector<2x32xf32>
    %172 = vector.broadcast %147 : vector<1x32xf32> to vector<2x32xf32>
    %173 = arith.addf %171, %172 : vector<2x32xf32>
    %174 = arith.addf %173, %143 : vector<2x32xf32>
    %cst_104 = arith.constant dense<0.000000e+00> : vector<2x32xf32>
    %175 = tpu.matmul %174, %144, %cst_104 {dimension_numbers = #tpu.dot_dimension_numbers<[1], [0], [0], [1], [0, 0, 1, 1], [], []>} : vector<2x32xf32>, vector<32x32xf32>, vector<2x32xf32> -> vector<2x32xf32>
    %176 = vector.broadcast %145 : vector<1x32xf32> to vector<2x32xf32>
    %177 = arith.addf %175, %176 : vector<2x32xf32>
    %cst_105 = arith.constant 5.000000e-01 : f32
    %178 = vector.broadcast %cst_105 : f32 to vector<2x32xf32>
    %179 = arith.mulf %178, %177 : vector<2x32xf32>
    %cst_106 = arith.constant 0.707106769 : f32
    %180 = vector.broadcast %cst_106 : f32 to vector<2x32xf32>
    %181 = arith.mulf %177, %180 : vector<2x32xf32>
    %182 = math.erf %181 : vector<2x32xf32>
    %cst_107 = arith.constant 1.000000e+00 : f32
    %183 = vector.broadcast %cst_107 : f32 to vector<2x32xf32>
    %184 = arith.addf %183, %182 : vector<2x32xf32>
    %185 = arith.mulf %179, %184 : vector<2x32xf32>
    %cst_108 = arith.constant dense<0.000000e+00> : vector<2x32xf32>
    %186 = tpu.matmul %185, %144, %cst_108 {dimension_numbers = #tpu.dot_dimension_numbers<[1], [0], [0], [1], [0, 0, 1, 1], [], []>} : vector<2x32xf32>, vector<32x32xf32>, vector<2x32xf32> -> vector<2x32xf32>
    %187 = vector.broadcast %145 : vector<1x32xf32> to vector<2x32xf32>
    %188 = arith.addf %186, %187 : vector<2x32xf32>
    %cst_109 = arith.constant 5.000000e-01 : f32
    %189 = vector.broadcast %cst_109 : f32 to vector<2x32xf32>
    %190 = arith.mulf %189, %188 : vector<2x32xf32>
    %cst_110 = arith.constant 0.707106769 : f32
    %191 = vector.broadcast %cst_110 : f32 to vector<2x32xf32>
    %192 = arith.mulf %188, %191 : vector<2x32xf32>
    %193 = math.erf %192 : vector<2x32xf32>
    %cst_111 = arith.constant 1.000000e+00 : f32
    %194 = vector.broadcast %cst_111 : f32 to vector<2x32xf32>
    %195 = arith.addf %194, %193 : vector<2x32xf32>
    %196 = arith.mulf %190, %195 : vector<2x32xf32>
    %cst_112 = arith.constant dense<0.000000e+00> : vector<2x32xf32>
    %197 = tpu.matmul %196, %146, %cst_112 {dimension_numbers = #tpu.dot_dimension_numbers<[1], [0], [0], [1], [0, 0, 1, 1], [], []>} : vector<2x32xf32>, vector<32x32xf32>, vector<2x32xf32> -> vector<2x32xf32>
    %198 = vector.broadcast %147 : vector<1x32xf32> to vector<2x32xf32>
    %199 = arith.addf %197, %198 : vector<2x32xf32>
    %200 = arith.subf %199, %58 : vector<2x32xf32>
    %c0_113 = arith.constant 0 : index
    %c0_114 = arith.constant 0 : index
    %201 = vector.load %arg18[%c0_113, %c0_114] : memref<2x32xf32, #tpu.memory_space<vmem>>, vector<2x32xf32>
    tpu.vector_store %arg18[%c0_113, %c0_114], %116 {strides = array<i32>} : memref<2x32xf32, #tpu.memory_space<vmem>>, vector<2x32xf32>,
    %c0_115 = arith.constant 0 : index
    %c0_116 = arith.constant 0 : index
    %202 = vector.load %arg19[%c0_115, %c0_116] : memref<2x32xf32, #tpu.memory_space<vmem>>, vector<2x32xf32>
    tpu.vector_store %arg19[%c0_115, %c0_116], %173 {strides = array<i32>} : memref<2x32xf32, #tpu.memory_space<vmem>>, vector<2x32xf32>,
    %203 = arith.mulf %200, %200 : vector<2x32xf32>
    %204 = vector.shape_cast %203 : vector<2x32xf32> to vector<1x2x32xf32>
    %cst_117 = arith.constant dense<0.000000e+00> : vector<1xf32>
    %205 = vector.multi_reduction <add>, %204, %cst_117 [1, 2] : vector<1x2x32xf32> to vector<1xf32>
    %206 = vector.shape_cast %205 : vector<1xf32> to vector<1x1x1xf32>
    %207 = vector.extract %206[0, 0, 0] : f32 from vector<1x1x1xf32>
    %208 = vector.broadcast %207 : f32 to vector<1x1xf32>
    %cst_118 = arith.constant 6.400000e+01 : f32
    %209 = vector.broadcast %cst_118 : f32 to vector<1x1xf32>
    %210 = arith.divf %208, %209 : vector<1x1xf32>
    %c0_119 = arith.constant 0 : index
    %c0_120 = arith.constant 0 : index
    %211 = vector.load %arg20[%c0_119, %c0_120] : memref<1x1xf32, #tpu.memory_space<vmem>>, vector<1x1xf32>
    tpu.vector_store %arg20[%c0_119, %c0_120], %210 {strides = array<i32>} : memref<1x1xf32, #tpu.memory_space<vmem>>, vector<1x1xf32>,
    return
  }
}

</mosaic_0001>

<bundles_post_ra>
// kernel: saccade_jepa_forward.1
= control target key start
LH: loop header
LB: loop body
LE: loop exit
PB: predicated region body
PF: predicated region fallthrough
CT: control target
= control target key end

     0   :  { %s8328_s0 = inlined_call_operand.vmem [shape: f32[224,3], index: 0, kind: input, shape index: {}]   ;;  %s8329_s1 = inlined_call_operand.vmem [shape: f32[224,3], index: 1, kind: input, shape index: {}]   ;;  %s8330_s2 = inlined_call_operand.vmem [shape: f32[2,200], index: 2, kind: input, shape index: {}]   ;;  %s8331_s3 = inlined_call_operand.vmem [shape: f32[2,4], index: 3, kind: input, shape index: {}]   ;;  %s8332_s4 = inlined_call_operand.vmem [shape: f32[9,3,32], index: 4, kind: input, shape index: {}]   ;;  %s8333_s5 = inlined_call_operand.vmem [shape: f32[1,32], index: 5, kind: input, shape index: {}]   ;;  %s8334_s6 = inlined_call_operand.vmem [shape: f32[32,32], index: 6, kind: input, shape index: {}]   ;;  %s8335_s7 = inlined_call_operand.vmem [shape: f32[1,32], index: 7, kind: input, shape index: {}]   ;;  %s8336_s8 = inlined_call_operand.vmem [shape: f32[9,3,32], index: 8, kind: input, shape index: {}]   ;;  %s8337_s9 = inlined_call_operand.vmem [shape: f32[1,32], index: 9, kind: input, shape index: {}]   ;;  %s8338_s10 = inlined_call_operand.vmem [shape: f32[32,32], index: 10, kind: input, shape index: {}]   ;;  %s8339_s11 = inlined_call_operand.vmem [shape: f32[1,32], index: 11, kind: input, shape index: {}]   ;;  %s8340_s12 = inlined_call_operand.vmem [shape: f32[4,32], index: 12, kind: input, shape index: {}]   ;;  %s8341_s13 = inlined_call_operand.vmem [shape: f32[1,32], index: 13, kind: input, shape index: {}]   ;;  %s8342_s14 = inlined_call_operand.vmem [shape: f32[32,32], index: 14, kind: input, shape index: {}]   ;;  %s8343_s15 = inlined_call_operand.vmem [shape: f32[1,32], index: 15, kind: input, shape index: {}]   ;;  %s8344_s16 = inlined_call_operand.vmem [shape: f32[32,32], index: 16, kind: input, shape index: {}]   ;;  %s8345_s17 = inlined_call_operand.vmem [shape: f32[1,32], index: 17, kind: input, shape index: {}]   ;;  %s8346_s18 = inlined_call_operand.hbm [shape: f32[2,32], index: 18, kind: output, shape index: {0}]   ;;  %s8347_s19 = inlined_call_operand.hbm [shape: f32[2,32], index: 19, kind: output, shape index: {1}]   ;;  %s8348_s20 = inlined_call_operand.hbm [shape: f32[1,1], index: 20, kind: output, shape index: {2}]  }
   0x1   :  { %8352 = sst [smem:[#allocation67_spill]] %s8328_s0 }
   0x2   :  { %8353 = sst [smem:[#allocation68_spill]] %s8329_s1 }
   0x3   :  { %8354 = sst [smem:[#allocation69_spill]] %s8330_s2 }
   0x4   :  { %8355 = sst [smem:[#allocation70_spill]] %s8331_s3 }
   0x5   :  { %8356 = sst [smem:[#allocation71_spill]] %s8332_s4 }
   0x6   :  { %26 = vsyncpa [#allocation3], 0  ;;  %s8357_s23 = sld [smem:[#allocation71_spill]]  ;;  %vm200_vm0 = vcmask 1042432   ;;  %vm124_vm1 = vcmask 23552  }
   0x7   :  { %s8358_s26 = sld [smem:[#allocation67_spill]] }
   0xc   :  { %v66_v0 = vld [vmem:[%s8357_s23 + $0x4] sm:$0x7]  ;;  %v65_v1 = vld [vmem:[%s8357_s23] sm:$0x7] }
   0xd   :  { %v99_v2 = vld [vmem:[%s8358_s26 + $0x1] sm:$0xff]  ;;  %4761 = vmatpush.msk.msra.mxu0 %vm200_vm0, %v66_v0  ;;  %5249 = vmatpush.msk.msra.mxu2 %vm200_vm0, %v66_v0  ;;  %v89_v5 = vld [vmem:[%s8358_s26 + $0x78] sm:$0xff]  ;;  %v100_v6 = vld [vmem:[%s8358_s26 + $0x9] sm:$0xff] }
   0xe   :  { %v115_v3 = vld [vmem:[%s8358_s26 + $0x81] sm:$0xff]  ;;  %4787 = vmatpush.msk.msra.mxu1 %vm200_vm0, %v65_v1  ;;  %5250 = vmatpush.msk.msra.mxu3 %vm200_vm0, %v65_v1  ;;  %v116_v7 = vld [vmem:[%s8358_s26 + $0x89] sm:$0xff] }
   0xf   :  { %v74_v4 = vld [vmem:[%s8358_s26] sm:$0xff]  ;;  %4762 = vmatmul.msk.f32.vlgmr.msra.gmra.mxu0 %vm124_vm1, %v99_v2  ;;  %4778 = vmatmul.msk.f32.vlgmr.msra.gmra.mxu2 %vm124_vm1, %v115_v3  ;;  %v75_v8 = vld [vmem:[%s8358_s26 + $0x8] sm:$0xff] }
  0x10   :  { %4788 = vmatmul.msk.f32.vlgmr.msra.gmra.mxu1 %vm124_vm1, %v74_v4  ;;  %4803 = vmatmul.msk.f32.vlgmr.msra.gmra.mxu3 %vm124_vm1, %v89_v5  ;;  %v90_v9 = vld [vmem:[%s8358_s26 + $0x80] sm:$0xff] }
  0x11   :  { %27 = vsyncpa [#allocation5], 0  ;;  %v101_v10 = vld [vmem:[%s8358_s26 + $0x11] sm:$0xff]  ;;  %v91_v13 = vld [vmem:[%s8358_s26 + $0x88] sm:$0xff]  ;;  %s8417_s1 = sld [smem:[#allocation69_spill]]  ;;  %vm2065_vm2 = vcmask 588800  }
  0x12   :  { %v117_v11 = vld [vmem:[%s8358_s26 + $0x91] sm:$0xff]  ;;  %v102_v14 = vld [vmem:[%s8358_s26 + $0x19] sm:$0xff]  ;;  %v103_v18 = vld [vmem:[%s8358_s26 + $0x21] sm:$0xff]  ;;  %s8455_s27 = sld [smem:[#allocation68_spill]]  ;;  %vm2116_vm3 = vcmask 261120   ;;  %vm4264_vm8 = vcmask 1043456  }
  0x13   :  { %v76_v12 = vld [vmem:[%s8358_s26 + $0x10] sm:$0xff]  ;;  %v118_v15 = vld [vmem:[%s8358_s26 + $0x99] sm:$0xff]  ;;  %v119_v19 = vld [vmem:[%s8358_s26 + $0xa1] sm:$0xff]  ;;  %s8477_s0 = sld [smem:[#allocation70_spill]]  ;;  %vm4260_vm9 = vcmask 31744   ;;  %vm4689_vm10 = vcmask 254976  }
  0x14   :  { %v77_v16 = vld [vmem:[%s8358_s26 + $0x18] sm:$0xff]  ;;  %v92_v17 = vld [vmem:[%s8358_s26 + $0x90] sm:$0xff]  ;;  %v78_v20 = vld [vmem:[%s8358_s26 + $0x20] sm:$0xff] }
  0x15   :  { %v93_v21 = vld [vmem:[%s8358_s26 + $0x98] sm:$0xff]  ;;  %v67_v22 = vld [vmem:[%s8357_s23 + $0x8] sm:$0x7]  ;;  %v94_v26 = vld [vmem:[%s8358_s26 + $0xa0] sm:$0xff] }
  0x16   :  { %4813 = vmatpush.msk.msrb.mxu2 %vm200_vm0, %v67_v22  ;;  %v104_v23 = vld [vmem:[%s8358_s26 + $0x29] sm:$0xff]  ;;  %v105_v28 = vld [vmem:[%s8358_s26 + $0x31] sm:$0xff]  ;;  %v106_v32 = vld [vmem:[%s8358_s26 + $0x39] sm:$0xff] }
  0x17   :  { %4763 = vmatmul.msk.f32.gmra.mxu0 %vm124_vm1, %v100_v6  ;;  %4779 = vmatmul.msk.f32.gmra.mxu2 %vm124_vm1, %v116_v7  ;;  %v120_v24 = vld [vmem:[%s8358_s26 + $0xa9] sm:$0xff]  ;;  %v121_v29 = vld [vmem:[%s8358_s26 + $0xb1] sm:$0xff]  ;;  %v122_v33 = vld [vmem:[%s8358_s26 + $0xb9] sm:$0xff] }
  0x18   :  { %4789 = vmatmul.msk.f32.gmra.mxu1 %vm124_vm1, %v75_v8  ;;  %4804 = vmatmul.msk.f32.gmra.mxu3 %vm124_vm1, %v90_v9  ;;  %v79_v25 = vld [vmem:[%s8358_s26 + $0x28] sm:$0xff]  ;;  %v80_v30 = vld [vmem:[%s8358_s26 + $0x30] sm:$0xff]  ;;  %v81_v34 = vld [vmem:[%s8358_s26 + $0x38] sm:$0xff] }
  0x19   :  { %v68_v27 = vld [vmem:[%s8357_s23 + $0xc] sm:$0x7]  ;;  %v96_v35 = vld [vmem:[%s8358_s26 + $0xb0] sm:$0xff]  ;;  %v107_v36 = vld [vmem:[%s8358_s26 + $0x41] sm:$0xff] }
  0x1a   :  { %4839 = vmatpush.msk.msrb.mxu3 %vm200_vm0, %v68_v27  ;;  %v95_v31 = vld [vmem:[%s8358_s26 + $0xa8] sm:$0xff]  ;;  %v82_v38 = vld [vmem:[%s8358_s26 + $0x40] sm:$0xff]  ;;  %v97_v39 = vld [vmem:[%s8358_s26 + $0xb8] sm:$0xff] }
  0x1b   :  { %v123_v37 = vld [vmem:[%s8358_s26 + $0xc1] sm:$0xff]  ;;  %v108_v40 = vld [vmem:[%s8358_s26 + $0x49] sm:$0xff]  ;;  %v109_v44 = vld [vmem:[%s8358_s26 + $0x51] sm:$0xff] }
  0x1c   :  { %v466_v41 = vld [vmem:[%s8358_s26 + $0x2] sm:$0xff]  ;;  %v467_v45 = vld [vmem:[%s8358_s26 + $0xa] sm:$0xff]  ;;  %v110_v47 = vld [vmem:[%s8358_s26 + $0x59] sm:$0xff] }
  0x1d   :  { %v83_v42 = vld [vmem:[%s8358_s26 + $0x48] sm:$0xff]  ;;  %v98_v43 = vld [vmem:[%s8358_s26 + $0xc0] sm:$0xff]  ;;  %v84_v46 = vld [vmem:[%s8358_s26 + $0x50] sm:$0xff] }
  0x1e   :  { %v468_v48 = vld [vmem:[%s8358_s26 + $0x12] sm:$0xff]  ;;  %v111_v50 = vld [vmem:[%s8358_s26 + $0x61] sm:$0xff]  ;;  %v112_v55 = vld [vmem:[%s8358_s26 + $0x69] sm:$0xff] }
  0x1f   :  { %4764 = vmatmul.msk.f32.gmra.mxu0 %vm124_vm1, %v101_v10  ;;  %4780 = vmatmul.msk.f32.gmra.mxu2 %vm124_vm1, %v117_v11  ;;  %v85_v49 = vld [vmem:[%s8358_s26 + $0x58] sm:$0xff]  ;;  %v86_v52 = vld [vmem:[%s8358_s26 + $0x60] sm:$0xff]  ;;  %v69_v53 = vld [vmem:[%s8357_s23 + $0x10] sm:$0x7] }
  0x20   :  { %4790 = vmatmul.msk.f32.gmra.mxu1 %vm124_vm1, %v76_v12  ;;  %4805 = vmatmul.msk.f32.gmra.mxu3 %vm124_vm1, %v91_v13  ;;  %v469_v51 = vld [vmem:[%s8358_s26 + $0x1a] sm:$0xff]  ;;  %v70_v54 = vld [vmem:[%s8357_s23 + $0x14] sm:$0x7]  ;;  %v470_v56 = vld [vmem:[%s8358_s26 + $0x22] sm:$0xff] }
  0x21   :  { %4865 = vmatpush.msk.msrb.mxu0 %vm200_vm0, %v69_v53  ;;  %4891 = vmatpush.msk.msrb.mxu1 %vm200_vm0, %v70_v54  ;;  %v87_v57 = vld [vmem:[%s8358_s26 + $0x68] sm:$0xff]  ;;  %v113_v58 = vld [vmem:[%s8358_s26 + $0x71] sm:$0xff]  ;;  %v114_v61 = vld [vmem:[%s8358_s26 + $0x79] sm:$0xff] }
  0x22   :  { %v471_v59 = vld [vmem:[%s8358_s26 + $0x2a] sm:$0xff]  ;;  %v472_v62 = vld [vmem:[%s8358_s26 + $0x32] sm:$0xff]  ;;  %v473_v1 = vld [vmem:[%s8358_s26 + $0x3a] sm:$0xff] }
  0x23   :  { %v88_v60 = vld [vmem:[%s8358_s26 + $0x70] sm:$0xff]  ;;  %v474_v8 = vld [vmem:[%s8358_s26 + $0x42] sm:$0xff] }
  0x24   :  { %v1126_v63 = vld [vmem:[%s8358_s26 + $0xc] sm:$0xff]  ;;  %v5740_v4 = vld [vmem:[%s8358_s26 + $0x14] sm:$0xff]  ;;  %v5762_v11 = vld [vmem:[%s8358_s26 + $0x1c] sm:$0xff] }
  0x25   :  { %v906_v2 = vld [vmem:[%s8358_s26 + $0xb] sm:$0xff]  ;;  %v907_v9 = vld [vmem:[%s8358_s26 + $0x13] sm:$0xff] }
  0x26   :  { %v5806_v27 = vld [vmem:[%s8358_s26 + $0x2c] sm:$0xff] }
  0x27   :  { %4765 = vmatmul.msk.f32.gmra.mxu0 %vm124_vm1, %v102_v14  ;;  %4781 = vmatmul.msk.f32.gmra.mxu2 %vm124_vm1, %v118_v15 }
  0x28   :  { %4791 = vmatmul.msk.f32.gmra.mxu1 %vm124_vm1, %v77_v16  ;;  %4806 = vmatmul.msk.f32.gmra.mxu3 %vm124_vm1, %v92_v17  ;;  %v475_v16 = vld [vmem:[%s8358_s26 + $0x4a] sm:$0xff]  ;;  %v908_v17 = vld [vmem:[%s8358_s26 + $0x1b] sm:$0xff] }
  0x2f   :  { %4766 = vmatmul.msk.f32.gmra.mxu0 %vm124_vm1, %v103_v18  ;;  %4782 = vmatmul.msk.f32.gmra.mxu2 %vm124_vm1, %v119_v19  ;;  %v5784_v19 = vld [vmem:[%s8358_s26 + $0x24] sm:$0xff] }
  0x30   :  { %4792 = vmatmul.msk.f32.gmra.mxu1 %vm124_vm1, %v78_v20  ;;  %4807 = vmatmul.msk.f32.gmra.mxu3 %vm124_vm1, %v93_v21 }
  0x37   :  { %4767 = vmatmul.msk.f32.gmra.mxu0 %vm124_vm1, %v104_v23  ;;  %4783 = vmatmul.msk.f32.gmra.mxu2 %vm124_vm1, %v120_v24  ;;  %v476_v24 = vld [vmem:[%s8358_s26 + $0x52] sm:$0xff] }
  0x38   :  { %4793 = vmatmul.msk.f32.gmra.mxu1 %vm124_vm1, %v79_v25  ;;  %4808 = vmatmul.msk.f32.gmra.mxu3 %vm124_vm1, %v94_v26  ;;  %v909_v25 = vld [vmem:[%s8358_s26 + $0x23] sm:$0xff] }
  0x3f   :  { %4768 = vmatmul.msk.f32.gmra.mxu0 %vm124_vm1, %v105_v28  ;;  %4784 = vmatmul.msk.f32.gmra.mxu2 %vm124_vm1, %v121_v29 }
  0x40   :  { %4794 = vmatmul.msk.f32.gmra.mxu1 %vm124_vm1, %v80_v30  ;;  %4809 = vmatmul.msk.f32.gmra.mxu3 %vm124_vm1, %v95_v31 }
  0x47   :  { %4769 = vmatmul.msk.f32.gmra.mxu0 %vm124_vm1, %v106_v32  ;;  %4785 = vmatmul.msk.f32.gmra.mxu2 %vm124_vm1, %v122_v33  ;;  %v477_v32 = vld [vmem:[%s8358_s26 + $0x5a] sm:$0xff]  ;;  %v910_v33 = vld [vmem:[%s8358_s26 + $0x2b] sm:$0xff] }
  0x48   :  { %4795 = vmatmul.msk.f32.gmra.mxu1 %vm124_vm1, %v81_v34  ;;  %4810 = vmatmul.msk.f32.gmra.mxu3 %vm124_vm1, %v96_v35  ;;  %v5828_v35 = vld [vmem:[%s8358_s26 + $0x34] sm:$0xff] }
  0x4f   :  { %4770 = vmatmul.msk.f32.gmra.mxu0 %vm124_vm1, %v107_v36  ;;  %4786 = vmatmul.msk.f32.gmra.mxu2 %vm124_vm1, %v123_v37 }
  0x50   :  { %4796 = vmatmul.msk.f32.gmra.mxu1 %vm124_vm1, %v82_v38  ;;  %4811 = vmatmul.msk.f32.gmra.mxu3 %vm124_vm1, %v97_v39 }
  0x57   :  { %4771 = vmatmul.msk.f32.gmra.mxu0 %vm124_vm1, %v108_v40  ;;  %4814 = vmatmul.msk.f32.vlgmr.msrb.gmra.mxu2 %vm124_vm1, %v466_v41  ;;  %v478_v40 = vld [vmem:[%s8358_s26 + $0x62] sm:$0xff]  ;;  %v911_v41 = vld [vmem:[%s8358_s26 + $0x33] sm:$0xff] }
  0x58   :  { %4797 = vmatmul.msk.f32.gmra.mxu1 %vm124_vm1, %v83_v42  ;;  %4812 = vmatmul.msk.f32.gmra.mxu3 %vm124_vm1, %v98_v43  ;;  %v5850_v43 = vld [vmem:[%s8358_s26 + $0x3c] sm:$0xff] }
  0x5f   :  { %4772 = vmatmul.msk.f32.gmra.mxu0 %vm124_vm1, %v109_v44  ;;  %4815 = vmatmul.msk.f32.gmra.mxu2 %vm124_vm1, %v467_v45 }
  0x60   :  { %4798 = vmatmul.msk.f32.gmra.mxu1 %vm124_vm1, %v84_v46  ;;  %4840 = vmatmul.msk.f32.vlgmr.msrb.gmra.mxu3 %vm124_vm1, %v467_v45 }
  0x67   :  { %4773 = vmatmul.msk.f32.gmra.mxu0 %vm124_vm1, %v110_v47  ;;  %4816 = vmatmul.msk.f32.gmra.mxu2 %vm124_vm1, %v468_v48 }
  0x68   :  { %4799 = vmatmul.msk.f32.gmra.mxu1 %vm124_vm1, %v85_v49  ;;  %4841 = vmatmul.msk.f32.gmra.mxu3 %vm124_vm1, %v468_v48  ;;  %v479_v48 = vld [vmem:[%s8358_s26 + $0x6a] sm:$0xff]  ;;  %v912_v49 = vld [vmem:[%s8358_s26 + $0x3b] sm:$0xff] }
  0x6f   :  { %4774 = vmatmul.msk.f32.gmra.mxu0 %vm124_vm1, %v111_v50  ;;  %4817 = vmatmul.msk.f32.gmra.mxu2 %vm124_vm1, %v469_v51 }
  0x70   :  { %4800 = vmatmul.msk.f32.gmra.mxu1 %vm124_vm1, %v86_v52  ;;  %4842 = vmatmul.msk.f32.gmra.mxu3 %vm124_vm1, %v469_v51  ;;  %v5872_v51 = vld [vmem:[%s8358_s26 + $0x44] sm:$0xff] }
  0x77   :  { %4775 = vmatmul.msk.f32.gmra.mxu0 %vm124_vm1, %v112_v55  ;;  %4818 = vmatmul.msk.f32.gmra.mxu2 %vm124_vm1, %v470_v56 }
  0x78   :  { %4801 = vmatmul.msk.f32.gmra.mxu1 %vm124_vm1, %v87_v57  ;;  %4843 = vmatmul.msk.f32.gmra.mxu3 %vm124_vm1, %v470_v56  ;;  %v480_v56 = vld [vmem:[%s8358_s26 + $0x72] sm:$0xff]  ;;  %v913_v57 = vld [vmem:[%s8358_s26 + $0x43] sm:$0xff] }
  0x7f   :  { %4776 = vmatmul.msk.f32.gmra.mxu0 %vm124_vm1, %v113_v58  ;;  %4819 = vmatmul.msk.f32.gmra.mxu2 %vm124_vm1, %v471_v59 }
  0x80   :  { %4802 = vmatmul.msk.f32.gmra.mxu1 %vm124_vm1, %v88_v60  ;;  %4844 = vmatmul.msk.f32.gmra.mxu3 %vm124_vm1, %v471_v59  ;;  %v5894_v59 = vld [vmem:[%s8358_s26 + $0x4c] sm:$0xff] }
  0x87   :  { %4777 = vmatmul.msk.f32.gmra.mxu0 %vm124_vm1, %v114_v61  ;;  %4820 = vmatmul.msk.f32.gmra.mxu2 %vm124_vm1, %v472_v62 }
  0x88   :  { %4845 = vmatmul.msk.f32.gmra.mxu3 %vm124_vm1, %v472_v62  ;;  %4892 = vmatmul.msk.f32.vlgmr.msrb.gmra.mxu1 %vm124_vm1, %v1126_v63 }
  0x8c   :  { %v5727_v0 = vpop.f32.mrf.mxu0 }
  0x8d   :  { %v5735_v3 = vpop.f32.mrf.mxu1 }
  0x8f   :  { %4821 = vmatmul.msk.f32.gmra.mxu2 %vm124_vm1, %v473_v1  ;;  %4866 = vmatmul.msk.f32.vlgmr.msrb.gmra.mxu0 %vm124_vm1, %v906_v2  ;;  %v914_v2 = vld [vmem:[%s8358_s26 + $0x4b] sm:$0xff] }
  0x90   :  { %4846 = vmatmul.msk.f32.gmra.mxu3 %vm124_vm1, %v473_v1  ;;  %4893 = vmatmul.msk.f32.gmra.mxu1 %vm124_vm1, %v5740_v4  ;;  %v481_v1 = vld [vmem:[%s8358_s26 + $0x7a] sm:$0xff] }
  0x92   :  { %v269_v5 = vpop.f32.mrf.mxu2 }
  0x93   :  { %v5747_v6 = vpop.f32.mrf.mxu3 }
  0x94   :  { %v5749_v7 = vpop.f32.mrf.mxu0 }
  0x95   :  { %v5757_v10 = vpop.f32.mrf.mxu1 }
  0x97   :  { %4822 = vmatmul.msk.f32.gmra.mxu2 %vm124_vm1, %v474_v8  ;;  %4867 = vmatmul.msk.f32.gmra.mxu0 %vm124_vm1, %v907_v9 }
  0x98   :  { %4847 = vmatmul.msk.f32.gmra.mxu3 %vm124_vm1, %v474_v8  ;;  %4894 = vmatmul.msk.f32.gmra.mxu1 %vm124_vm1, %v5762_v11  ;;  %v5916_v8 = vld [vmem:[%s8358_s26 + $0x54] sm:$0xff] }
  0x9a   :  { %v272_v12 = vpop.f32.mrf.mxu2 }
  0x9b   :  { %v439_v13 = vpop.f32.mrf.mxu3 }
  0x9c   :  { %v5769_v14 = vadd.f32 %v439_v13, %v269_v5  ;;  %v5771_v15 = vpop.f32.mrf.mxu0 }
  0x9d   :  { %v5779_v18 = vpop.f32.mrf.mxu1 }
  0x9f   :  { %4823 = vmatmul.msk.f32.gmra.mxu2 %vm124_vm1, %v475_v16  ;;  %4868 = vmatmul.msk.f32.gmra.mxu0 %vm124_vm1, %v908_v17  ;;  %v482_v17 = vld [vmem:[%s8358_s26 + $0x82] sm:$0xff] }
  0xa0   :  { %4848 = vmatmul.msk.f32.gmra.mxu3 %vm124_vm1, %v475_v16  ;;  %4895 = vmatmul.msk.f32.gmra.mxu1 %vm124_vm1, %v5784_v19 }
  0xa2   :  { %v275_v20 = vpop.f32.mrf.mxu2 }
  0xa3   :  { %v442_v21 = vpop.f32.mrf.mxu3 }
  0xa4   :  { %v5791_v22 = vadd.f32 %v442_v21, %v272_v12  ;;  %v5793_v23 = vpop.f32.mrf.mxu0 }
  0xa5   :  { %v5801_v26 = vpop.f32.mrf.mxu1 }
  0xa7   :  { %4824 = vmatmul.msk.f32.gmra.mxu2 %vm124_vm1, %v476_v24  ;;  %4869 = vmatmul.msk.f32.gmra.mxu0 %vm124_vm1, %v909_v25 }
  0xa8   :  { %4849 = vmatmul.msk.f32.gmra.mxu3 %vm124_vm1, %v476_v24  ;;  %4896 = vmatmul.msk.f32.gmra.mxu1 %vm124_vm1, %v5806_v27  ;;  %v5938_v24 = vld [vmem:[%s8358_s26 + $0x5c] sm:$0xff] }
  0xaa   :  { %v278_v28 = vpop.f32.mrf.mxu2 }
  0xab   :  { %v445_v29 = vpop.f32.mrf.mxu3 }
  0xac   :  { %v5813_v30 = vadd.f32 %v445_v29, %v275_v20  ;;  %v5815_v31 = vpop.f32.mrf.mxu0  ;;  %v915_v20 = vld [vmem:[%s8358_s26 + $0x53] sm:$0xff] }
  0xad   :  { %v5823_v34 = vpop.f32.mrf.mxu1 }
  0xaf   :  { %4825 = vmatmul.msk.f32.gmra.mxu2 %vm124_vm1, %v477_v32  ;;  %4870 = vmatmul.msk.f32.gmra.mxu0 %vm124_vm1, %v910_v33  ;;  %v483_v33 = vld [vmem:[%s8358_s26 + $0x8a] sm:$0xff] }
  0xb0   :  { %4850 = vmatmul.msk.f32.gmra.mxu3 %vm124_vm1, %v477_v32  ;;  %4897 = vmatmul.msk.f32.gmra.mxu1 %vm124_vm1, %v5828_v35 }
  0xb2   :  { %v281_v36 = vpop.f32.mrf.mxu2 }
  0xb3   :  { %v448_v37 = vpop.f32.mrf.mxu3 }
  0xb4   :  { %v5835_v38 = vadd.f32 %v448_v37, %v278_v28  ;;  %v5837_v39 = vpop.f32.mrf.mxu0 }
  0xb5   :  { %v5845_v42 = vpop.f32.mrf.mxu1 }
  0xb7   :  { %4826 = vmatmul.msk.f32.gmra.mxu2 %vm124_vm1, %v478_v40  ;;  %4871 = vmatmul.msk.f32.gmra.mxu0 %vm124_vm1, %v911_v41  ;;  %v392_v41 = vadd.f32 %v5735_v3, %v5727_v0  ;;  %v917_v0 = vld [vmem:[%s8358_s26 + $0x63] sm:$0xff]  ;;  %v5982_v3 = vld [vmem:[%s8358_s26 + $0x6c] sm:$0xff] }
  0xb8   :  { %4851 = vmatmul.msk.f32.gmra.mxu3 %vm124_vm1, %v478_v40  ;;  %4898 = vmatmul.msk.f32.gmra.mxu1 %vm124_vm1, %v5850_v43  ;;  %v5960_v40 = vld [vmem:[%s8358_s26 + $0x64] sm:$0xff] }
  0xba   :  { %v284_v44 = vpop.f32.mrf.mxu2 }
  0xbb   :  { %v451_v45 = vpop.f32.mrf.mxu3 }
  0xbc   :  { %v5857_v46 = vadd.f32 %v451_v45, %v281_v36  ;;  %v5859_v47 = vpop.f32.mrf.mxu0  ;;  %v916_v36 = vld [vmem:[%s8358_s26 + $0x5b] sm:$0xff] }
  0xbd   :  { %v5867_v50 = vpop.f32.mrf.mxu1 }
  0xbf   :  { %4827 = vmatmul.msk.f32.gmra.mxu2 %vm124_vm1, %v479_v48  ;;  %4872 = vmatmul.msk.f32.gmra.mxu0 %vm124_vm1, %v912_v49 }
  0xc0   :  { %4852 = vmatmul.msk.f32.gmra.mxu3 %vm124_vm1, %v479_v48  ;;  %4899 = vmatmul.msk.f32.gmra.mxu1 %vm124_vm1, %v5872_v51 }
  0xc2   :  { %v287_v52 = vpop.f32.mrf.mxu2 }
  0xc3   :  { %v454_v53 = vpop.f32.mrf.mxu3 }
  0xc4   :  { %v5879_v54 = vadd.f32 %v454_v53, %v284_v44  ;;  %v5881_v55 = vpop.f32.mrf.mxu0  ;;  %v484_v53 = vld [vmem:[%s8358_s26 + $0x92] sm:$0xff] }
  0xc5   :  { %v5889_v58 = vpop.f32.mrf.mxu1 }
  0xc7   :  { %4828 = vmatmul.msk.f32.gmra.mxu2 %vm124_vm1, %v480_v56  ;;  %4873 = vmatmul.msk.f32.gmra.mxu0 %vm124_vm1, %v913_v57  ;;  %v395_v57 = vadd.f32 %v5757_v10, %v5749_v7  ;;  %v918_v7 = vld [vmem:[%s8358_s26 + $0x6b] sm:$0xff]  ;;  %v6006_v10 = vld [vmem:[%s8358_s26 + $0x74] sm:$0xff] }
  0xc8   :  { %4853 = vmatmul.msk.f32.gmra.mxu3 %vm124_vm1, %v480_v56  ;;  %4900 = vmatmul.msk.f32.gmra.mxu1 %vm124_vm1, %v5894_v59 }
  0xca   :  { %v290_v60 = vpop.f32.mrf.mxu2 }
  0xcb   :  { %v457_v61 = vpop.f32.mrf.mxu3 }
  0xcc   :  { %v5901_v62 = vadd.f32 %v457_v61, %v287_v52  ;;  %v5903_v63 = vpop.f32.mrf.mxu0 }
  0xcd   :  { %v5911_v5 = vpop.f32.mrf.mxu1 }
  0xcf   :  { %4829 = vmatmul.msk.f32.gmra.mxu2 %vm124_vm1, %v481_v1  ;;  %4874 = vmatmul.msk.f32.gmra.mxu0 %vm124_vm1, %v914_v2 }
  0xd0   :  { %4854 = vmatmul.msk.f32.gmra.mxu3 %vm124_vm1, %v481_v1  ;;  %4901 = vmatmul.msk.f32.gmra.mxu1 %vm124_vm1, %v5916_v8 }
  0xd2   :  { %v293_v9 = vpop.f32.mrf.mxu2 }
  0xd3   :  { %v460_v12 = vpop.f32.mrf.mxu3 }
  0xd4   :  { %v5923_v13 = vadd.f32 %v460_v12, %v290_v60  ;;  %v5925_v16 = vpop.f32.mrf.mxu0  ;;  %v485_v12 = vld [vmem:[%s8358_s26 + $0x9a] sm:$0xff] }
  0xd5   :  { %v5933_v21 = vpop.f32.mrf.mxu1 }
  0xd7   :  { %4830 = vmatmul.msk.f32.gmra.mxu2 %vm124_vm1, %v482_v17  ;;  %4875 = vmatmul.msk.f32.gmra.mxu0 %vm124_vm1, %v915_v20 }
  0xd8   :  { %4855 = vmatmul.msk.f32.gmra.mxu3 %vm124_vm1, %v482_v17  ;;  %4902 = vmatmul.msk.f32.gmra.mxu1 %vm124_vm1, %v5938_v24  ;;  %v398_v17 = vadd.f32 %v5779_v18, %v5771_v15  ;;  %v919_v15 = vld [vmem:[%s8358_s26 + $0x73] sm:$0xff]  ;;  %v6030_v18 = vld [vmem:[%s8358_s26 + $0x7c] sm:$0xff] }
  0xda   :  { %v586_v25 = vpop.f32.mrf.mxu2 }
  0xdb   :  { %v463_v28 = vpop.f32.mrf.mxu3  ;;  %v661_v44 = vadd.f32 %v586_v25, %v392_v41 }
  0xdc   :  { %v5945_v29 = vadd.f32 %v463_v28, %v293_v9  ;;  %v5947_v32 = vpop.f32.mrf.mxu0 }
  0xdd   :  { %v5955_v37 = vpop.f32.mrf.mxu1 }
  0xdf   :  { %4831 = vmatmul.msk.f32.gmra.mxu2 %vm124_vm1, %v483_v33  ;;  %4876 = vmatmul.msk.f32.gmra.mxu0 %vm124_vm1, %v916_v36 }
  0xe0   :  { %4856 = vmatmul.msk.f32.gmra.mxu3 %vm124_vm1, %v483_v33  ;;  %4903 = vmatmul.msk.f32.gmra.mxu1 %vm124_vm1, %v5960_v40 }
  0xe2   :  { %v589_v45 = vpop.f32.mrf.mxu2 }
  0xe3   :  { %v806_v48 = vpop.f32.mrf.mxu3  ;;  %v662_v60 = vadd.f32 %v589_v45, %v395_v57  ;;  %v401_v45 = vadd.f32 %v5801_v26, %v5793_v23  ;;  %v920_v23 = vld [vmem:[%s8358_s26 + $0x7b] sm:$0xff]  ;;  %v6054_v26 = vld [vmem:[%s8358_s26 + $0x84] sm:$0xff] }
  0xe4   :  { %v5969_v49 = vadd.f32 %v806_v48, %v661_v44  ;;  %v5971_v52 = vpop.f32.mrf.mxu0  ;;  %v486_v44 = vld [vmem:[%s8358_s26 + $0xa2] sm:$0xff] }
  0xe5   :  { %v5984_v56 = vpop.f32.mrf.mxu1 }
  0xe7   :  { %4832 = vmatmul.msk.f32.gmra.mxu2 %vm124_vm1, %v484_v53  ;;  %4877 = vmatmul.msk.f32.gmra.mxu0 %vm124_vm1, %v917_v0 }
  0xe8   :  { %4857 = vmatmul.msk.f32.gmra.mxu3 %vm124_vm1, %v484_v53  ;;  %4904 = vmatmul.msk.f32.gmra.mxu1 %vm124_vm1, %v5982_v3 }
  0xea   :  { %v592_v61 = vpop.f32.mrf.mxu2 }
  0xeb   :  { %v809_v1 = vpop.f32.mrf.mxu3  ;;  %v663_v25 = vadd.f32 %v592_v61, %v398_v17 }
  0xec   :  { %v5993_v2 = vadd.f32 %v809_v1, %v662_v60  ;;  %v5995_v9 = vpop.f32.mrf.mxu0  ;;  %v487_v1 = vld [vmem:[%s8358_s26 + $0xaa] sm:$0xff] }
  0xed   :  { %v6012_v20 = vpop.f32.mrf.mxu1 }
  0xee   :  { %8359 = vst [vmem:[#allocation9_spill] sm:$0xff] %v5993_v2 }
  0xef   :  { %4833 = vmatmul.msk.f32.gmra.mxu2 %vm124_vm1, %v485_v12  ;;  %4878 = vmatmul.msk.f32.gmra.mxu0 %vm124_vm1, %v918_v7  ;;  %v404_v7 = vadd.f32 %v5823_v34, %v5815_v31  ;;  %v488_v31 = vld [vmem:[%s8358_s26 + $0xb2] sm:$0xff]  ;;  %v921_v34 = vld [vmem:[%s8358_s26 + $0x83] sm:$0xff] }
  0xf0   :  { %4858 = vmatmul.msk.f32.gmra.mxu3 %vm124_vm1, %v485_v12  ;;  %4905 = vmatmul.msk.f32.gmra.mxu1 %vm124_vm1, %v6006_v10  ;;  %v71_v12 = vld [vmem:[%s8357_s23 + $0x18] sm:$0x7] }
  0xf1   :  { %4917 = vmatpush.msk.msra.mxu2 %vm200_vm0, %v71_v12 }
  0xf2   :  { %v595_v28 = vpop.f32.mrf.mxu2 }
  0xf3   :  { %v812_v33 = vpop.f32.mrf.mxu3  ;;  %v664_v48 = vadd.f32 %v595_v28, %v401_v45  ;;  %v6082_v45 = vld [vmem:[%s8358_s26 + $0x8c] sm:$0xff] }
  0xf4   :  { %v6017_v36 = vadd.f32 %v812_v33, %v663_v25  ;;  %v6019_v41 = vpop.f32.mrf.mxu0 }
  0xf5   :  { %v6039_v53 = vpop.f32.mrf.mxu1 }
  0xf6   :  { %8360 = vst [vmem:[#allocation10_spill] sm:$0xff] %v6017_v36 }
  0xf7   :  { %4834 = vmatmul.msk.f32.gmra.mxu2 %vm124_vm1, %v486_v44  ;;  %4879 = vmatmul.msk.f32.gmra.mxu0 %vm124_vm1, %v919_v15 }
  0xf8   :  { %4859 = vmatmul.msk.f32.gmra.mxu3 %vm124_vm1, %v486_v44  ;;  %4906 = vmatmul.msk.f32.gmra.mxu1 %vm124_vm1, %v6030_v18 }
  0xfa   :  { %v598_v0 = vpop.f32.mrf.mxu2 }
  0xfb   :  { %v815_v57 = vpop.f32.mrf.mxu3  ;;  %v665_v17 = vadd.f32 %v598_v0, %v404_v7  ;;  %v407_v0 = vadd.f32 %v5845_v42, %v5837_v39  ;;  %v922_v39 = vld [vmem:[%s8358_s26 + $0x8b] sm:$0xff] }
  0xfc   :  { %v6041_v60 = vadd.f32 %v815_v57, %v664_v48  ;;  %v6043_v61 = vpop.f32.mrf.mxu0  ;;  %v72_v48 = vld [vmem:[%s8357_s23 + $0x1c] sm:$0x7] }
  0xfd   :  { %v6067_v33 = vpop.f32.mrf.mxu1  ;;  %4943 = vmatpush.msk.msra.mxu3 %vm200_vm0, %v72_v48 }
  0xfe   :  { %8361 = vst [vmem:[#allocation11_spill] sm:$0xff] %v6041_v60 }
  0xff   :  { %4835 = vmatmul.msk.f32.gmra.mxu2 %vm124_vm1, %v487_v1  ;;  %4880 = vmatmul.msk.f32.gmra.mxu0 %vm124_vm1, %v920_v23 }
 0x100   :  { %4860 = vmatmul.msk.f32.gmra.mxu3 %vm124_vm1, %v487_v1  ;;  %4907 = vmatmul.msk.f32.gmra.mxu1 %vm124_vm1, %v6054_v26 }
 0x102   :  { %v601_v25 = vpop.f32.mrf.mxu2 }
 0x103   :  { %v818_v28 = vpop.f32.mrf.mxu3  ;;  %v666_v57 = vadd.f32 %v601_v25, %v407_v0  ;;  %v6107_v25 = vld [vmem:[%s8358_s26 + $0x94] sm:$0xff] }
 0x104   :  { %v6069_v44 = vadd.f32 %v818_v28, %v665_v17  ;;  %v6071_v15 = vpop.f32.mrf.mxu0  ;;  %v489_v28 = vld [vmem:[%s8358_s26 + $0xba] sm:$0xff] }
 0x105   :  { %v1246_v17 = vpop.f32.mrf.mxu1 }
 0x107   :  { %4836 = vmatmul.msk.f32.gmra.mxu2 %vm124_vm1, %v488_v31  ;;  %4881 = vmatmul.msk.f32.gmra.mxu0 %vm124_vm1, %v921_v34  ;;  %v410_v34 = vadd.f32 %v5867_v50, %v5859_v47  ;;  %v923_v47 = vld [vmem:[%s8358_s26 + $0x93] sm:$0xff]  ;;  %v6131_v50 = vld [vmem:[%s8358_s26 + $0x9c] sm:$0xff] }
 0x108   :  { %4861 = vmatmul.msk.f32.gmra.mxu3 %vm124_vm1, %v488_v31  ;;  %4908 = vmatmul.msk.f32.gmra.mxu1 %vm124_vm1, %v6082_v45 }
 0x10a   :  { %v604_v1 = vpop.f32.mrf.mxu2 }
 0x10b   :  { %v821_v23 = vpop.f32.mrf.mxu3 }
 0x10c   :  { %v6095_v12 = vadd.f32 %v821_v23, %v666_v57  ;;  %v1026_v7 = vpop.f32.mrf.mxu0 }
 0x10d   :  { %v1101_v42 = vadd.f32 %v1026_v7, %v5969_v49  ;;  %v667_v49 = vadd.f32 %v604_v1, %v410_v34  ;;  %v490_v7 = vld [vmem:[%s8358_s26 + $0xc2] sm:$0xff]  ;;  %v413_v1 = vadd.f32 %v5889_v58, %v5881_v55  ;;  %v710_v55 = vld [vmem:[%s8358_s26 + $0xca] sm:$0xff] }
 0x10e   :  { %v6153_v58 = vld [vmem:[%s8358_s26 + $0xa4] sm:$0xff] }
 0x10f   :  { %v6109_v31 = vadd.f32 %v1246_v17, %v1101_v42  ;;  %4837 = vmatmul.msk.f32.gmra.mxu2 %vm124_vm1, %v489_v28  ;;  %4882 = vmatmul.msk.f32.gmra.mxu0 %vm124_vm1, %v922_v39 }
 0x110   :  { %4862 = vmatmul.msk.f32.gmra.mxu3 %vm124_vm1, %v489_v28  ;;  %4909 = vmatmul.msk.f32.gmra.mxu1 %vm124_vm1, %v6107_v25 }
 0x112   :  { %v607_v48 = vpop.f32.mrf.mxu2 }
 0x113   :  { %v824_v0 = vpop.f32.mrf.mxu3  ;;  %v668_v17 = vadd.f32 %v607_v48, %v413_v1  ;;  %v416_v48 = vadd.f32 %v5911_v5, %v5903_v63  ;;  %v6176_v63 = vld [vmem:[%s8358_s26 + $0xac] sm:$0xff]  ;;  %v73_v5 = vld [vmem:[%s8357_s23 + $0x20] sm:$0x7]  ;;  %s4732_s23 = sshll.u32 %s8347_s19, 4  ;;  %s4733_s23 = int_to_ptr.hbm [resolvable:$true] %s4732_s23 }
 0x114   :  { %v6118_v57 = vadd.f32 %v824_v0, %v667_v49  ;;  %v6120_v23 = vpop.f32.mrf.mxu0  ;;  %v924_v49 = vld [vmem:[%s8358_s26 + $0x9b] sm:$0xff]  ;;  %4969 = vmatpush.msk.msra.mxu0 %vm200_vm0, %v73_v5 }
 0x115   :  { %8362 = vst [vmem:[#allocation12_spill] sm:$0xff] %v6120_v23 }
 0x117   :  { %4838 = vmatmul.msk.f32.gmra.mxu2 %vm124_vm1, %v490_v7  ;;  %4883 = vmatmul.msk.f32.gmra.mxu0 %vm124_vm1, %v923_v47 }
 0x118   :  { %4863 = vmatmul.msk.f32.gmra.mxu3 %vm124_vm1, %v490_v7  ;;  %4910 = vmatmul.msk.f32.gmra.mxu1 %vm124_vm1, %v6131_v50 }
 0x11a   :  { %v610_v28 = vpop.f32.mrf.mxu2 }
 0x11b   :  { %v827_v39 = vpop.f32.mrf.mxu3  ;;  %v669_v0 = vadd.f32 %v610_v28, %v416_v48  ;;  %v419_v28 = vadd.f32 %v5933_v21, %v5925_v16  ;;  %v1567_v16 = vld [vmem:[%s8358_s26 + $0x1d] sm:$0xff]  ;;  %v6203_v21 = vld [vmem:[%s8358_s26 + $0xb4] sm:$0xff] }
 0x11c   :  { %v6140_v42 = vadd.f32 %v827_v39, %v668_v17  ;;  %v6142_v34 = vpop.f32.mrf.mxu0  ;;  %v925_v39 = vld [vmem:[%s8358_s26 + $0xa3] sm:$0xff] }
 0x11d   :  { %8363 = vst [vmem:[#allocation13_spill] sm:$0xff] %v6142_v34 }
 0x11f   :  { %4884 = vmatmul.msk.f32.gmra.mxu0 %vm124_vm1, %v924_v49  ;;  %4918 = vmatmul.msk.f32.vlgmr.msra.gmra.mxu2 %vm124_vm1, %v5740_v4  ;;  %v1566_v4 = vld [vmem:[%s8358_s26 + $0x15] sm:$0xff] }
 0x120   :  { %4864 = vmatmul.msk.f32.gmra.mxu3 %vm124_vm1, %v710_v55  ;;  %4911 = vmatmul.msk.f32.gmra.mxu1 %vm124_vm1, %v6153_v58 }
 0x122   :  { %v613_v7 = vpop.f32.mrf.mxu2 }
 0x123   :  { %v830_v47 = vpop.f32.mrf.mxu3  ;;  %v670_v49 = vadd.f32 %v613_v7, %v419_v28  ;;  %v422_v7 = vadd.f32 %v5955_v37, %v5947_v32  ;;  %v6226_v32 = vld [vmem:[%s8358_s26 + $0xbc] sm:$0xff]  ;;  %v425_v37 = vadd.f32 %v5984_v56, %v5971_v52  ;;  %v6249_v52 = vld [vmem:[%s8358_s26 + $0xc4] sm:$0xff]  ;;  %v428_v56 = vadd.f32 %v6012_v20, %v5995_v9  ;;  %v6272_v9 = vld [vmem:[%s8358_s26 + $0xcc] sm:$0xff] }
 0x124   :  { %v6163_v1 = vadd.f32 %v830_v47, %v669_v0  ;;  %v6165_v17 = vpop.f32.mrf.mxu0  ;;  %v926_v47 = vld [vmem:[%s8358_s26 + $0xab] sm:$0xff]  ;;  %v431_v20 = vadd.f32 %v6039_v53, %v6019_v41  ;;  %v434_v41 = vadd.f32 %v6067_v33, %v6043_v61  ;;  %v437_v61 = vadd.f32 %v5747_v6, %v6071_v15 }
 0x125   :  { %8364 = vst [vmem:[#allocation14_spill] sm:$0xff] %v6165_v17 }
 0x127   :  { %4885 = vmatmul.msk.f32.gmra.mxu0 %vm124_vm1, %v925_v39  ;;  %4919 = vmatmul.msk.f32.gmra.mxu2 %vm124_vm1, %v5762_v11 }
 0x128   :  { %4944 = vmatmul.msk.f32.vlgmr.msra.gmra.mxu3 %vm124_vm1, %v1566_v4  ;;  %4912 = vmatmul.msk.f32.gmra.mxu1 %vm124_vm1, %v6176_v63 }
 0x12a   :  { %v616_v55 = vpop.f32.mrf.mxu2 }
 0x12b   :  { %v833_v48 = vpop.f32.mrf.mxu3  ;;  %v671_v39 = vadd.f32 %v616_v55, %v422_v7 }
 0x12c   :  { %v6190_v0 = vadd.f32 %v833_v48, %v670_v49  ;;  %v6192_v11 = vpop.f32.mrf.mxu0  ;;  %v927_v48 = vld [vmem:[%s8358_s26 + $0xb3] sm:$0xff] }
 0x12f   :  { %4886 = vmatmul.msk.f32.gmra.mxu0 %vm124_vm1, %v926_v47  ;;  %4920 = vmatmul.msk.f32.gmra.mxu2 %vm124_vm1, %v5784_v19  ;;  %v1568_v19 = vld [vmem:[%s8358_s26 + $0x25] sm:$0xff] }
 0x130   :  { %4945 = vmatmul.msk.f32.gmra.mxu3 %vm124_vm1, %v1567_v16  ;;  %4913 = vmatmul.msk.f32.gmra.mxu1 %vm124_vm1, %v6203_v21 }
 0x132   :  { %v619_v4 = vpop.f32.mrf.mxu2 }
 0x133   :  { %v836_v5 = vpop.f32.mrf.mxu3  ;;  %v672_v55 = vadd.f32 %v619_v4, %v425_v37 }
 0x134   :  { %v6213_v28 = vadd.f32 %v836_v5, %v671_v39  ;;  %v6215_v49 = vpop.f32.mrf.mxu0  ;;  %v928_v5 = vld [vmem:[%s8358_s26 + $0xbb] sm:$0xff] }
 0x137   :  { %4887 = vmatmul.msk.f32.gmra.mxu0 %vm124_vm1, %v927_v48  ;;  %4921 = vmatmul.msk.f32.gmra.mxu2 %vm124_vm1, %v5806_v27  ;;  %v1569_v27 = vld [vmem:[%s8358_s26 + $0x2d] sm:$0xff] }
 0x138   :  { %4946 = vmatmul.msk.f32.gmra.mxu3 %vm124_vm1, %v1568_v19  ;;  %4914 = vmatmul.msk.f32.gmra.mxu1 %vm124_vm1, %v6226_v32 }
 0x13a   :  { %v622_v47 = vpop.f32.mrf.mxu2 }
 0x13b   :  { %v839_v16 = vpop.f32.mrf.mxu3  ;;  %v673_v4 = vadd.f32 %v622_v47, %v428_v56 }
 0x13c   :  { %v6236_v7 = vadd.f32 %v839_v16, %v672_v55  ;;  %v6238_v39 = vpop.f32.mrf.mxu0  ;;  %v929_v16 = vld [vmem:[%s8358_s26 + $0xc3] sm:$0xff] }
 0x13f   :  { %4888 = vmatmul.msk.f32.gmra.mxu0 %vm124_vm1, %v928_v5  ;;  %4922 = vmatmul.msk.f32.gmra.mxu2 %vm124_vm1, %v5828_v35  ;;  %v1570_v35 = vld [vmem:[%s8358_s26 + $0x35] sm:$0xff] }
 0x140   :  { %4947 = vmatmul.msk.f32.gmra.mxu3 %vm124_vm1, %v1569_v27  ;;  %4915 = vmatmul.msk.f32.gmra.mxu1 %vm124_vm1, %v6249_v52 }
 0x142   :  { %v625_v48 = vpop.f32.mrf.mxu2 }
 0x143   :  { %v842_v19 = vpop.f32.mrf.mxu3  ;;  %v674_v47 = vadd.f32 %v625_v48, %v431_v20 }
 0x144   :  { %v6259_v37 = vadd.f32 %v842_v19, %v673_v4  ;;  %v6261_v55 = vpop.f32.mrf.mxu0  ;;  %v930_v19 = vld [vmem:[%s8358_s26 + $0xcb] sm:$0xff] }
 0x147   :  { %4889 = vmatmul.msk.f32.gmra.mxu0 %vm124_vm1, %v929_v16  ;;  %4923 = vmatmul.msk.f32.gmra.mxu2 %vm124_vm1, %v5850_v43  ;;  %v1571_v43 = vld [vmem:[%s8358_s26 + $0x3d] sm:$0xff] }
 0x148   :  { %4948 = vmatmul.msk.f32.gmra.mxu3 %vm124_vm1, %v1570_v35  ;;  %4916 = vmatmul.msk.f32.gmra.mxu1 %vm124_vm1, %v6272_v9 }
 0x14a   :  { %v628_v5 = vpop.f32.mrf.mxu2 }
 0x14b   :  { %v845_v27 = vpop.f32.mrf.mxu3  ;;  %v675_v53 = vadd.f32 %v628_v5, %v434_v41 }
 0x14c   :  { %v6282_v56 = vadd.f32 %v845_v27, %v674_v47  ;;  %v6284_v4 = vpop.f32.mrf.mxu0  ;;  %v1786_v47 = vld [vmem:[%s8358_s26 + $0x16] sm:$0xff] }
 0x14f   :  { %4890 = vmatmul.msk.f32.gmra.mxu0 %vm124_vm1, %v930_v19  ;;  %4924 = vmatmul.msk.f32.gmra.mxu2 %vm124_vm1, %v5872_v51  ;;  %v1572_v51 = vld [vmem:[%s8358_s26 + $0x45] sm:$0xff] }
 0x150   :  { %4949 = vmatmul.msk.f32.gmra.mxu3 %vm124_vm1, %v1571_v43 }
 0x152   :  { %v631_v48 = vpop.f32.mrf.mxu2 }
 0x153   :  { %v848_v16 = vpop.f32.mrf.mxu3  ;;  %v676_v33 = vadd.f32 %v631_v48, %v437_v61 }
 0x154   :  { %v6298_v35 = vadd.f32 %v848_v16, %v675_v53  ;;  %v6300_v20 = vpop.f32.mrf.mxu0  ;;  %v1573_v53 = vld [vmem:[%s8358_s26 + $0x4d] sm:$0xff] }
 0x157   :  { %4925 = vmatmul.msk.f32.gmra.mxu2 %vm124_vm1, %v5894_v59  ;;  %4970 = vmatmul.msk.f32.vlgmr.msra.gmra.mxu0 %vm124_vm1, %v1786_v47  ;;  %v1787_v59 = vld [vmem:[%s8358_s26 + $0x1e] sm:$0xff]  ;;  %v1788_v47 = vld [vmem:[%s8358_s26 + $0x26] sm:$0xff] }
 0x158   :  { %4950 = vmatmul.msk.f32.gmra.mxu3 %vm124_vm1, %v1572_v51 }
 0x15a   :  { %v634_v5 = vpop.f32.mrf.mxu2 }
 0x15b   :  { %v677_v27 = vadd.f32 %v634_v5, %v5769_v14  ;;  %v851_v19 = vpop.f32.mrf.mxu3 }
 0x15c   :  { %v6315_v43 = vadd.f32 %v851_v19, %v676_v33  ;;  %v6317_v41 = vpop.f32.mrf.mxu0 }
 0x15f   :  { %4926 = vmatmul.msk.f32.gmra.mxu2 %vm124_vm1, %v5916_v8  ;;  %4971 = vmatmul.msk.f32.gmra.mxu0 %vm124_vm1, %v1787_v59  ;;  %v1574_v8 = vld [vmem:[%s8358_s26 + $0x55] sm:$0xff] }
 0x160   :  { %4951 = vmatmul.msk.f32.gmra.mxu3 %vm124_vm1, %v1573_v53 }
 0x162   :  { %v637_v6 = vpop.f32.mrf.mxu2 }
 0x163   :  { %v678_v14 = vadd.f32 %v637_v6, %v5791_v22  ;;  %v854_v15 = vpop.f32.mrf.mxu3 }
 0x164   :  { %v6330_v48 = vadd.f32 %v854_v15, %v677_v27  ;;  %v6332_v16 = vpop.f32.mrf.mxu0  ;;  %v1789_v27 = vld [vmem:[%s8358_s26 + $0x2e] sm:$0xff] }
 0x166   :  { %8365 = vst [vmem:[#allocation15_spill] sm:$0xff] %v6330_v48  ;;  %v1586_v48 = vld [vmem:[%s8358_s26 + $0xb5] sm:$0xff] }
 0x167   :  { %4927 = vmatmul.msk.f32.gmra.mxu2 %vm124_vm1, %v5938_v24  ;;  %4972 = vmatmul.msk.f32.gmra.mxu0 %vm124_vm1, %v1788_v47  ;;  %v1575_v24 = vld [vmem:[%s8358_s26 + $0x5d] sm:$0xff] }
 0x168   :  { %4952 = vmatmul.msk.f32.gmra.mxu3 %vm124_vm1, %v1574_v8 }
 0x16a   :  { %v640_v22 = vpop.f32.mrf.mxu2 }
 0x16b   :  { %v679_v51 = vadd.f32 %v640_v22, %v5813_v30  ;;  %v857_v61 = vpop.f32.mrf.mxu3 }
 0x16c   :  { %v6345_v33 = vadd.f32 %v857_v61, %v678_v14  ;;  %v6347_v5 = vpop.f32.mrf.mxu0  ;;  %v1790_v14 = vld [vmem:[%s8358_s26 + $0x36] sm:$0xff] }
 0x16d   :  { %v1113_v60 = vadd.f32 %v6347_v5, %v6259_v37  ;;  %v1110_v37 = vadd.f32 %v6300_v20, %v6190_v0 }
 0x16e   :  { %8366 = vst [vmem:[#allocation16_spill] sm:$0xff] %v6345_v33  ;;  %v1587_v33 = vld [vmem:[%s8358_s26 + $0xbd] sm:$0xff] }
 0x16f   :  { %4928 = vmatmul.msk.f32.gmra.mxu2 %vm124_vm1, %v5960_v40  ;;  %4973 = vmatmul.msk.f32.gmra.mxu0 %vm124_vm1, %v1789_v27  ;;  %v1576_v40 = vld [vmem:[%s8358_s26 + $0x65] sm:$0xff] }
 0x170   :  { %4953 = vmatmul.msk.f32.gmra.mxu3 %vm124_vm1, %v1575_v24 }
 0x172   :  { %v643_v30 = vpop.f32.mrf.mxu2 }
 0x173   :  { %v680_v19 = vadd.f32 %v643_v30, %v5835_v38  ;;  %v860_v59 = vpop.f32.mrf.mxu3 }
 0x174   :  { %v6360_v53 = vadd.f32 %v860_v59, %v679_v51  ;;  %v6362_v6 = vpop.f32.mrf.mxu0  ;;  %v1791_v51 = vld [vmem:[%s8358_s26 + $0x3e] sm:$0xff] }
 0x176   :  { %8367 = vst [vmem:[#allocation17_spill] sm:$0xff] %v6360_v53  ;;  %v1802_v53 = vld [vmem:[%s8358_s26 + $0x96] sm:$0xff] }
 0x177   :  { %4929 = vmatmul.msk.f32.gmra.mxu2 %vm124_vm1, %v5982_v3  ;;  %4974 = vmatmul.msk.f32.gmra.mxu0 %vm124_vm1, %v1790_v14  ;;  %v1577_v3 = vld [vmem:[%s8358_s26 + $0x6d] sm:$0xff] }
 0x178   :  { %4954 = vmatmul.msk.f32.gmra.mxu3 %vm124_vm1, %v1576_v40 }
 0x17a   :  { %v646_v38 = vpop.f32.mrf.mxu2 }
 0x17b   :  { %v681_v15 = vadd.f32 %v646_v38, %v5857_v46  ;;  %v863_v47 = vpop.f32.mrf.mxu3 }
 0x17c   :  { %v6375_v8 = vadd.f32 %v863_v47, %v680_v19  ;;  %v6377_v22 = vpop.f32.mrf.mxu0  ;;  %v1792_v19 = vld [vmem:[%s8358_s26 + $0x46] sm:$0xff] }
 0x17e   :  { %8368 = vst [vmem:[#allocation18_spill] sm:$0xff] %v6375_v8 }
 0x17f   :  { %4930 = vmatmul.msk.f32.gmra.mxu2 %vm124_vm1, %v6006_v10  ;;  %4975 = vmatmul.msk.f32.gmra.mxu0 %vm124_vm1, %v1791_v51  ;;  %v1578_v10 = vld [vmem:[%s8358_s26 + $0x75] sm:$0xff] }
 0x180   :  { %4955 = vmatmul.msk.f32.gmra.mxu3 %vm124_vm1, %v1577_v3 }
 0x182   :  { %v649_v46 = vpop.f32.mrf.mxu2 }
 0x183   :  { %v682_v61 = vadd.f32 %v649_v46, %v5879_v54  ;;  %v866_v27 = vpop.f32.mrf.mxu3 }
 0x184   :  { %v6390_v24 = vadd.f32 %v866_v27, %v681_v15  ;;  %v6392_v30 = vpop.f32.mrf.mxu0  ;;  %v1793_v15 = vld [vmem:[%s8358_s26 + $0x4e] sm:$0xff] }
 0x186   :  { %8369 = vst [vmem:[#allocation19_spill] sm:$0xff] %v6390_v24 }
 0x187   :  { %4931 = vmatmul.msk.f32.gmra.mxu2 %vm124_vm1, %v6030_v18  ;;  %4976 = vmatmul.msk.f32.gmra.mxu0 %vm124_vm1, %v1792_v19  ;;  %v1579_v18 = vld [vmem:[%s8358_s26 + $0x7d] sm:$0xff] }
 0x188   :  { %4956 = vmatmul.msk.f32.gmra.mxu3 %vm124_vm1, %v1578_v10 }
 0x18a   :  { %v652_v54 = vpop.f32.mrf.mxu2 }
 0x18b   :  { %v683_v59 = vadd.f32 %v652_v54, %v5901_v62  ;;  %v869_v14 = vpop.f32.mrf.mxu3 }
 0x18c   :  { %v6405_v40 = vadd.f32 %v869_v14, %v682_v61  ;;  %v6407_v38 = vpop.f32.mrf.mxu0  ;;  %v1794_v61 = vld [vmem:[%s8358_s26 + $0x56] sm:$0xff] }
 0x18d   :  { %8371 = vst [vmem:[#allocation21_spill] sm:$0xff] %v6407_v38  ;;  %v1800_v38 = vld [vmem:[%s8358_s26 + $0x86] sm:$0xff] }
 0x18e   :  { %8370 = vst [vmem:[#allocation20_spill] sm:$0xff] %v6405_v40  ;;  %v1804_v40 = vld [vmem:[%s8358_s26 + $0xa6] sm:$0xff] }
 0x18f   :  { %4932 = vmatmul.msk.f32.gmra.mxu2 %vm124_vm1, %v6054_v26  ;;  %4977 = vmatmul.msk.f32.gmra.mxu0 %vm124_vm1, %v1793_v15  ;;  %v1580_v26 = vld [vmem:[%s8358_s26 + $0x85] sm:$0xff] }
 0x190   :  { %4957 = vmatmul.msk.f32.gmra.mxu3 %vm124_vm1, %v1579_v18 }
 0x192   :  { %v655_v62 = vpop.f32.mrf.mxu2 }
 0x193   :  { %v684_v47 = vadd.f32 %v655_v62, %v5923_v13  ;;  %v872_v51 = vpop.f32.mrf.mxu3 }
 0x194   :  { %v6420_v3 = vadd.f32 %v872_v51, %v683_v59  ;;  %v6422_v46 = vpop.f32.mrf.mxu0  ;;  %v1795_v59 = vld [vmem:[%s8358_s26 + $0x5e] sm:$0xff]  ;;  %v6460_v51 = vpop.f32.mrf.mxu1 }
 0x195   :  { %8373 = vst [vmem:[#allocation23_spill] sm:$0xff] %v6422_v46 }
 0x196   :  { %8372 = vst [vmem:[#allocation22_spill] sm:$0xff] %v6420_v3 }
 0x197   :  { %4933 = vmatmul.msk.f32.gmra.mxu2 %vm124_vm1, %v6082_v45  ;;  %4978 = vmatmul.msk.f32.gmra.mxu0 %vm124_vm1, %v1794_v61  ;;  %v1581_v45 = vld [vmem:[%s8358_s26 + $0x8d] sm:$0xff]  ;;  %8378 = vst [vmem:[#allocation28_spill] sm:$0xff] %v6460_v51 }
 0x198   :  { %4958 = vmatmul.msk.f32.gmra.mxu3 %vm124_vm1, %v1580_v26 }
 0x19a   :  { %v658_v13 = vpop.f32.mrf.mxu2 }
 0x19b   :  { %v685_v27 = vadd.f32 %v658_v13, %v5945_v29  ;;  %v875_v19 = vpop.f32.mrf.mxu3 }
 0x19c   :  { %v6435_v10 = vadd.f32 %v875_v19, %v684_v47  ;;  %v6437_v54 = vpop.f32.mrf.mxu0  ;;  %v1796_v47 = vld [vmem:[%s8358_s26 + $0x66] sm:$0xff]  ;;  %v1583_v19 = vld [vmem:[%s8358_s26 + $0x9d] sm:$0xff] }
 0x19d   :  { %8375 = vst [vmem:[#allocation25_spill] sm:$0xff] %v6437_v54 }
 0x19e   :  { %8374 = vst [vmem:[#allocation24_spill] sm:$0xff] %v6435_v10 }
 0x19f   :  { %4934 = vmatmul.msk.f32.gmra.mxu2 %vm124_vm1, %v6107_v25  ;;  %4979 = vmatmul.msk.f32.gmra.mxu0 %vm124_vm1, %v1795_v59  ;;  %v1582_v25 = vld [vmem:[%s8358_s26 + $0x95] sm:$0xff] }
 0x1a0   :  { %4959 = vmatmul.msk.f32.gmra.mxu3 %vm124_vm1, %v1581_v45 }
 0x1a2   :  { %v1466_v29 = vpop.f32.mrf.mxu2 }
 0x1a3   :  { %v878_v14 = vpop.f32.mrf.mxu3  ;;  %v1541_v15 = vadd.f32 %v1466_v29, %v6109_v31 }
 0x1a4   :  { %v6450_v18 = vadd.f32 %v878_v14, %v685_v27  ;;  %v6452_v62 = vpop.f32.mrf.mxu0  ;;  %v1797_v27 = vld [vmem:[%s8358_s26 + $0x6e] sm:$0xff]  ;;  %v1798_v14 = vld [vmem:[%s8358_s26 + $0x76] sm:$0xff] }
 0x1a5   :  { %8377 = vst [vmem:[#allocation27_spill] sm:$0xff] %v6452_v62  ;;  %v1588_v62 = vld [vmem:[%s8358_s26 + $0xc5] sm:$0xff] }
 0x1a6   :  { %8376 = vst [vmem:[#allocation26_spill] sm:$0xff] %v6450_v18 }
 0x1a7   :  { %4935 = vmatmul.msk.f32.gmra.mxu2 %vm124_vm1, %v6131_v50  ;;  %4980 = vmatmul.msk.f32.gmra.mxu0 %vm124_vm1, %v1796_v47  ;;  %v6481_v50 = vpop.f32.mrf.mxu1 }
 0x1a8   :  { %4960 = vmatmul.msk.f32.gmra.mxu3 %vm124_vm1, %v1582_v25  ;;  %8382 = vst [vmem:[#allocation32_spill] sm:$0xff] %v6481_v50 }
 0x1aa   :  { %v6466_v31 = vpop.f32.mrf.mxu2 }
 0x1ab   :  { %8379 = vst [vmem:[#allocation29_spill] sm:$0xff] %v6466_v31  ;;  %v1686_v61 = vpop.f32.mrf.mxu3 }
 0x1ac   :  { %v6468_v26 = vadd.f32 %v1686_v61, %v1541_v15  ;;  %v6470_v13 = vpop.f32.mrf.mxu0 }
 0x1ad   :  { %8381 = vst [vmem:[#allocation31_spill] sm:$0xff] %v6470_v13  ;;  %v1370_v13 = vld [vmem:[%s8358_s26 + $0xd4] sm:$0xff] }
 0x1ae   :  { %8380 = vst [vmem:[#allocation30_spill] sm:$0xff] %v6468_v26 }
 0x1af   :  { %4936 = vmatmul.msk.f32.gmra.mxu2 %vm124_vm1, %v6153_v58  ;;  %4981 = vmatmul.msk.f32.gmra.mxu0 %vm124_vm1, %v1797_v27  ;;  %v1584_v58 = vld [vmem:[%s8358_s26 + $0xa5] sm:$0xff]  ;;  %v6500_v15 = vpop.f32.mrf.mxu1 }
 0x1b0   :  { %4961 = vmatmul.msk.f32.gmra.mxu3 %vm124_vm1, %v1583_v19  ;;  %8386 = vst [vmem:[#allocation36_spill] sm:$0xff] %v6500_v15  ;;  %v1799_v27 = vld [vmem:[%s8358_s26 + $0x7e] sm:$0xff] }
 0x1b2   :  { %v6484_v59 = vpop.f32.mrf.mxu2 }
 0x1b3   :  { %8383 = vst [vmem:[#allocation33_spill] sm:$0xff] %v6484_v59  ;;  %v6486_v45 = vpop.f32.mrf.mxu3 }
 0x1b4   :  { %8384 = vst [vmem:[#allocation34_spill] sm:$0xff] %v6486_v45  ;;  %v6488_v29 = vpop.f32.mrf.mxu0 }
 0x1b5   :  { %8385 = vst [vmem:[#allocation35_spill] sm:$0xff] %v6488_v29 }
 0x1b7   :  { %4937 = vmatmul.msk.f32.gmra.mxu2 %vm124_vm1, %v6176_v63  ;;  %4982 = vmatmul.msk.f32.gmra.mxu0 %vm124_vm1, %v1798_v14  ;;  %v1585_v63 = vld [vmem:[%s8358_s26 + $0xad] sm:$0xff]  ;;  %v6520_v14 = vpop.f32.mrf.mxu1 }
 0x1b8   :  { %4962 = vmatmul.msk.f32.gmra.mxu3 %vm124_vm1, %v1584_v58  ;;  %8391 = vst [vmem:[#allocation41_spill] sm:$0xff] %v6520_v14 }
 0x1ba   :  { %v6504_v25 = vpop.f32.mrf.mxu2 }
 0x1bb   :  { %v6502_v47 = vpop.f32.mrf.mxu3  ;;  %8388 = vst [vmem:[#allocation38_spill] sm:$0xff] %v6504_v25 }
 0x1bc   :  { %8387 = vst [vmem:[#allocation37_spill] sm:$0xff] %v6502_v47  ;;  %v6506_v61 = vpop.f32.mrf.mxu0 }
 0x1bd   :  { %8389 = vst [vmem:[#allocation39_spill] sm:$0xff] %v6506_v61 }
 0x1bf   :  { %4938 = vmatmul.msk.f32.gmra.mxu2 %vm124_vm1, %v6203_v21  ;;  %4983 = vmatmul.msk.f32.gmra.mxu0 %vm124_vm1, %v1799_v27  ;;  %v6546_v54 = vpop.f32.mrf.mxu1 }
 0x1c0   :  { %4963 = vmatmul.msk.f32.gmra.mxu3 %vm124_vm1, %v1585_v63  ;;  %v1801_v63 = vld [vmem:[%s8358_s26 + $0x8e] sm:$0xff]  ;;  %8396 = vst [vmem:[#allocation46_spill] sm:$0xff] %v6546_v54  ;;  %v1116_v54 = vadd.f32 %v6392_v30, %v6315_v43 }
 0x1c2   :  { %v6530_v46 = vpop.f32.mrf.mxu2 }
 0x1c3   :  { %v6518_v19 = vpop.f32.mrf.mxu3  ;;  %8393 = vst [vmem:[#allocation43_spill] sm:$0xff] %v6530_v46 }
 0x1c4   :  { %8390 = vst [vmem:[#allocation40_spill] sm:$0xff] %v6518_v19  ;;  %v6522_v58 = vpop.f32.mrf.mxu0 }
 0x1c5   :  { %8392 = vst [vmem:[#allocation42_spill] sm:$0xff] %v6522_v58 }
 0x1c7   :  { %4939 = vmatmul.msk.f32.gmra.mxu2 %vm124_vm1, %v6226_v32  ;;  %4984 = vmatmul.msk.f32.gmra.mxu0 %vm124_vm1, %v1800_v38 }
 0x1c8   :  { %4964 = vmatmul.msk.f32.gmra.mxu3 %vm124_vm1, %v1586_v48 }
 0x1ca   :  { %v6551_v32 = vpop.f32.mrf.mxu2 }
 0x1cb   :  { %v6536_v21 = vpop.f32.mrf.mxu3  ;;  %8397 = vst [vmem:[#allocation47_spill] sm:$0xff] %v6551_v32 }
 0x1cc   :  { %8394 = vst [vmem:[#allocation44_spill] sm:$0xff] %v6536_v21  ;;  %v6538_v27 = vpop.f32.mrf.mxu0 }
 0x1cd   :  { %8395 = vst [vmem:[#allocation45_spill] sm:$0xff] %v6538_v27  ;;  %v1590_v27 = vld [vmem:[%s8358_s26 + $0xd5] sm:$0xff] }
 0x1cf   :  { %4940 = vmatmul.msk.f32.gmra.mxu2 %vm124_vm1, %v6249_v52  ;;  %4985 = vmatmul.msk.f32.gmra.mxu0 %vm124_vm1, %v1801_v63  ;;  %v6567_v52 = vpop.f32.mrf.mxu1 }
 0x1d0   :  { %4965 = vmatmul.msk.f32.gmra.mxu3 %vm124_vm1, %v1587_v33 }
 0x1d2   :  { %v6570_v33 = vpop.f32.mrf.mxu2 }
 0x1d3   :  { %v6554_v48 = vpop.f32.mrf.mxu3  ;;  %8400 = vst [vmem:[#allocation50_spill] sm:$0xff] %v6570_v33  ;;  %v1114_v33 = vadd.f32 %v6362_v6, %v6282_v56 }
 0x1d4   :  { %8398 = vst [vmem:[#allocation48_spill] sm:$0xff] %v6554_v48  ;;  %v6556_v38 = vpop.f32.mrf.mxu0 }
 0x1d5   :  { %8399 = vst [vmem:[#allocation49_spill] sm:$0xff] %v6556_v38 }
 0x1d7   :  { %4941 = vmatmul.msk.f32.gmra.mxu2 %vm124_vm1, %v6272_v9  ;;  %4986 = vmatmul.msk.f32.gmra.mxu0 %vm124_vm1, %v1802_v53  ;;  %v1803_v9 = vld [vmem:[%s8358_s26 + $0x9e] sm:$0xff]  ;;  %v1589_v53 = vld [vmem:[%s8358_s26 + $0xcd] sm:$0xff] }
 0x1d8   :  { %4966 = vmatmul.msk.f32.gmra.mxu3 %vm124_vm1, %v1588_v62  ;;  %v6588_v62 = vpop.f32.mrf.mxu1 }
 0x1da   :  { %v6590_v24 = vpop.f32.mrf.mxu2 }
 0x1db   :  { %v6572_v63 = vpop.f32.mrf.mxu3  ;;  %8403 = vst [vmem:[#allocation53_spill] sm:$0xff] %v6590_v24 }
 0x1dc   :  { %8401 = vst [vmem:[#allocation51_spill] sm:$0xff] %v6572_v63  ;;  %v6574_v8 = vpop.f32.mrf.mxu0 }
 0x1dd   :  { %8402 = vst [vmem:[#allocation52_spill] sm:$0xff] %v6574_v8 }
 0x1df   :  { %4942 = vmatmul.msk.f32.gmra.mxu2 %vm124_vm1, %v1370_v13  ;;  %4987 = vmatmul.msk.f32.gmra.mxu0 %vm124_vm1, %v1803_v9 }
 0x1e0   :  { %4967 = vmatmul.msk.f32.gmra.mxu3 %vm124_vm1, %v1589_v53  ;;  %v6604_v13 = vpop.f32.mrf.mxu1  ;;  %v1805_v53 = vld [vmem:[%s8358_s26 + $0xae] sm:$0xff] }
 0x1e2   :  { %v6611_v61 = vpop.f32.mrf.mxu2 }
 0x1e3   :  { %v6600_v18 = vpop.f32.mrf.mxu3 }
 0x1e4   :  { %v6592_v29 = vpop.f32.mrf.mxu0  ;;  %8405 = vst [vmem:[#allocation55_spill] sm:$0xff] %v6600_v18  ;;  %v1115_v18 = vadd.f32 %v6377_v22, %v6298_v35  ;;  %v1111_v35 = vadd.f32 %v6317_v41, %v6213_v28 }
 0x1e5   :  { %8404 = vst [vmem:[#allocation54_spill] sm:$0xff] %v6592_v29 }
 0x1e7   :  { %4988 = vmatmul.msk.f32.gmra.mxu0 %vm124_vm1, %v1804_v40  ;;  %v1806_v40 = vld [vmem:[%s8358_s26 + $0xb6] sm:$0xff] }
 0x1e8   :  { %4968 = vmatmul.msk.f32.gmra.mxu3 %vm124_vm1, %v1590_v27  ;;  %v6621_v27 = vpop.f32.mrf.mxu1 }
 0x1ea   :  { %v6624_v10 = vpop.f32.mrf.mxu2 }
 0x1eb   :  { %v6614_v3 = vpop.f32.mrf.mxu3 }
 0x1ec   :  { %v6606_v9 = vpop.f32.mrf.mxu0  ;;  %8407 = vst [vmem:[#allocation57_spill] sm:$0xff] %v6614_v3 }
 0x1ed   :  { %8406 = vst [vmem:[#allocation56_spill] sm:$0xff] %v6606_v9 }
 0x1ef   :  { %4989 = vmatmul.msk.f32.gmra.mxu0 %vm124_vm1, %v1805_v53  ;;  %v1807_v53 = vld [vmem:[%s8358_s26 + $0xbe] sm:$0xff] }
 0x1f0   :  { %v1276_v8 = vpop.f32.mrf.mxu1 }
 0x1f1   :  { %v1331_v28 = vadd.f32 %v1276_v8, %v1111_v35 }
 0x1f2   :  { %v6634_v29 = vpop.f32.mrf.mxu2 }
 0x1f3   :  { %v6626_v38 = vpop.f32.mrf.mxu3 }
 0x1f4   :  { %v6616_v58 = vpop.f32.mrf.mxu0 }
 0x1f5   :  { %8408 = vst [vmem:[#allocation58_spill] sm:$0xff] %v6616_v58 }
 0x1f7   :  { %4990 = vmatmul.msk.f32.gmra.mxu0 %vm124_vm1, %v1806_v40  ;;  %v1808_v40 = vld [vmem:[%s8358_s26 + $0xc6] sm:$0xff] }
 0x1f8   :  { %v1279_v47 = vpop.f32.mrf.mxu1 }
 0x1fa   :  { %v1499_v31 = vpop.f32.mrf.mxu2 }
 0x1fb   :  { %v6636_v45 = vpop.f32.mrf.mxu3 }
 0x1fc   :  { %v6628_v26 = vpop.f32.mrf.mxu0 }
 0x1fd   :  { %8409 = vst [vmem:[#allocation59_spill] sm:$0xff] %v6628_v26  ;;  %v1810_v26 = vld [vmem:[%s8358_s26 + $0xd6] sm:$0xff] }
 0x1ff   :  { %4991 = vmatmul.msk.f32.gmra.mxu0 %vm124_vm1, %v1807_v53  ;;  %v1809_v53 = vld [vmem:[%s8358_s26 + $0xce] sm:$0xff] }
 0x200   :  { %v1282_v59 = vpop.f32.mrf.mxu1 }
 0x201   :  { %v1333_v6 = vadd.f32 %v1282_v59, %v1113_v60  ;;  %v6691_v60 = vld [vmem:[%s8417_s1] sm:$0xf] }
 0x202   :  { %v1502_v21 = vpop.f32.mrf.mxu2  ;;  %2061 = vst [vmem:[#allocation1] ss:$4 sm:$0xff] %v6691_v60 }
 0x203   :  { %v1719_v19 = vpop.f32.mrf.mxu3 }
 0x204   :  { %v6638_v9 = vpop.f32.mrf.mxu0 }
 0x205   :  { %8410 = vst [vmem:[#allocation60_spill] sm:$0xff] %v6638_v9 }
 0x207   :  { %4992 = vmatmul.msk.f32.gmra.mxu0 %vm124_vm1, %v1808_v40 }
 0x208   :  { %v1285_v50 = vpop.f32.mrf.mxu1 }
 0x20a   :  { %v1505_v9 = vpop.f32.mrf.mxu2 }
 0x20b   :  { %v1722_v40 = vpop.f32.mrf.mxu3 }
 0x20c   :  { %v6644_v58 = vpop.f32.mrf.mxu0 }
 0x20d   :  { %8411 = vst [vmem:[#allocation61_spill] sm:$0xff] %v6644_v58 }
 0x20f   :  { %4993 = vmatmul.msk.f32.gmra.mxu0 %vm124_vm1, %v1809_v53 }
 0x210   :  { %v1288_v15 = vpop.f32.mrf.mxu1 }
 0x212   :  { %v1508_v53 = vpop.f32.mrf.mxu2 }
 0x213   :  { %v1725_v48 = vpop.f32.mrf.mxu3 }
 0x214   :  { %v6650_v51 = vpop.f32.mrf.mxu0 }
 0x215   :  { %8412 = vst [vmem:[#allocation62_spill] sm:$0xff] %v6650_v51 }
 0x217   :  { %4994 = vmatmul.msk.f32.gmra.mxu0 %vm124_vm1, %v1810_v26 }
 0x218   :  { %v1291_v58 = vpop.f32.mrf.mxu1 }
 0x219   :  { %v1336_v3 = vadd.f32 %v1291_v58, %v1116_v54 }
 0x21a   :  { %v1511_v63 = vpop.f32.mrf.mxu2 }
 0x21b   :  { %v1728_v23 = vpop.f32.mrf.mxu3  ;;  %v1556_v22 = vadd.f32 %v1511_v63, %v1336_v3  ;;  %v8419_v63 = vld [vmem:[#allocation57_spill] sm:$0xff] }
 0x21c   :  { %v6656_v25 = vpop.f32.mrf.mxu0 }
 0x21d   :  { %8413 = vst [vmem:[#allocation63_spill] sm:$0xff] %v6656_v25  ;;  %v1335_v25 = vadd.f32 %v1288_v15, %v1115_v18  ;;  %v1109_v15 = vadd.f32 %v6284_v4, %v6163_v1  ;;  %v1108_v1 = vadd.f32 %v6261_v55, %v6140_v42  ;;  %v1551_v4 = vadd.f32 %v6634_v29, %v1331_v28  ;;  %v8430_v28 = vld [vmem:[#allocation47_spill] sm:$0xff] }
 0x21f   :  { %v1555_v24 = vadd.f32 %v1508_v53, %v1335_v25  ;;  %v1771_v42 = vadd.f32 %v6636_v45, %v1551_v4  ;;  %v1328_v58 = vadd.f32 %v6588_v62, %v1108_v1  ;;  %v1105_v45 = vadd.f32 %v6192_v11, %v6069_v44  ;;  %v8423_v44 = vld [vmem:[#allocation46_spill] sm:$0xff]  ;;  %v8433_v4 = vld [vmem:[#allocation9_spill] sm:$0xff] }
 0x220   :  { %v6660_v34 = vpop.f32.mrf.mxu1 }
 0x221   :  { %8414 = vst [vmem:[#allocation64_spill] sm:$0xff] %v6660_v34  ;;  %v1112_v34 = vadd.f32 %v6332_v16, %v6236_v7  ;;  %v1775_v30 = vadd.f32 %v1728_v23, %v1555_v24  ;;  %v1553_v7 = vadd.f32 %v1502_v21, %v1333_v6  ;;  %v6696_v23 = vld [vmem:[%s8333_s5] ss:$0 sm:$0xff] }
 0x222   :  { %v6662_v26 = vpop.f32.mrf.mxu2  ;;  %v8425_v6 = vld [vmem:[#allocation55_spill] sm:$0xff] }
 0x223   :  { %v1731_v14 = vpop.f32.mrf.mxu3  ;;  %8415 = vst [vmem:[#allocation65_spill] sm:$0xff] %v6662_v26  ;;  %v1332_v5 = vadd.f32 %v1279_v47, %v1112_v34  ;;  %v1773_v0 = vadd.f32 %v1722_v40, %v1553_v7  ;;  %v8422_v40 = vld [vmem:[#allocation14_spill] sm:$0xff] }
 0x224   :  { %v6658_v46 = vpop.f32.mrf.mxu0  ;;  %v8427_v7 = vld [vmem:[#allocation10_spill] sm:$0xff] }
 0x225   :  { %v1552_v34 = vadd.f32 %v1499_v31, %v1332_v5  ;;  %v1107_v31 = vadd.f32 %v6238_v39, %v6118_v57 }
 0x227   :  { %v1772_v8 = vadd.f32 %v1719_v19, %v1552_v34  ;;  %v8431_v34 = vld [vmem:[#allocation51_spill] sm:$0xff] }
 0x228   :  { %v6676_v26 = vpop.f32.mrf.mxu1 }
 0x22a   :  { %v6680_v56 = vpop.f32.mrf.mxu2 }
 0x22b   :  { %v6664_v51 = vpop.f32.mrf.mxu3 }
 0x22c   :  { %v1939_v2 = vpop.f32.mrf.mxu0  ;;  %8416 = vst [vmem:[#allocation66_spill] sm:$0xff] %v6664_v51  ;;  %v1334_v51 = vadd.f32 %v1285_v50, %v1114_v33  ;;  %v1776_v50 = vadd.f32 %v1731_v14, %v1556_v22  ;;  %v1106_v14 = vadd.f32 %v6215_v49, %v6095_v12  ;;  %v8418_v12 = vld [vmem:[#allocation53_spill] sm:$0xff]  ;;  %v8426_v22 = vld [vmem:[#allocation62_spill] sm:$0xff] }
 0x22d   :  { %v1992_v55 = vadd.f32 %v1939_v2, %v1772_v8  ;;  %v1548_v49 = vadd.f32 %v8418_v12, %v1328_v58  ;;  %v8434_v8 = vld [vmem:[#allocation12_spill] sm:$0xff] }
 0x22e   :  { %v1554_v43 = vadd.f32 %v1505_v9, %v1334_v51  ;;  %v1326_v11 = vadd.f32 %v8423_v44, %v1106_v14 }
 0x230   :  { %v1774_v16 = vadd.f32 %v1725_v48, %v1554_v43  ;;  %v6708_v47 = vpop.f32.mrf.mxu1  ;;  %v1327_v48 = vadd.f32 %v6567_v52, %v1107_v31  ;;  %v8424_v52 = vld [vmem:[#allocation50_spill] sm:$0xff]  ;;  %v1768_v43 = vadd.f32 %v8425_v6, %v1548_v49  ;;  %v8442_v49 = vld [vmem:[#allocation59_spill] sm:$0xff] }
 0x232   :  { %v6717_v57 = vpop.f32.mrf.mxu2  ;;  %v1547_v35 = vadd.f32 %v8424_v52, %v1327_v48  ;;  %v8441_v48 = vld [vmem:[#allocation44_spill] sm:$0xff] }
 0x233   :  { %v6684_v18 = vpop.f32.mrf.mxu3 }
 0x234   :  { %v1942_v32 = vpop.f32.mrf.mxu0 }
 0x235   :  { %v1993_v3 = vadd.f32 %v1942_v32, %v1773_v0  ;;  %v1991_v32 = vadd.f32 %v6658_v46, %v1771_v42  ;;  %v2021_v46 = vadd.f32 %v6696_v23, %v1992_v55  ;;  %v1767_v0 = vadd.f32 %v8431_v34, %v1547_v35  ;;  %v8437_v42 = vld [vmem:[#allocation48_spill] sm:$0xff] }
 0x238   :  { %v6750_v31 = vpop.f32.mrf.mxu1 }
 0x23b   :  { %v6726_v33 = vpop.f32.mrf.mxu3 }
 0x23c   :  { %v1945_v36 = vpop.f32.mrf.mxu0 }
 0x23d   :  { %v1994_v20 = vadd.f32 %v1945_v36, %v1774_v16  ;;  %v1329_v36 = vadd.f32 %v6604_v13, %v1109_v15  ;;  %v8428_v16 = vld [vmem:[#allocation13_spill] sm:$0xff] }
 0x23f   :  { %v2023_v29 = vadd.f32 %v6696_v23, %v1994_v20  ;;  %v1549_v21 = vadd.f32 %v6611_v61, %v1329_v36  ;;  %v8432_v20 = vld [vmem:[#allocation61_spill] sm:$0xff]  ;;  %v8436_v36 = vld [vmem:[#allocation43_spill] sm:$0xff] }
 0x241   :  { %v1769_v62 = vadd.f32 %v8419_v63, %v1549_v21  ;;  %v2048_v9 = vmax.f32 %v2023_v29, 0.0  ;;  %v8438_v29 = vld [vmem:[#allocation60_spill] sm:$0xff] }
 0x242   :  { %v8439_v21 = vld [vmem:[#allocation32_spill] sm:$0xff] }
 0x244   :  { %v1948_v17 = vpop.f32.mrf.mxu0 }
 0x245   :  { %v1995_v54 = vadd.f32 %v1948_v17, %v1775_v30  ;;  %v1330_v17 = vadd.f32 %v6621_v27, %v1110_v37  ;;  %v8421_v27 = vld [vmem:[#allocation11_spill] sm:$0xff]  ;;  %v1989_v30 = vadd.f32 %v8426_v22, %v1769_v62  ;;  %v2020_v37 = vadd.f32 %v6696_v23, %v1991_v32  ;;  %v8440_v32 = vld [vmem:[#allocation38_spill] sm:$0xff] }
 0x246   :  { %v1104_v53 = vadd.f32 %v8422_v40, %v8421_v27  ;;  %v6767_v40 = vpop.f32.mrf.mxu3 }
 0x247   :  { %v2024_v51 = vadd.f32 %v6696_v23, %v1995_v54  ;;  %v1550_v25 = vadd.f32 %v6624_v10, %v1330_v17  ;;  %v2022_v10 = vadd.f32 %v6696_v23, %v1993_v3  ;;  %v8429_v54 = vld [vmem:[#allocation41_spill] sm:$0xff]  ;;  %v2046_v17 = vmax.f32 %v2021_v46, 0.0 }
 0x248   :  { %v1325_v15 = vadd.f32 %v8429_v54, %v1105_v45  ;;  %v1102_v3 = vadd.f32 %v8434_v8, %v8433_v4  ;;  %v2018_v14 = vadd.f32 %v6696_v23, %v1989_v30  ;;  %v2045_v58 = vmax.f32 %v2020_v37, 0.0  ;;  %v8448_v30 = vld [vmem:[#allocation37_spill] sm:$0xff]  ;;  %v8450_v54 = vld [vmem:[#allocation34_spill] sm:$0xff] }
 0x249   :  { %v1770_v39 = vadd.f32 %v6626_v38, %v1550_v25  ;;  %v2049_v2 = vmax.f32 %v2024_v51, 0.0  ;;  %v8420_v38 = vld [vmem:[#allocation63_spill] sm:$0xff]  ;;  %v2047_v5 = vmax.f32 %v2022_v10, 0.0  ;;  %v8435_v51 = vld [vmem:[#allocation36_spill] sm:$0xff] }
 0x24a   :  { %v1545_v25 = vadd.f32 %v8436_v36, %v1325_v15  ;;  %v2043_v6 = vmax.f32 %v2018_v14, 0.0 }
 0x24b   :  { %v1990_v13 = vadd.f32 %v8420_v38, %v1770_v39 }
 0x24c   :  { %v1951_v41 = vpop.f32.mrf.mxu0  ;;  %v1765_v12 = vadd.f32 %v8441_v48, %v1545_v25  ;;  %v2062_v48 = vld.sshfl [vmem:[#allocation1] sm:$0xff pattern:$0x73625140] }
 0x24d   :  { %v1996_v24 = vadd.f32 %v1951_v41, %v1776_v50  ;;  %v1103_v50 = vadd.f32 %v8428_v16, %v8427_v7  ;;  %v1546_v41 = vadd.f32 %v8430_v28, %v1326_v11  ;;  %v2019_v1 = vadd.f32 %v6696_v23, %v1990_v13  ;;  %v8443_v13 = vld [vmem:[#allocation28_spill] sm:$0xff]  ;;  %v8446_v11 = vld [vmem:[#allocation58_spill] sm:$0xff] }
 0x24e   :  { %v1322_v46 = vadd.f32 %v8443_v13, %v1102_v3  ;;  %v1985_v52 = vadd.f32 %v8446_v11, %v1765_v12  ;;  %v8451_v28 = vld [vmem:[#allocation54_spill] sm:$0xff] }
 0x24f   :  { %v2025_v59 = vadd.f32 %v6696_v23, %v1996_v24  ;;  %v1988_v24 = vadd.f32 %v8432_v20, %v1768_v43  ;;  %v1766_v55 = vadd.f32 %v8437_v42, %v1546_v41  ;;  %v1323_v39 = vadd.f32 %v8439_v21, %v1103_v50  ;;  %v8447_v43 = vld [vmem:[#allocation29_spill] sm:$0xff]  ;;  %v6779_v20 = vpop.f32.mrf.mxu1 }
 0x250   :  { %v2044_v38 = vmax.f32 %v2019_v1, 0.0  ;;  %v1542_v22 = vadd.f32 %v8447_v43, %v1322_v46  ;;  %v2014_v34 = vadd.f32 %v6696_v23, %v1985_v52  ;;  %v8452_v1 = vld [vmem:[#allocation52_spill] sm:$0xff] }
 0x251   :  { %v2050_v19 = vmax.f32 %v2025_v59, 0.0  ;;  %v1324_v59 = vadd.f32 %v8435_v51, %v1104_v53  ;;  %v1986_v63 = vadd.f32 %v8442_v49, %v1766_v55  ;;  %v2017_v62 = vadd.f32 %v6696_v23, %v1988_v24  ;;  %v8445_v53 = vld [vmem:[#allocation40_spill] sm:$0xff]  ;;  %v8453_v51 = vld [vmem:[#allocation30_spill] sm:$0xff]  ;;  %v6790_v55 = vpop.f32.mrf.mxu3 }
 0x252   :  { %v1762_v15 = vadd.f32 %v8450_v54, %v1542_v22  ;;  %v2039_v42 = vmax.f32 %v2014_v34, 0.0  ;;  %v2141_v49 = vld [vmem:[%s8336_s8 + $0x4] sm:$0x7]  ;;  %v8457_v22 = vld [vmem:[#allocation42_spill] sm:$0xff] }
 0x253   :  { %2068 = vmatpush.msra.mxu1 %v2050_v19  ;;  %v1987_v19 = vadd.f32 %v8438_v29, %v1767_v0  ;;  %v1544_v10 = vadd.f32 %v8440_v32, %v1324_v59  ;;  %v2015_v16 = vadd.f32 %v6696_v23, %v1986_v63  ;;  %v2042_v50 = vmax.f32 %v2017_v62, 0.0  ;;  %v8454_v59 = vld [vmem:[#allocation49_spill] sm:$0xff]  ;;  %v8456_v43 = vld [vmem:[#allocation24_spill] sm:$0xff] }
 0x254   :  { %v6728_v61 = vpop.f32.mrf.mxu0  ;;  %v1981_v36 = vadd.f32 %v8454_v59, %v8453_v51  ;;  %v8462_v34 = vld [vmem:[#allocation20_spill] sm:$0xff] }
 0x255   :  { %2069 = vmatpush.msra.mxu1 %v2049_v2  ;;  %v6758_v2 = vpop.f32.mrf.mxu2  ;;  %v1764_v44 = vadd.f32 %v8445_v53, %v1544_v10  ;;  %v2016_v35 = vadd.f32 %v6696_v23, %v1987_v19  ;;  %v2040_v8 = vmax.f32 %v2015_v16, 0.0  ;;  %v2175_v53 = vld [vmem:[%s8455_s27 + $0x9] sm:$0xff]  ;;  %v8460_v16 = vld [vmem:[#allocation26_spill] sm:$0xff] }
 0x256   :  { %v2010_v14 = vadd.f32 %v6696_v23, %v1981_v36 }
 0x257   :  { %2070 = vmatpush.msra.mxu1 %v2048_v9  ;;  %v8444_v9 = vld [vmem:[#allocation33_spill] sm:$0xff]  ;;  %v2041_v0 = vmax.f32 %v2016_v35, 0.0  ;;  %v1309_v32 = vpop.f32.mrf.mxu1 }
 0x258   :  { %v1543_v27 = vadd.f32 %v8444_v9, %v1323_v39  ;;  %v2035_v10 = vmax.f32 %v2010_v14, 0.0  ;;  %v8467_v14 = vld [vmem:[#allocation27_spill] sm:$0xff] }
 0x259   :  { %2071 = vmatpush.msra.mxu1 %v2047_v5  ;;  %v8449_v5 = vld [vmem:[#allocation56_spill] sm:$0xff]  ;;  %v1749_v63 = vpop.f32.mrf.mxu3 }
 0x25a   :  { %v1763_v37 = vadd.f32 %v8448_v30, %v1543_v27  ;;  %v1984_v7 = vadd.f32 %v8449_v5, %v1764_v44  ;;  %v1124_v30 = vadd.f32 %v8457_v22, %v8456_v43  ;;  %v8459_v5 = vld [vmem:[#allocation39_spill] sm:$0xff] }
 0x25b   :  { %2072 = vmatpush.msra.mxu1 %v2046_v17  ;;  %v1982_v17 = vadd.f32 %v8452_v1, %v1762_v15  ;;  %v6818_v15 = vld.sshfl [vmem:[#allocation1 + $0x8] sm:$0xff pattern:$0x73625140] }
 0x25c   :  { %v6760_v45 = vpop.f32.mrf.mxu0  ;;  %v1983_v41 = vadd.f32 %v8451_v28, %v1763_v37  ;;  %v2013_v4 = vadd.f32 %v6696_v23, %v1984_v7  ;;  %v8458_v37 = vld [vmem:[#allocation22_spill] sm:$0xff]  ;;  %4133 = vst [vmem:[#allocation1] ss:$4 sm:$0xff] %v6691_v60 }
 0x25d   :  { %2073 = vmatpush.msra.mxu1 %v2045_v58  ;;  %v6785_v3 = vpop.f32.mrf.mxu2  ;;  %v2011_v29 = vadd.f32 %v6696_v23, %v1982_v17  ;;  %v1123_v7 = vadd.f32 %v8459_v5, %v8458_v37  ;;  %v8471_v37 = vld [vmem:[#allocation23_spill] sm:$0xff] }
 0x25e   :  { %v2012_v25 = vadd.f32 %v6696_v23, %v1983_v41  ;;  %v2038_v19 = vmax.f32 %v2013_v4, 0.0  ;;  %v8464_v4 = vld [vmem:[#allocation19_spill] sm:$0xff] }
 0x25f   :  { %2074 = vmatpush.msra.mxu1 %v2044_v38  ;;  %v2036_v39 = vmax.f32 %v2011_v29, 0.0  ;;  %v2174_v38 = vld [vmem:[%s8455_s27 + $0x1] sm:$0xff]  ;;  %v1312_v13 = vpop.f32.mrf.mxu1  ;;  %v2177_v29 = vld [vmem:[%s8455_s27 + $0x19] sm:$0xff] }
 0x260   :  { %v2037_v58 = vmax.f32 %v2012_v25, 0.0  ;;  %v1343_v36 = vadd.f32 %v1312_v13, %v1123_v7 }
 0x261   :  { %2075 = vmatpush.msra.mxu1 %v2043_v6  ;;  %v1752_v9 = vpop.f32.mrf.mxu3  ;;  %v2176_v6 = vld [vmem:[%s8455_s27 + $0x11] sm:$0xff] }
 0x263   :  { %2076 = vmatpush.msra.mxu1 %v2042_v50  ;;  %v8461_v50 = vld [vmem:[#allocation45_spill] sm:$0xff] }
 0x264   :  { %v6781_v24 = vpop.f32.mrf.mxu0  ;;  %v1125_v54 = vadd.f32 %v8461_v50, %v8460_v16 }
 0x265   :  { %2077 = vmatpush.msra.mxu1 %v2041_v0  ;;  %v1529_v12 = vpop.f32.mrf.mxu2  ;;  %v8463_v0 = vld [vmem:[#allocation35_spill] sm:$0xff] }
 0x266   :  { %v1122_v1 = vadd.f32 %v8463_v0, %v8462_v34 }
 0x267   :  { %2078 = vmatpush.msra.mxu1 %v2040_v8  ;;  %v1315_v44 = vpop.f32.mrf.mxu1  ;;  %v8465_v8 = vld [vmem:[#allocation31_spill] sm:$0xff] }
 0x268   :  { %v1344_v17 = vadd.f32 %v1315_v44, %v1124_v30  ;;  %v1121_v51 = vadd.f32 %v8465_v8, %v8464_v4  ;;  %v1342_v60 = vadd.f32 %v1309_v32, %v1122_v1  ;;  %v8470_v30 = vld [vmem:[#allocation16_spill] sm:$0xff] }
 0x269   :  { %2079 = vmatpush.msra.mxu1 %v2039_v42  ;;  %v1755_v35 = vpop.f32.mrf.mxu3  ;;  %v1118_v5 = vadd.f32 %v8471_v37, %v8470_v30  ;;  %v2153_v30 = vld [vmem:[%s8455_s27 + $0x20] sm:$0xff] }
 0x26a   :  { %v1562_v13 = vadd.f32 %v1529_v12, %v1342_v60  ;;  %v2186_v37 = vld [vmem:[%s8455_s27 + $0x61] sm:$0xff] }
 0x26b   :  { %2080 = vmatpush.msra.mxu1 %v2038_v19  ;;  %v8466_v19 = vld [vmem:[#allocation18_spill] sm:$0xff] }
 0x26c   :  { %v6794_v21 = vpop.f32.mrf.mxu0 }
 0x26d   :  { %2081 = vmatpush.msra.mxu1 %v2037_v58  ;;  %v1532_v46 = vpop.f32.mrf.mxu2  ;;  %v1120_v58 = vadd.f32 %v8467_v14, %v8466_v19  ;;  %v2179_v14 = vld [vmem:[%s8455_s27 + $0x29] sm:$0xff] }
 0x26f   :  { %2082 = vmatpush.msra.mxu1 %v2036_v39  ;;  %v1318_v28 = vpop.f32.mrf.mxu1  ;;  %v1340_v7 = vadd.f32 %v6750_v31, %v1120_v58 }
 0x270   :  { %v1345_v25 = vadd.f32 %v1318_v28, %v1125_v54  ;;  %v8472_v54 = vld [vmem:[#allocation15_spill] sm:$0xff]  ;;  %v8473_v28 = vld [vmem:[#allocation21_spill] sm:$0xff] }
 0x271   :  { %2083 = vmatpush.msra.mxu1 %v2035_v10  ;;  %v1758_v39 = vpop.f32.mrf.mxu3  ;;  %v1563_v10 = vadd.f32 %v1532_v46, %v1343_v36  ;;  %v1560_v12 = vadd.f32 %v6758_v2, %v1340_v7  ;;  %v2187_v7 = vld [vmem:[%s8455_s27 + $0x69] sm:$0xff] }
 0x272   :  { %2084 = vmatmul.f32.vlgmr.msra.gmra.mxu1 %v2062_v48 }
 0x273   :  { %4997 = vmatpush.msk.msrb.mxu1 %vm200_vm0, %v2141_v49  ;;  %v1780_v1 = vadd.f32 %v6767_v40, %v1560_v12  ;;  %v2111_v12 = vld [vmem:[%s8334_s6 + $0x18] sm:$0xff] }
 0x274   :  { %v1966_v62 = vpop.f32.mrf.mxu0  ;;  %2132 = vmatpush.msrb.mxu3 %v2111_v12  ;;  %v2145_v12 = vld [vmem:[%s8336_s8 + $0x14] sm:$0x7] }
 0x275   :  { %v1535_v11 = vpop.f32.mrf.mxu2 }
 0x276   :  { %v1564_v42 = vadd.f32 %v1535_v11, %v1344_v17  ;;  %v1783_v11 = vadd.f32 %v1752_v9, %v1563_v10 }
 0x278   :  { %v1784_v49 = vadd.f32 %v1755_v35, %v1564_v42  ;;  %v1782_v35 = vadd.f32 %v1749_v63, %v1562_v13  ;;  %v1338_v63 = vadd.f32 %v6676_v26, %v1118_v5  ;;  %v8476_v42 = vld [vmem:[#allocation66_spill] sm:$0xff]  ;;  %v2154_v5 = vld [vmem:[%s8455_s27 + $0x28] sm:$0xff] }
 0x279   :  { %v2151_v13 = vld [vmem:[%s8455_s27 + $0x10] sm:$0xff] }
 0x27a   :  { %4998 = vmatmul.msk.f32.vlgmr.msrb.gmra.mxu1 %vm124_vm1, %v2174_v38  ;;  %v8468_v38 = vld [vmem:[#allocation17_spill] sm:$0xff]  ;;  %v1558_v4 = vadd.f32 %v6680_v56, %v1338_v63  ;;  %v2160_v63 = vld [vmem:[%s8455_s27 + $0x58] sm:$0xff] }
 0x27c   :  { %v1969_v27 = vpop.f32.mrf.mxu0 }
 0x27d   :  { %v1538_v59 = vpop.f32.mrf.mxu2 }
 0x27e   :  { %v1565_v48 = vadd.f32 %v1538_v59, %v1345_v25  ;;  %v8475_v59 = vld [vmem:[#allocation65_spill] sm:$0xff] }
 0x280   :  { %v1785_v43 = vadd.f32 %v1758_v39, %v1565_v48 }
 0x282   :  { %4999 = vmatmul.msk.f32.gmra.mxu1 %vm124_vm1, %v2175_v53  ;;  %v8469_v53 = vld [vmem:[#allocation25_spill] sm:$0xff] }
 0x283   :  { %v1119_v44 = vadd.f32 %v8469_v53, %v8468_v38  ;;  %v2140_v38 = vld [vmem:[%s8336_s8] sm:$0x7] }
 0x284   :  { %v1972_v52 = vpop.f32.mrf.mxu0  ;;  %v2149_v53 = vld [vmem:[%s8455_s27] sm:$0xff] }
 0x285   :  { %v2003_v16 = vadd.f32 %v1972_v52, %v1783_v11  ;;  %v1339_v34 = vadd.f32 %v6708_v47, %v1119_v44  ;;  %v2182_v44 = vld [vmem:[%s8455_s27 + $0x41] sm:$0xff]  ;;  %v2184_v11 = vld [vmem:[%s8455_s27 + $0x51] sm:$0xff] }
 0x287   :  { %v1559_v52 = vadd.f32 %v6717_v57, %v1339_v34  ;;  %v2032_v2 = vadd.f32 %v6696_v23, %v2003_v16  ;;  %v2158_v34 = vld [vmem:[%s8455_s27 + $0x48] sm:$0xff] }
 0x289   :  { %v1779_v8 = vadd.f32 %v6726_v33, %v1559_v52  ;;  %v2057_v56 = vmax.f32 %v2032_v2, 0.0  ;;  %v2110_v52 = vld [vmem:[%s8334_s6 + $0x10] sm:$0xff]  ;;  %v2109_v2 = vld [vmem:[%s8334_s6 + $0x8] sm:$0xff] }
 0x28a   :  { %5000 = vmatmul.msk.f32.gmra.mxu1 %vm124_vm1, %v2176_v6  ;;  %v1341_v6 = vadd.f32 %v6779_v20, %v1121_v51  ;;  %v1117_v20 = vadd.f32 %v8473_v28, %v8472_v54  ;;  %v2000_v51 = vadd.f32 %v6794_v21, %v1780_v1  ;;  %v2157_v54 = vld [vmem:[%s8455_s27 + $0x40] sm:$0xff]  ;;  %2133 = vmatpush.msrb.mxu3 %v2110_v52 }
 0x28b   :  { %v1999_v36 = vadd.f32 %v6781_v24, %v1779_v8 }
 0x28c   :  { %v1975_v41 = vpop.f32.mrf.mxu0  ;;  %v1561_v46 = vadd.f32 %v6785_v3, %v1341_v6  ;;  %v2178_v3 = vld [vmem:[%s8455_s27 + $0x21] sm:$0xff]  ;;  %v2029_v21 = vadd.f32 %v6696_v23, %v2000_v51  ;;  %v2183_v6 = vld [vmem:[%s8455_s27 + $0x49] sm:$0xff]  ;;  %2134 = vmatpush.msrb.mxu3 %v2109_v2 }
 0x28d   :  { %v2004_v22 = vadd.f32 %v1975_v41, %v1784_v49  ;;  %v2002_v41 = vadd.f32 %v1969_v27, %v1782_v35  ;;  %v2028_v24 = vadd.f32 %v6696_v23, %v1999_v36  ;;  %v2156_v35 = vld [vmem:[%s8455_s27 + $0x38] sm:$0xff]  ;;  %v2194_v51 = vld [vmem:[%s8455_s27 + $0xa1] sm:$0xff]  ;;  %v2163_v36 = vld [vmem:[%s8455_s27 + $0x70] sm:$0xff] }
 0x28e   :  { %v1781_v9 = vadd.f32 %v6790_v55, %v1561_v46  ;;  %v8474_v55 = vld [vmem:[#allocation64_spill] sm:$0xff]  ;;  %v2188_v46 = vld [vmem:[%s8455_s27 + $0x71] sm:$0xff] }
 0x28f   :  { %v2033_v0 = vadd.f32 %v6696_v23, %v2004_v22  ;;  %v1337_v27 = vadd.f32 %v8474_v55, %v1117_v20  ;;  %v2031_v26 = vadd.f32 %v6696_v23, %v2002_v41  ;;  %v2053_v10 = vmax.f32 %v2028_v24, 0.0  ;;  %v2185_v22 = vld [vmem:[%s8455_s27 + $0x59] sm:$0xff]  ;;  %v2190_v20 = vld [vmem:[%s8455_s27 + $0x81] sm:$0xff]  ;;  %v2191_v41 = vld [vmem:[%s8455_s27 + $0x89] sm:$0xff] }
 0x290   :  { %v2001_v47 = vadd.f32 %v1966_v62, %v1781_v9  ;;  %v1778_v62 = vadd.f32 %v6684_v18, %v1558_v4  ;;  %v2143_v55 = vld [vmem:[%s8336_s8 + $0xc] sm:$0x7]  ;;  %v2144_v4 = vld [vmem:[%s8336_s8 + $0x10] sm:$0x7]  ;;  %v2165_v24 = vld [vmem:[%s8455_s27 + $0x80] sm:$0xff] }
 0x291   :  { %v2058_v57 = vmax.f32 %v2033_v0, 0.0  ;;  %v1557_v40 = vadd.f32 %v8475_v59, %v1337_v27  ;;  %v2056_v19 = vmax.f32 %v2031_v26, 0.0  ;;  %v2159_v0 = vld [vmem:[%s8455_s27 + $0x50] sm:$0xff]  ;;  %v2161_v27 = vld [vmem:[%s8455_s27 + $0x60] sm:$0xff]  ;;  %5075 = vmatpush.msk.msrb.mxu0 %vm200_vm0, %v2143_v55  ;;  %5101 = vmatpush.msk.msra.mxu1 %vm200_vm0, %v2144_v4  ;;  %v2142_v26 = vld [vmem:[%s8336_s8 + $0x8] sm:$0x7] }
 0x292   :  { %5001 = vmatmul.msk.f32.gmra.mxu1 %vm124_vm1, %v2177_v29  ;;  %v2030_v25 = vadd.f32 %v6696_v23, %v2001_v47  ;;  %v1998_v33 = vadd.f32 %v6760_v45, %v1778_v62  ;;  %v2054_v45 = vmax.f32 %v2029_v21, 0.0  ;;  %v2193_v47 = vld [vmem:[%s8455_s27 + $0x99] sm:$0xff]  ;;  %v2540_v62 = vld [vmem:[%s8455_s27 + $0xa] sm:$0xff] }
 0x293   :  { %v1777_v29 = vadd.f32 %v8476_v42, %v1557_v40  ;;  %v2195_v40 = vld [vmem:[%s8455_s27 + $0xa9] sm:$0xff]  ;;  %5076 = vmatmul.msk.f32.vlgmr.msrb.gmra.mxu0 %vm124_vm1, %v2540_v62  ;;  %v2541_v42 = vld [vmem:[%s8455_s27 + $0x12] sm:$0xff] }
 0x294   :  { %v1978_v32 = vpop.f32.mrf.mxu0  ;;  %v2055_v58 = vmax.f32 %v2030_v25, 0.0  ;;  %v2027_v39 = vadd.f32 %v6696_v23, %v1998_v33  ;;  %v2172_v55 = vld [vmem:[%s8455_s27 + $0xb8] sm:$0xff] }
 0x295   :  { %v2005_v50 = vadd.f32 %v1978_v32, %v1785_v43  ;;  %v1997_v18 = vadd.f32 %v6728_v61, %v1777_v29  ;;  %v2180_v61 = vld [vmem:[%s8455_s27 + $0x31] sm:$0xff] }
 0x296   :  { %v2052_v48 = vmax.f32 %v2027_v39, 0.0  ;;  %v2152_v43 = vld [vmem:[%s8455_s27 + $0x18] sm:$0xff]  ;;  %v2155_v32 = vld [vmem:[%s8455_s27 + $0x30] sm:$0xff] }
 0x297   :  { %v2034_v31 = vadd.f32 %v6696_v23, %v2005_v50  ;;  %v2026_v60 = vadd.f32 %v6696_v23, %v1997_v18  ;;  %v2181_v23 = vld [vmem:[%s8455_s27 + $0x39] sm:$0xff] }
 0x298   :  { %v2189_v50 = vld [vmem:[%s8455_s27 + $0x79] sm:$0xff] }
 0x299   :  { %v2059_v17 = vmax.f32 %v2034_v31, 0.0  ;;  %v2051_v49 = vmax.f32 %v2026_v60, 0.0  ;;  %v2164_v29 = vld [vmem:[%s8455_s27 + $0x78] sm:$0xff]  ;;  %v2198_v60 = vld [vmem:[%s8455_s27 + $0xc1] sm:$0xff] }
 0x29a   :  { %5002 = vmatmul.msk.f32.gmra.mxu1 %vm124_vm1, %v2178_v3  ;;  %v2192_v3 = vld [vmem:[%s8455_s27 + $0x91] sm:$0xff]  ;;  %v2542_v18 = vld [vmem:[%s8455_s27 + $0x1a] sm:$0xff] }
 0x29b   :  { %2095 = vmatpush.msrb.mxu2 %v2059_v17  ;;  %v2108_v17 = vld [vmem:[%s8334_s6] sm:$0xff]  ;;  %5077 = vmatmul.msk.f32.gmra.mxu0 %vm124_vm1, %v2541_v42 }
 0x29c   :  { %2135 = vmatpush.msrb.mxu3 %v2108_v17  ;;  %v2549_v17 = vld [vmem:[%s8455_s27 + $0x52] sm:$0xff] }
 0x29d   :  { %2096 = vmatpush.msrb.mxu2 %v2058_v57  ;;  %v2162_v57 = vld [vmem:[%s8455_s27 + $0x68] sm:$0xff] }
 0x29e   :  { %5049 = vmatpush.msk.msra.mxu3 %vm200_vm0, %v2142_v26  ;;  %v2550_v26 = vld [vmem:[%s8455_s27 + $0x5a] sm:$0xff] }
 0x29f   :  { %2097 = vmatpush.msrb.mxu2 %v2057_v56  ;;  %v2196_v56 = vld [vmem:[%s8455_s27 + $0xb1] sm:$0xff] }
 0x2a1   :  { %2098 = vmatpush.msrb.mxu2 %v2056_v19  ;;  %v2197_v19 = vld [vmem:[%s8455_s27 + $0xb9] sm:$0xff] }
 0x2a2   :  { %5003 = vmatmul.msk.f32.gmra.mxu1 %vm124_vm1, %v2179_v14 }
 0x2a3   :  { %2099 = vmatpush.msrb.mxu2 %v2055_v58  ;;  %5078 = vmatmul.msk.f32.gmra.mxu0 %vm124_vm1, %v2542_v18 }
 0x2a5   :  { %2100 = vmatpush.msrb.mxu2 %v2054_v45  ;;  %v2539_v45 = vld [vmem:[%s8455_s27 + $0x2] sm:$0xff] }
 0x2a7   :  { %2101 = vmatpush.msrb.mxu2 %v2053_v10 }
 0x2a9   :  { %2102 = vmatpush.msrb.mxu2 %v2052_v48  ;;  %v2543_v48 = vld [vmem:[%s8455_s27 + $0x22] sm:$0xff] }
 0x2aa   :  { %5004 = vmatmul.msk.f32.gmra.mxu1 %vm124_vm1, %v2180_v61  ;;  %v2166_v61 = vld [vmem:[%s8455_s27 + $0x88] sm:$0xff] }
 0x2ab   :  { %2103 = vmatpush.msrb.mxu2 %v2051_v49  ;;  %5079 = vmatmul.msk.f32.gmra.mxu0 %vm124_vm1, %v2543_v48 }
 0x2ac   :  { %4995 = vmatmul.msk.f32.vlgmr.msrb.gmra.mxu2 %vm2065_vm2, %v6818_v15  ;;  %v2150_v15 = vld [vmem:[%s8455_s27 + $0x8] sm:$0xff] }
 0x2ad   :  { %5023 = vmatpush.msk.msra.mxu2 %vm200_vm0, %v2140_v38 }
 0x2af   :  { %5127 = vmatpush.msk.msrb.mxu2 %vm200_vm0, %v2145_v12 }
 0x2b2   :  { %5005 = vmatmul.msk.f32.gmra.mxu1 %vm124_vm1, %v2181_v23  ;;  %v2979_v23 = vld [vmem:[%s8455_s27 + $0xb] sm:$0xff] }
 0x2b4   :  { %5024 = vmatmul.msk.f32.vlgmr.msra.gmra.mxu2 %vm124_vm1, %v2149_v53 }
 0x2ba   :  { %5006 = vmatmul.msk.f32.gmra.mxu1 %vm124_vm1, %v2182_v44  ;;  %v2544_v44 = vld [vmem:[%s8455_s27 + $0x2a] sm:$0xff] }
 0x2bb   :  { %5080 = vmatmul.msk.f32.gmra.mxu0 %vm124_vm1, %v2544_v44 }
 0x2bc   :  { %5025 = vmatmul.msk.f32.gmra.mxu2 %vm124_vm1, %v2150_v15  ;;  %v2167_v15 = vld [vmem:[%s8455_s27 + $0x90] sm:$0xff] }
 0x2c2   :  { %5007 = vmatmul.msk.f32.gmra.mxu1 %vm124_vm1, %v2183_v6 }
 0x2c4   :  { %5026 = vmatmul.msk.f32.gmra.mxu2 %vm124_vm1, %v2151_v13 }
 0x2ca   :  { %5008 = vmatmul.msk.f32.gmra.mxu1 %vm124_vm1, %v2184_v11  ;;  %v2980_v11 = vld [vmem:[%s8455_s27 + $0x13] sm:$0xff] }
 0x2cc   :  { %5027 = vmatmul.msk.f32.gmra.mxu2 %vm124_vm1, %v2152_v43 }
 0x2d2   :  { %5009 = vmatmul.msk.f32.gmra.mxu1 %vm124_vm1, %v2185_v22  ;;  %v2545_v22 = vld [vmem:[%s8455_s27 + $0x32] sm:$0xff] }
 0x2d3   :  { %5081 = vmatmul.msk.f32.gmra.mxu0 %vm124_vm1, %v2545_v22 }
 0x2d4   :  { %5028 = vmatmul.msk.f32.gmra.mxu2 %vm124_vm1, %v2153_v30  ;;  %v2168_v30 = vld [vmem:[%s8455_s27 + $0x98] sm:$0xff] }
 0x2da   :  { %5010 = vmatmul.msk.f32.gmra.mxu1 %vm124_vm1, %v2186_v37 }
 0x2dc   :  { %5029 = vmatmul.msk.f32.gmra.mxu2 %vm124_vm1, %v2154_v5 }
 0x2e2   :  { %5011 = vmatmul.msk.f32.gmra.mxu1 %vm124_vm1, %v2187_v7  ;;  %v2981_v7 = vld [vmem:[%s8455_s27 + $0x1b] sm:$0xff] }
 0x2e4   :  { %5030 = vmatmul.msk.f32.gmra.mxu2 %vm124_vm1, %v2155_v32 }
 0x2ea   :  { %5012 = vmatmul.msk.f32.gmra.mxu1 %vm124_vm1, %v2188_v46  ;;  %v2546_v46 = vld [vmem:[%s8455_s27 + $0x3a] sm:$0xff] }
 0x2eb   :  { %5082 = vmatmul.msk.f32.gmra.mxu0 %vm124_vm1, %v2546_v46 }
 0x2ec   :  { %5031 = vmatmul.msk.f32.gmra.mxu2 %vm124_vm1, %v2156_v35  ;;  %v2169_v35 = vld [vmem:[%s8455_s27 + $0xa0] sm:$0xff] }
 0x2ef   :  { %v2085_v16 = vpop.f32.mrf.mxu1 }
 0x2f2   :  { %5013 = vmatmul.msk.f32.gmra.mxu1 %vm124_vm1, %v2189_v50 }
 0x2f4   :  { %5032 = vmatmul.msk.f32.gmra.mxu2 %vm124_vm1, %v2157_v54  ;;  %v2982_v54 = vld [vmem:[%s8455_s27 + $0x23] sm:$0xff] }
 0x2f7   :  { %v6955_v28 = vpop.f32.mrf.mxu1 }
 0x2fa   :  { %5014 = vmatmul.msk.f32.gmra.mxu1 %vm124_vm1, %v2190_v20  ;;  %v2547_v20 = vld [vmem:[%s8455_s27 + $0x42] sm:$0xff] }
 0x2fb   :  { %5083 = vmatmul.msk.f32.gmra.mxu0 %vm124_vm1, %v2547_v20 }
 0x2fc   :  { %5033 = vmatmul.msk.f32.gmra.mxu2 %vm124_vm1, %v2158_v34  ;;  %v2170_v34 = vld [vmem:[%s8455_s27 + $0xa8] sm:$0xff] }
 0x2ff   :  { %v6968_v9 = vpop.f32.mrf.mxu1 }
 0x302   :  { %5015 = vmatmul.msk.f32.gmra.mxu1 %vm124_vm1, %v2191_v41 }
 0x304   :  { %5034 = vmatmul.msk.f32.gmra.mxu2 %vm124_vm1, %v2159_v0  ;;  %v2983_v0 = vld [vmem:[%s8455_s27 + $0x2b] sm:$0xff] }
 0x307   :  { %v6978_v31 = vpop.f32.mrf.mxu1 }
 0x30a   :  { %5016 = vmatmul.msk.f32.gmra.mxu1 %vm124_vm1, %v2192_v3  ;;  %v2548_v3 = vld [vmem:[%s8455_s27 + $0x4a] sm:$0xff] }
 0x30b   :  { %5084 = vmatmul.msk.f32.gmra.mxu0 %vm124_vm1, %v2548_v3 }
 0x30c   :  { %5035 = vmatmul.msk.f32.gmra.mxu2 %vm124_vm1, %v2160_v63  ;;  %v2171_v63 = vld [vmem:[%s8455_s27 + $0xb0] sm:$0xff] }
 0x30f   :  { %v6991_v1 = vpop.f32.mrf.mxu1 }
 0x312   :  { %5017 = vmatmul.msk.f32.gmra.mxu1 %vm124_vm1, %v2193_v47  ;;  %v2984_v47 = vld [vmem:[%s8455_s27 + $0x33] sm:$0xff] }
 0x313   :  { %5085 = vmatmul.msk.f32.gmra.mxu0 %vm124_vm1, %v2549_v17 }
 0x314   :  { %5036 = vmatmul.msk.f32.gmra.mxu2 %vm124_vm1, %v2161_v27 }
 0x317   :  { %v7015_v8 = vpop.f32.mrf.mxu1 }
 0x31a   :  { %5018 = vmatmul.msk.f32.gmra.mxu1 %vm124_vm1, %v2194_v51 }
 0x31b   :  { %5086 = vmatmul.msk.f32.gmra.mxu0 %vm124_vm1, %v2550_v26 }
 0x31c   :  { %5037 = vmatmul.msk.f32.gmra.mxu2 %vm124_vm1, %v2162_v57  ;;  %v2173_v57 = vld [vmem:[%s8455_s27 + $0xc0] sm:$0xff] }
 0x31f   :  { %v7029_v59 = vpop.f32.mrf.mxu1 }
 0x322   :  { %5019 = vmatmul.msk.f32.gmra.mxu1 %vm124_vm1, %v2195_v40 }
 0x324   :  { %5038 = vmatmul.msk.f32.gmra.mxu2 %vm124_vm1, %v2163_v36 }
 0x327   :  { %v7043_v25 = vpop.f32.mrf.mxu1 }
 0x32a   :  { %5020 = vmatmul.msk.f32.gmra.mxu1 %vm124_vm1, %v2196_v56  ;;  %v3199_v56 = vld [vmem:[%s8455_s27 + $0xc] sm:$0xff] }
 0x32c   :  { %5039 = vmatmul.msk.f32.gmra.mxu2 %vm124_vm1, %v2164_v29 }
 0x32f   :  { %v2105_v33 = vpop.f32.mrf.mxu2  ;;  %v7057_v21 = vpop.f32.mrf.mxu1 }
 0x330   :  { %v2106_v14 = vadd.f32 %v2105_v33, %v2085_v16  ;;  %v2987_v33 = vld [vmem:[%s8455_s27 + $0x4b] sm:$0xff] }
 0x332   :  { %4996 = vmatmul.msk.f32.vlgmr.msrb.gmra.mxu3 %vm2116_vm3, %v2106_v14  ;;  %5021 = vmatmul.msk.f32.gmra.mxu1 %vm124_vm1, %v2197_v19  ;;  %v2552_v19 = vld [vmem:[%s8455_s27 + $0x6a] sm:$0xff]  ;;  %v7255_v14 = vld [vmem:[%s8455_s27 + $0x14] sm:$0xff] }
 0x334   :  { %5040 = vmatmul.msk.f32.gmra.mxu2 %vm124_vm1, %v2165_v24 }
 0x337   :  { %v2464_v58 = vpop.f32.mrf.mxu2  ;;  %v7072_v39 = vpop.f32.mrf.mxu1 }
 0x338   :  { %v7081_v10 = vadd.f32 %v2464_v58, %v6955_v28  ;;  %v2988_v58 = vld [vmem:[%s8455_s27 + $0x53] sm:$0xff] }
 0x33a   :  { %5050 = vmatmul.msk.f32.vlgmr.msra.gmra.mxu3 %vm124_vm1, %v2539_v45  ;;  %5022 = vmatmul.msk.f32.gmra.mxu1 %vm124_vm1, %v2198_v60  ;;  %v2553_v45 = vld [vmem:[%s8455_s27 + $0x72] sm:$0xff]  ;;  %v7276_v60 = vld [vmem:[%s8455_s27 + $0x1c] sm:$0xff] }
 0x33c   :  { %5041 = vmatmul.msk.f32.gmra.mxu2 %vm124_vm1, %v2166_v61 }
 0x33f   :  { %v2467_v49 = vpop.f32.mrf.mxu2  ;;  %v7093_v38 = vpop.f32.mrf.mxu1 }
 0x340   :  { %v7099_v53 = vadd.f32 %v2467_v49, %v6968_v9  ;;  %v2989_v49 = vld [vmem:[%s8455_s27 + $0x5b] sm:$0xff] }
 0x342   :  { %5051 = vmatmul.msk.f32.gmra.mxu3 %vm124_vm1, %v2540_v62  ;;  %5102 = vmatmul.msk.f32.vlgmr.msra.gmra.mxu1 %vm124_vm1, %v2979_v23  ;;  %v2986_v62 = vld [vmem:[%s8455_s27 + $0x43] sm:$0xff]  ;;  %v2554_v23 = vld [vmem:[%s8455_s27 + $0x7a] sm:$0xff] }
 0x344   :  { %5042 = vmatmul.msk.f32.gmra.mxu2 %vm124_vm1, %v2167_v15 }
 0x347   :  { %v2470_v6 = vpop.f32.mrf.mxu2  ;;  %v7111_v13 = vpop.f32.mrf.mxu1 }
 0x348   :  { %v7117_v43 = vadd.f32 %v2470_v6, %v6978_v31 }
 0x34a   :  { %5052 = vmatmul.msk.f32.gmra.mxu3 %vm124_vm1, %v2541_v42  ;;  %5103 = vmatmul.msk.f32.gmra.mxu1 %vm124_vm1, %v2980_v11 }
 0x34c   :  { %5043 = vmatmul.msk.f32.gmra.mxu2 %vm124_vm1, %v2168_v30  ;;  %v7318_v30 = vld [vmem:[%s8455_s27 + $0x2c] sm:$0xff] }
 0x34f   :  { %v2473_v37 = vpop.f32.mrf.mxu2  ;;  %v7129_v5 = vpop.f32.mrf.mxu1 }
 0x350   :  { %v7135_v32 = vadd.f32 %v2473_v37, %v6991_v1 }
 0x352   :  { %5053 = vmatmul.msk.f32.gmra.mxu3 %vm124_vm1, %v2542_v18  ;;  %5104 = vmatmul.msk.f32.gmra.mxu1 %vm124_vm1, %v2981_v7  ;;  %v2991_v7 = vld [vmem:[%s8455_s27 + $0x6b] sm:$0xff] }
 0x354   :  { %5044 = vmatmul.msk.f32.gmra.mxu2 %vm124_vm1, %v2169_v35  ;;  %v2879_v35 = vpop.f32.mrf.mxu0 }
 0x357   :  { %v2476_v16 = vpop.f32.mrf.mxu2  ;;  %v7147_v50 = vpop.f32.mrf.mxu1 }
 0x358   :  { %v7153_v28 = vadd.f32 %v2476_v16, %v7015_v8  ;;  %v2985_v8 = vld [vmem:[%s8455_s27 + $0x3b] sm:$0xff] }
 0x359   :  { %v7336_v16 = vld [vmem:[%s8455_s27 + $0x34] sm:$0xff] }
 0x35a   :  { %5054 = vmatmul.msk.f32.gmra.mxu3 %vm124_vm1, %v2543_v48  ;;  %5105 = vmatmul.msk.f32.gmra.mxu1 %vm124_vm1, %v2982_v54 }
 0x35c   :  { %5045 = vmatmul.msk.f32.gmra.mxu2 %vm124_vm1, %v2170_v34  ;;  %v2992_v34 = vld [vmem:[%s8455_s27 + $0x73] sm:$0xff] }
 0x35f   :  { %v2479_v9 = vpop.f32.mrf.mxu2  ;;  %v7169_v41 = vpop.f32.mrf.mxu1 }
 0x360   :  { %v7175_v31 = vadd.f32 %v2479_v9, %v7029_v59  ;;  %v2882_v9 = vpop.f32.mrf.mxu0 }
 0x362   :  { %5055 = vmatmul.msk.f32.gmra.mxu3 %vm124_vm1, %v2544_v44  ;;  %5106 = vmatmul.msk.f32.gmra.mxu1 %vm124_vm1, %v2983_v0  ;;  %v7297_v44 = vld [vmem:[%s8455_s27 + $0x24] sm:$0xff]  ;;  %v2557_v0 = vld [vmem:[%s8455_s27 + $0x92] sm:$0xff] }
 0x364   :  { %5046 = vmatmul.msk.f32.gmra.mxu2 %vm124_vm1, %v2171_v63 }
 0x367   :  { %v2482_v52 = vpop.f32.mrf.mxu2  ;;  %v7187_v1 = vpop.f32.mrf.mxu1 }
 0x368   :  { %v7193_v2 = vadd.f32 %v2482_v52, %v7043_v25  ;;  %v2551_v25 = vld [vmem:[%s8455_s27 + $0x62] sm:$0xff] }
 0x369   :  { %5087 = vmatmul.msk.f32.gmra.mxu0 %vm124_vm1, %v2551_v25  ;;  %v2993_v52 = vld [vmem:[%s8455_s27 + $0x7b] sm:$0xff] }
 0x36a   :  { %5056 = vmatmul.msk.f32.gmra.mxu3 %vm124_vm1, %v2545_v22  ;;  %5107 = vmatmul.msk.f32.gmra.mxu1 %vm124_vm1, %v2984_v47  ;;  %v2555_v22 = vld [vmem:[%s8455_s27 + $0x82] sm:$0xff]  ;;  %v2885_v47 = vpop.f32.mrf.mxu0 }
 0x36c   :  { %5047 = vmatmul.msk.f32.gmra.mxu2 %vm124_vm1, %v2172_v55  ;;  %v2558_v55 = vld [vmem:[%s8455_s27 + $0x9a] sm:$0xff] }
 0x36f   :  { %v2485_v27 = vpop.f32.mrf.mxu2  ;;  %v7205_v4 = vpop.f32.mrf.mxu1 }
 0x370   :  { %v7211_v51 = vadd.f32 %v2485_v27, %v7057_v21 }
 0x371   :  { %5088 = vmatmul.msk.f32.gmra.mxu0 %vm124_vm1, %v2552_v19 }
 0x372   :  { %5057 = vmatmul.msk.f32.gmra.mxu3 %vm124_vm1, %v2546_v46  ;;  %5108 = vmatmul.msk.f32.gmra.mxu1 %vm124_vm1, %v2985_v8 }
 0x374   :  { %5048 = vmatmul.msk.f32.gmra.mxu2 %vm124_vm1, %v2173_v57 }
 0x377   :  { %v2488_v59 = vpop.f32.mrf.mxu2  ;;  %v7223_v40 = vpop.f32.mrf.mxu1 }
 0x378   :  { %v7229_v36 = vadd.f32 %v2488_v59, %v7072_v39  ;;  %v2888_v59 = vpop.f32.mrf.mxu0 }
 0x379   :  { %5089 = vmatmul.msk.f32.gmra.mxu0 %vm124_vm1, %v2553_v45 }
 0x37a   :  { %5058 = vmatmul.msk.f32.gmra.mxu3 %vm124_vm1, %v2547_v20  ;;  %5109 = vmatmul.msk.f32.gmra.mxu1 %vm124_vm1, %v2986_v62  ;;  %v7401_v62 = vld [vmem:[%s8455_s27 + $0x4c] sm:$0xff] }
 0x37c   :  { %5128 = vmatmul.msk.f32.vlgmr.msrb.gmra.mxu2 %vm124_vm1, %v3199_v56 }
 0x37f   :  { %v2491_v42 = vpop.f32.mrf.mxu2  ;;  %v7241_v29 = vpop.f32.mrf.mxu1 }
 0x380   :  { %v7247_v21 = vadd.f32 %v2491_v42, %v7093_v38 }
 0x381   :  { %5090 = vmatmul.msk.f32.gmra.mxu0 %vm124_vm1, %v2554_v23 }
 0x382   :  { %5059 = vmatmul.msk.f32.gmra.mxu3 %vm124_vm1, %v2548_v3  ;;  %5110 = vmatmul.msk.f32.gmra.mxu1 %vm124_vm1, %v2987_v33 }
 0x384   :  { %5129 = vmatmul.msk.f32.gmra.mxu2 %vm124_vm1, %v7255_v14 }
 0x387   :  { %v2494_v18 = vpop.f32.mrf.mxu2  ;;  %v7262_v24 = vpop.f32.mrf.mxu1 }
 0x388   :  { %v7268_v39 = vadd.f32 %v2494_v18, %v7111_v13  ;;  %v2990_v13 = vld [vmem:[%s8455_s27 + $0x63] sm:$0xff] }
 0x389   :  { %5091 = vmatmul.msk.f32.gmra.mxu0 %vm124_vm1, %v2555_v22 }
 0x38a   :  { %5060 = vmatmul.msk.f32.gmra.mxu3 %vm124_vm1, %v2549_v17  ;;  %5111 = vmatmul.msk.f32.gmra.mxu1 %vm124_vm1, %v2988_v58  ;;  %v7378_v17 = vld [vmem:[%s8455_s27 + $0x44] sm:$0xff] }
 0x38c   :  { %5130 = vmatmul.msk.f32.gmra.mxu2 %vm124_vm1, %v7276_v60 }
 0x38f   :  { %v2497_v48 = vpop.f32.mrf.mxu2  ;;  %v7283_v61 = vpop.f32.mrf.mxu1 }
 0x390   :  { %v7289_v38 = vadd.f32 %v2497_v48, %v7129_v5  ;;  %v7423_v48 = vld [vmem:[%s8455_s27 + $0x54] sm:$0xff] }
 0x392   :  { %5061 = vmatmul.msk.f32.gmra.mxu3 %vm124_vm1, %v2550_v26  ;;  %5112 = vmatmul.msk.f32.gmra.mxu1 %vm124_vm1, %v2989_v49  ;;  %v2994_v26 = vld [vmem:[%s8455_s27 + $0x83] sm:$0xff] }
 0x394   :  { %5131 = vmatmul.msk.f32.gmra.mxu2 %vm124_vm1, %v7297_v44 }
 0x397   :  { %v2500_v15 = vpop.f32.mrf.mxu2  ;;  %v7304_v6 = vpop.f32.mrf.mxu1 }
 0x398   :  { %v7310_v11 = vadd.f32 %v2500_v15, %v7147_v50  ;;  %v2556_v50 = vld [vmem:[%s8455_s27 + $0x8a] sm:$0xff] }
 0x399   :  { %5092 = vmatmul.msk.f32.gmra.mxu0 %vm124_vm1, %v2556_v50 }
 0x39a   :  { %5062 = vmatmul.msk.f32.gmra.mxu3 %vm124_vm1, %v2551_v25  ;;  %5113 = vmatmul.msk.f32.gmra.mxu1 %vm124_vm1, %v2990_v13  ;;  %v2559_v25 = vld [vmem:[%s8455_s27 + $0xa2] sm:$0xff] }
 0x39c   :  { %5132 = vmatmul.msk.f32.gmra.mxu2 %vm124_vm1, %v7318_v30 }
 0x39f   :  { %v2503_v37 = vpop.f32.mrf.mxu2  ;;  %v7325_v5 = vpop.f32.mrf.mxu1 }
 0x3a0   :  { %v7331_v46 = vadd.f32 %v2503_v37, %v7169_v41  ;;  %v7357_v41 = vld [vmem:[%s8455_s27 + $0x3c] sm:$0xff] }
 0x3a1   :  { %5093 = vmatmul.msk.f32.gmra.mxu0 %vm124_vm1, %v2557_v0 }
 0x3a2   :  { %5063 = vmatmul.msk.f32.gmra.mxu3 %vm124_vm1, %v2552_v19  ;;  %5114 = vmatmul.msk.f32.gmra.mxu1 %vm124_vm1, %v2991_v7  ;;  %v2995_v19 = vld [vmem:[%s8455_s27 + $0x8b] sm:$0xff] }
 0x3a4   :  { %5133 = vmatmul.msk.f32.gmra.mxu2 %vm124_vm1, %v7336_v16 }
 0x3a7   :  { %v2506_v54 = vpop.f32.mrf.mxu2  ;;  %v7346_v20 = vpop.f32.mrf.mxu1 }
 0x3a8   :  { %v7352_v12 = vadd.f32 %v2506_v54, %v7187_v1 }
 0x3a9   :  { %5094 = vmatmul.msk.f32.gmra.mxu0 %vm124_vm1, %v2558_v55 }
 0x3aa   :  { %5064 = vmatmul.msk.f32.gmra.mxu3 %vm124_vm1, %v2553_v45  ;;  %5115 = vmatmul.msk.f32.gmra.mxu1 %vm124_vm1, %v2992_v34  ;;  %v7418_v45 = vpop.f32.mrf.mxu0 }
 0x3ac   :  { %5134 = vmatmul.msk.f32.gmra.mxu2 %vm124_vm1, %v7357_v41 }
 0x3af   :  { %v2509_v3 = vpop.f32.mrf.mxu2  ;;  %v7367_v63 = vpop.f32.mrf.mxu1 }
 0x3b0   :  { %v7373_v1 = vadd.f32 %v2509_v3, %v7205_v4 }
 0x3b1   :  { %5095 = vmatmul.msk.f32.gmra.mxu0 %vm124_vm1, %v2559_v25 }
 0x3b2   :  { %5065 = vmatmul.msk.f32.gmra.mxu3 %vm124_vm1, %v2554_v23  ;;  %5116 = vmatmul.msk.f32.gmra.mxu1 %vm124_vm1, %v2993_v52 }
 0x3b4   :  { %5135 = vmatmul.msk.f32.gmra.mxu2 %vm124_vm1, %v7378_v17 }
 0x3b5   :  { %v7388_v27 = vpop.f32.mrf.mxu3 }
 0x3b7   :  { %v2512_v4 = vpop.f32.mrf.mxu2  ;;  %v7390_v8 = vpop.f32.mrf.mxu1 }
 0x3b8   :  { %v7396_v57 = vadd.f32 %v2512_v4, %v7223_v40 }
 0x3ba   :  { %5066 = vmatmul.msk.f32.gmra.mxu3 %vm124_vm1, %v2555_v22  ;;  %5117 = vmatmul.msk.f32.gmra.mxu1 %vm124_vm1, %v2994_v26  ;;  %v2996_v22 = vld [vmem:[%s8455_s27 + $0x93] sm:$0xff] }
 0x3bc   :  { %5136 = vmatmul.msk.f32.gmra.mxu2 %vm124_vm1, %v7401_v62 }
 0x3bd   :  { %v2659_v40 = vpop.f32.mrf.mxu3 }
 0x3be   :  { %v2734_v56 = vadd.f32 %v2659_v40, %v7081_v10  ;;  %v7432_v10 = vld [vmem:[%s8455_s27 + $0xaa] sm:$0xff] }
 0x3bf   :  { %v2515_v42 = vpop.f32.mrf.mxu2  ;;  %v3099_v33 = vpop.f32.mrf.mxu1  ;;  %5096 = vmatmul.msk.f32.gmra.mxu0 %vm124_vm1, %v7432_v10  ;;  %v7477_v40 = vld [vmem:[%s8455_s27 + $0x64] sm:$0xff] }
 0x3c0   :  { %v7416_v18 = vadd.f32 %v2515_v42, %v7241_v29  ;;  %v2954_v58 = vadd.f32 %v2879_v35, %v2734_v56  ;;  %v7445_v35 = vpop.f32.mrf.mxu0 }
 0x3c2   :  { %v7425_v49 = vadd.f32 %v3099_v33, %v2954_v58  ;;  %5067 = vmatmul.msk.f32.gmra.mxu3 %vm124_vm1, %v2556_v50  ;;  %5118 = vmatmul.msk.f32.gmra.mxu1 %vm124_vm1, %v2995_v19  ;;  %v7450_v50 = vld [vmem:[%s8455_s27 + $0x5c] sm:$0xff] }
 0x3c3   :  { %v2998_v19 = vld [vmem:[%s8455_s27 + $0xa3] sm:$0xff] }
 0x3c4   :  { %5137 = vmatmul.msk.f32.gmra.mxu2 %vm124_vm1, %v7423_v48 }
 0x3c5   :  { %v2662_v29 = vpop.f32.mrf.mxu3 }
 0x3c6   :  { %v2735_v23 = vadd.f32 %v2662_v29, %v7099_v53  ;;  %v7459_v53 = vld [vmem:[%s8455_s27 + $0xb2] sm:$0xff] }
 0x3c7   :  { %v2518_v15 = vpop.f32.mrf.mxu2  ;;  %v3102_v13 = vpop.f32.mrf.mxu1  ;;  %5097 = vmatmul.msk.f32.gmra.mxu0 %vm124_vm1, %v7459_v53 }
 0x3c8   :  { %v7443_v37 = vadd.f32 %v2518_v15, %v7262_v24  ;;  %v2955_v7 = vadd.f32 %v2882_v9, %v2735_v23  ;;  %v7472_v26 = vpop.f32.mrf.mxu0  ;;  %v7508_v15 = vld [vmem:[%s8455_s27 + $0x6c] sm:$0xff] }
 0x3ca   :  { %v7452_v54 = vadd.f32 %v3102_v13, %v2955_v7  ;;  %5068 = vmatmul.msk.f32.gmra.mxu3 %vm124_vm1, %v2557_v0  ;;  %5119 = vmatmul.msk.f32.gmra.mxu1 %vm124_vm1, %v2996_v22  ;;  %v2997_v0 = vld [vmem:[%s8455_s27 + $0x9b] sm:$0xff] }
 0x3cc   :  { %5138 = vmatmul.msk.f32.gmra.mxu2 %vm124_vm1, %v7450_v50 }
 0x3cd   :  { %v2665_v24 = vpop.f32.mrf.mxu3 }
 0x3ce   :  { %v2736_v34 = vadd.f32 %v2665_v24, %v7117_v43  ;;  %v2146_v43 = vld [vmem:[%s8336_s8 + $0x18] sm:$0x7] }
 0x3cf   :  { %v2521_v9 = vpop.f32.mrf.mxu2  ;;  %v3105_v3 = vpop.f32.mrf.mxu1  ;;  %5153 = vmatpush.msk.msrb.mxu3 %vm200_vm0, %v2146_v43 }
 0x3d0   :  { %v7470_v52 = vadd.f32 %v2521_v9, %v7283_v61  ;;  %v2956_v4 = vadd.f32 %v2885_v47, %v2736_v34  ;;  %v7489_v61 = vld [vmem:[%s8455_s27 + $0xba] sm:$0xff]  ;;  %v7503_v23 = vpop.f32.mrf.mxu0  ;;  %v2999_v34 = vld [vmem:[%s8455_s27 + $0xab] sm:$0xff] }
 0x3d1   :  { %5098 = vmatmul.msk.f32.gmra.mxu0 %vm124_vm1, %v7489_v61 }
 0x3d2   :  { %v7479_v56 = vadd.f32 %v3105_v3, %v2956_v4  ;;  %5069 = vmatmul.msk.f32.gmra.mxu3 %vm124_vm1, %v2558_v55  ;;  %5120 = vmatmul.msk.f32.gmra.mxu1 %vm124_vm1, %v2997_v0  ;;  %v7539_v4 = vld [vmem:[%s8455_s27 + $0x74] sm:$0xff] }
 0x3d4   :  { %5139 = vmatmul.msk.f32.gmra.mxu2 %vm124_vm1, %v7477_v40 }
 0x3d5   :  { %v2668_v47 = vpop.f32.mrf.mxu3 }
 0x3d6   :  { %v2737_v55 = vadd.f32 %v2668_v47, %v7135_v32  ;;  %v2147_v32 = vld [vmem:[%s8336_s8 + $0x1c] sm:$0x7] }
 0x3d7   :  { %v2524_v42 = vpop.f32.mrf.mxu2  ;;  %v3108_v33 = vpop.f32.mrf.mxu1  ;;  %5179 = vmatpush.msk.msra.mxu0 %vm200_vm0, %v2147_v32 }
 0x3d8   :  { %v7501_v58 = vadd.f32 %v2524_v42, %v7304_v6  ;;  %v2957_v29 = vadd.f32 %v2888_v59, %v2737_v55  ;;  %v2563_v6 = vld [vmem:[%s8455_s27 + $0xc2] sm:$0xff]  ;;  %v2903_v0 = vpop.f32.mrf.mxu0 }
 0x3d9   :  { %v2148_v59 = vld [vmem:[%s8336_s8 + $0x20] sm:$0x7]  ;;  %5099 = vmatmul.msk.f32.gmra.mxu0 %vm124_vm1, %v2563_v6  ;;  %s5355_s8 = smov [#allocation2]  }
 0x3da   :  { %v7510_v13 = vadd.f32 %v3108_v33, %v2957_v29  ;;  %5070 = vmatmul.msk.f32.gmra.mxu3 %vm124_vm1, %v2559_v25  ;;  %5121 = vmatmul.msk.f32.gmra.mxu1 %vm124_vm1, %v2998_v19  ;;  %v7563_v29 = vld [vmem:[%s8455_s27 + $0x7c] sm:$0xff] }
 0x3db   :  { %5205 = vmatpush.msk.msrb.mxu1 %vm200_vm0, %v2148_v59 }
 0x3dc   :  { %5140 = vmatmul.msk.f32.gmra.mxu2 %vm124_vm1, %v7508_v15 }
 0x3dd   :  { %v2671_v25 = vpop.f32.mrf.mxu3 }
 0x3de   :  { %v2738_v22 = vadd.f32 %v2671_v25, %v7153_v28  ;;  %v2783_v28 = vld [vmem:[%s8455_s27 + $0xca] sm:$0xff] }
 0x3df   :  { %v2527_v7 = vpop.f32.mrf.mxu2  ;;  %v3111_v24 = vpop.f32.mrf.mxu1 }
 0x3e0   :  { %v7533_v9 = vadd.f32 %v2527_v7, %v7325_v5  ;;  %v2958_v3 = vadd.f32 %v7418_v45, %v2738_v22  ;;  %v2906_v19 = vpop.f32.mrf.mxu0 }
 0x3e1   :  { %5100 = vmatmul.msk.f32.gmra.mxu0 %vm124_vm1, %v2783_v28 }
 0x3e2   :  { %v7541_v43 = vadd.f32 %v3111_v24, %v2958_v3  ;;  %5071 = vmatmul.msk.f32.gmra.mxu3 %vm124_vm1, %v7432_v10  ;;  %5122 = vmatmul.msk.f32.gmra.mxu1 %vm124_vm1, %v2999_v34  ;;  %v3000_v10 = vld [vmem:[%s8455_s27 + $0xb3] sm:$0xff]  ;;  %v7587_v34 = vld [vmem:[%s8455_s27 + $0x84] sm:$0xff] }
 0x3e4   :  { %5141 = vmatmul.msk.f32.gmra.mxu2 %vm124_vm1, %v7539_v4 }
 0x3e5   :  { %v2674_v5 = vpop.f32.mrf.mxu3 }
 0x3e6   :  { %v2739_v45 = vadd.f32 %v2674_v5, %v7175_v31  ;;  %v3639_v31 = vld [vmem:[%s8455_s27 + $0x15] sm:$0xff] }
 0x3e7   :  { %v2530_v47 = vpop.f32.mrf.mxu2  ;;  %v3114_v55 = vpop.f32.mrf.mxu1 }
 0x3e8   :  { %v7557_v42 = vadd.f32 %v2530_v47, %v7346_v20  ;;  %v2959_v33 = vadd.f32 %v7445_v35, %v2739_v45  ;;  %v2909_v24 = vpop.f32.mrf.mxu0 }
 0x3e9   :  { %5180 = vmatmul.msk.f32.vlgmr.msra.gmra.mxu0 %vm124_vm1, %v3639_v31 }
 0x3ea   :  { %v7565_v32 = vadd.f32 %v3114_v55, %v2959_v33  ;;  %5072 = vmatmul.msk.f32.gmra.mxu3 %vm124_vm1, %v7459_v53  ;;  %5123 = vmatmul.msk.f32.gmra.mxu1 %vm124_vm1, %v3000_v10  ;;  %v3001_v53 = vld [vmem:[%s8455_s27 + $0xbb] sm:$0xff]  ;;  %v7611_v10 = vld [vmem:[%s8455_s27 + $0x8c] sm:$0xff] }
 0x3ec   :  { %5142 = vmatmul.msk.f32.gmra.mxu2 %vm124_vm1, %v7563_v29 }
 0x3ed   :  { %v2677_v20 = vpop.f32.mrf.mxu3 }
 0x3ee   :  { %v2740_v35 = vadd.f32 %v2677_v20, %v7193_v2  ;;  %v3640_v2 = vld [vmem:[%s8455_s27 + $0x1d] sm:$0xff] }
 0x3ef   :  { %v2533_v59 = vpop.f32.mrf.mxu2  ;;  %v3117_v25 = vpop.f32.mrf.mxu1 }
 0x3f0   :  { %v7581_v22 = vadd.f32 %v2533_v59, %v7367_v63  ;;  %v2960_v7 = vadd.f32 %v7472_v26, %v2740_v35  ;;  %v2912_v55 = vpop.f32.mrf.mxu0 }
 0x3f1   :  { %5181 = vmatmul.msk.f32.gmra.mxu0 %vm124_vm1, %v3640_v2 }
 0x3f2   :  { %v7589_v3 = vadd.f32 %v3117_v25, %v2960_v7  ;;  %5073 = vmatmul.msk.f32.gmra.mxu3 %vm124_vm1, %v7489_v61  ;;  %5124 = vmatmul.msk.f32.gmra.mxu1 %vm124_vm1, %v3001_v53  ;;  %v3002_v61 = vld [vmem:[%s8455_s27 + $0xc3] sm:$0xff]  ;;  %v7633_v53 = vld [vmem:[%s8455_s27 + $0x94] sm:$0xff] }
 0x3f4   :  { %5143 = vmatmul.msk.f32.gmra.mxu2 %vm124_vm1, %v7587_v34 }
 0x3f5   :  { %v2680_v63 = vpop.f32.mrf.mxu3 }
 0x3f6   :  { %v2741_v26 = vadd.f32 %v2680_v63, %v7211_v51  ;;  %v3641_v51 = vld [vmem:[%s8455_s27 + $0x25] sm:$0xff] }
 0x3f7   :  { %v2536_v28 = vpop.f32.mrf.mxu2  ;;  %v3120_v5 = vpop.f32.mrf.mxu1 }
 0x3f8   :  { %v7605_v45 = vadd.f32 %v2536_v28, %v7390_v8  ;;  %v2961_v47 = vadd.f32 %v7503_v23, %v2741_v26  ;;  %v2915_v25 = vpop.f32.mrf.mxu0 }
 0x3f9   :  { %5182 = vmatmul.msk.f32.gmra.mxu0 %vm124_vm1, %v3641_v51 }
 0x3fa   :  { %v7613_v33 = vadd.f32 %v3120_v5, %v2961_v47  ;;  %5074 = vmatmul.msk.f32.gmra.mxu3 %vm124_vm1, %v2563_v6  ;;  %5125 = vmatmul.msk.f32.gmra.mxu1 %vm124_vm1, %v3002_v61  ;;  %v3003_v6 = vld [vmem:[%s8455_s27 + $0xcb] sm:$0xff]  ;;  %v7655_v5 = vld [vmem:[%s8455_s27 + $0x9c] sm:$0xff] }
 0x3fc   :  { %5144 = vmatmul.msk.f32.gmra.mxu2 %vm124_vm1, %v7611_v10 }
 0x3fd   :  { %v2683_v8 = vpop.f32.mrf.mxu3 }
 0x3fe   :  { %v2742_v23 = vadd.f32 %v2683_v8, %v7229_v36  ;;  %v3642_v36 = vld [vmem:[%s8455_s27 + $0x2d] sm:$0xff] }
 0x3ff   :  { %v3319_v31 = vpop.f32.mrf.mxu2  ;;  %v3123_v20 = vpop.f32.mrf.mxu1 }
 0x400   :  { %v2962_v35 = vadd.f32 %v2903_v0, %v2742_v23  ;;  %v7628_v59 = vadd.f32 %v3319_v31, %v7425_v49  ;;  %v2918_v28 = vpop.f32.mrf.mxu0 }
 0x401   :  { %5183 = vmatmul.msk.f32.gmra.mxu0 %vm124_vm1, %v3642_v36 }
 0x402   :  { %v7635_v7 = vadd.f32 %v3123_v20, %v2962_v35  ;;  %5154 = vmatmul.msk.f32.vlgmr.msrb.gmra.mxu3 %vm124_vm1, %v7255_v14  ;;  %5126 = vmatmul.msk.f32.gmra.mxu1 %vm124_vm1, %v3003_v6  ;;  %v3859_v14 = vld [vmem:[%s8455_s27 + $0x16] sm:$0xff]  ;;  %v7677_v20 = vld [vmem:[%s8455_s27 + $0xa4] sm:$0xff] }
 0x404   :  { %5145 = vmatmul.msk.f32.gmra.mxu2 %vm124_vm1, %v7633_v53 }
 0x405   :  { %v2686_v49 = vpop.f32.mrf.mxu3 }
 0x406   :  { %v2743_v0 = vadd.f32 %v2686_v49, %v7247_v21  ;;  %v3643_v21 = vld [vmem:[%s8455_s27 + $0x35] sm:$0xff] }
 0x407   :  { %v7647_v2 = vpop.f32.mrf.mxu2  ;;  %v3126_v63 = vpop.f32.mrf.mxu1 }
 0x408   :  { %v2963_v26 = vadd.f32 %v2906_v19, %v2743_v0  ;;  %v2921_v31 = vpop.f32.mrf.mxu0 }
 0x409   :  { %5184 = vmatmul.msk.f32.gmra.mxu0 %vm124_vm1, %v3643_v21 }
 0x40a   :  { %v7657_v61 = vadd.f32 %v3126_v63, %v2963_v26  ;;  %5155 = vmatmul.msk.f32.gmra.mxu3 %vm124_vm1, %v7276_v60  ;;  %5206 = vmatmul.msk.f32.vlgmr.msrb.gmra.mxu1 %vm124_vm1, %v3859_v14  ;;  %v3860_v60 = vld [vmem:[%s8455_s27 + $0x1e] sm:$0xff]  ;;  %v7699_v14 = vld [vmem:[%s8455_s27 + $0xac] sm:$0xff] }
 0x40c   :  { %5146 = vmatmul.msk.f32.gmra.mxu2 %vm124_vm1, %v7655_v5 }
 0x40d   :  { %v2689_v19 = vpop.f32.mrf.mxu3 }
 0x40e   :  { %v2744_v47 = vadd.f32 %v2689_v19, %v7268_v39  ;;  %v3644_v39 = vld [vmem:[%s8455_s27 + $0x3d] sm:$0xff] }
 0x40f   :  { %v7669_v51 = vpop.f32.mrf.mxu2  ;;  %v3129_v8 = vpop.f32.mrf.mxu1 }
 0x410   :  { %v2964_v23 = vadd.f32 %v2909_v24, %v2744_v47  ;;  %v2924_v63 = vpop.f32.mrf.mxu0 }
 0x411   :  { %5185 = vmatmul.msk.f32.gmra.mxu0 %vm124_vm1, %v3644_v39 }
 0x412   :  { %v7679_v6 = vadd.f32 %v3129_v8, %v2964_v23  ;;  %5156 = vmatmul.msk.f32.gmra.mxu3 %vm124_vm1, %v7297_v44  ;;  %5207 = vmatmul.msk.f32.gmra.mxu1 %vm124_vm1, %v3860_v60  ;;  %v3861_v44 = vld [vmem:[%s8455_s27 + $0x26] sm:$0xff]  ;;  %v7721_v23 = vld [vmem:[%s8455_s27 + $0xb4] sm:$0xff] }
 0x414   :  { %5147 = vmatmul.msk.f32.gmra.mxu2 %vm124_vm1, %v7677_v20 }
 0x415   :  { %v2692_v24 = vpop.f32.mrf.mxu3 }
 0x416   :  { %v2745_v35 = vadd.f32 %v2692_v24, %v7289_v38  ;;  %v3645_v38 = vld [vmem:[%s8455_s27 + $0x45] sm:$0xff] }
 0x417   :  { %v7691_v36 = vpop.f32.mrf.mxu2  ;;  %v3132_v49 = vpop.f32.mrf.mxu1 }
 0x418   :  { %v2965_v0 = vadd.f32 %v2912_v55, %v2745_v35  ;;  %v2927_v60 = vpop.f32.mrf.mxu0 }
 0x419   :  { %5186 = vmatmul.msk.f32.gmra.mxu0 %vm124_vm1, %v3645_v38  ;;  %v7743_v38 = vld [vmem:[%s8455_s27 + $0xbc] sm:$0xff] }
 0x41a   :  { %v7701_v26 = vadd.f32 %v3132_v49, %v2965_v0  ;;  %5157 = vmatmul.msk.f32.gmra.mxu3 %vm124_vm1, %v7318_v30  ;;  %5208 = vmatmul.msk.f32.gmra.mxu1 %vm124_vm1, %v3861_v44  ;;  %v3862_v30 = vld [vmem:[%s8455_s27 + $0x2e] sm:$0xff] }
 0x41c   :  { %5148 = vmatmul.msk.f32.gmra.mxu2 %vm124_vm1, %v7699_v14 }
 0x41d   :  { %v2695_v55 = vpop.f32.mrf.mxu3 }
 0x41e   :  { %v2746_v21 = vadd.f32 %v2695_v55, %v7310_v11  ;;  %v3646_v11 = vld [vmem:[%s8455_s27 + $0x4d] sm:$0xff] }
 0x41f   :  { %v7713_v19 = vpop.f32.mrf.mxu2  ;;  %v3135_v47 = vpop.f32.mrf.mxu1 }
 0x420   :  { %v2966_v8 = vadd.f32 %v2915_v25, %v2746_v21  ;;  %v2930_v0 = vpop.f32.mrf.mxu0 }
 0x421   :  { %5187 = vmatmul.msk.f32.gmra.mxu0 %vm124_vm1, %v3646_v11 }
 0x422   :  { %v7723_v39 = vadd.f32 %v3135_v47, %v2966_v8  ;;  %5158 = vmatmul.msk.f32.gmra.mxu3 %vm124_vm1, %v7336_v16  ;;  %5209 = vmatmul.msk.f32.gmra.mxu1 %vm124_vm1, %v3862_v30  ;;  %v3863_v16 = vld [vmem:[%s8455_s27 + $0x36] sm:$0xff] }
 0x424   :  { %5149 = vmatmul.msk.f32.gmra.mxu2 %vm124_vm1, %v7721_v23 }
 0x425   :  { %v2698_v25 = vpop.f32.mrf.mxu3 }
 0x426   :  { %v2747_v24 = vadd.f32 %v2698_v25, %v7331_v46  ;;  %v3647_v46 = vld [vmem:[%s8455_s27 + $0x55] sm:$0xff]  ;;  %v7765_v25 = vld [vmem:[%s8455_s27 + $0xc4] sm:$0xff] }
 0x427   :  { %v7735_v35 = vpop.f32.mrf.mxu2  ;;  %v3138_v49 = vpop.f32.mrf.mxu1 }
 0x428   :  { %v2967_v44 = vadd.f32 %v2918_v28, %v2747_v24  ;;  %v2933_v11 = vpop.f32.mrf.mxu0 }
 0x429   :  { %5188 = vmatmul.msk.f32.gmra.mxu0 %vm124_vm1, %v3647_v46 }
 0x42a   :  { %v7745_v55 = vadd.f32 %v3138_v49, %v2967_v44  ;;  %5159 = vmatmul.msk.f32.gmra.mxu3 %vm124_vm1, %v7357_v41  ;;  %5210 = vmatmul.msk.f32.gmra.mxu1 %vm124_vm1, %v3863_v16  ;;  %v3864_v41 = vld [vmem:[%s8455_s27 + $0x3e] sm:$0xff] }
 0x42c   :  { %5150 = vmatmul.msk.f32.gmra.mxu2 %vm124_vm1, %v7743_v38 }
 0x42d   :  { %v2701_v28 = vpop.f32.mrf.mxu3 }
 0x42e   :  { %v2748_v21 = vadd.f32 %v2701_v28, %v7352_v12  ;;  %v3648_v12 = vld [vmem:[%s8455_s27 + $0x5d] sm:$0xff] }
 0x42f   :  { %v7757_v47 = vpop.f32.mrf.mxu2  ;;  %v3141_v30 = vpop.f32.mrf.mxu1 }
 0x430   :  { %v2968_v8 = vadd.f32 %v2921_v31, %v2748_v21  ;;  %v2936_v21 = vpop.f32.mrf.mxu0 }
 0x431   :  { %5189 = vmatmul.msk.f32.gmra.mxu0 %vm124_vm1, %v3648_v12 }
 0x432   :  { %v7767_v24 = vadd.f32 %v3141_v30, %v2968_v8  ;;  %5160 = vmatmul.msk.f32.gmra.mxu3 %vm124_vm1, %v7378_v17  ;;  %5211 = vmatmul.msk.f32.gmra.mxu1 %vm124_vm1, %v3864_v41  ;;  %v3865_v17 = vld [vmem:[%s8455_s27 + $0x46] sm:$0xff] }
 0x433   :  { %v7788_v30 = vld [vmem:[%s8455_s27 + $0xcc] sm:$0xff] }
 0x434   :  { %5151 = vmatmul.msk.f32.gmra.mxu2 %vm124_vm1, %v7765_v25 }
 0x435   :  { %v2704_v31 = vpop.f32.mrf.mxu3 }
 0x436   :  { %v2749_v49 = vadd.f32 %v2704_v31, %v7373_v1  ;;  %v3649_v1 = vld [vmem:[%s8455_s27 + $0x65] sm:$0xff] }
 0x437   :  { %v3340_v16 = vpop.f32.mrf.mxu2  ;;  %v3144_v44 = vpop.f32.mrf.mxu1 }
 0x438   :  { %v2969_v46 = vadd.f32 %v2924_v63, %v2749_v49  ;;  %v7783_v28 = vadd.f32 %v3340_v16, %v7613_v33 }
 0x439   :  { %5190 = vmatmul.msk.f32.gmra.mxu0 %vm124_vm1, %v3649_v1  ;;  %v3867_v1 = vld [vmem:[%s8455_s27 + $0x56] sm:$0xff] }
 0x43a   :  { %v7790_v41 = vadd.f32 %v3144_v44, %v2969_v46  ;;  %5161 = vmatmul.msk.f32.gmra.mxu3 %vm124_vm1, %v7401_v62  ;;  %5212 = vmatmul.msk.f32.gmra.mxu1 %vm124_vm1, %v3865_v17  ;;  %v3866_v62 = vld [vmem:[%s8455_s27 + $0x4e] sm:$0xff] }
 0x43c   :  { %5152 = vmatmul.msk.f32.gmra.mxu2 %vm124_vm1, %v7788_v30  ;;  %v2939_v16 = vpop.f32.mrf.mxu0 }
 0x43d   :  { %v2707_v33 = vpop.f32.mrf.mxu3 }
 0x43e   :  { %v2750_v63 = vadd.f32 %v2707_v33, %v7396_v57  ;;  %v3650_v57 = vld [vmem:[%s8455_s27 + $0x6d] sm:$0xff] }
 0x43f   :  { %v3343_v8 = vpop.f32.mrf.mxu2  ;;  %v3147_v12 = vpop.f32.mrf.mxu1 }
 0x440   :  { %v2970_v31 = vadd.f32 %v2927_v60, %v2750_v63  ;;  %v7806_v49 = vadd.f32 %v3343_v8, %v7635_v7 }
 0x441   :  { %5191 = vmatmul.msk.f32.gmra.mxu0 %vm124_vm1, %v3650_v57 }
 0x442   :  { %v7808_v44 = vadd.f32 %v3147_v12, %v2970_v31  ;;  %5162 = vmatmul.msk.f32.gmra.mxu3 %vm124_vm1, %v7423_v48  ;;  %5213 = vmatmul.msk.f32.gmra.mxu1 %vm124_vm1, %v3866_v62  ;;  %v3868_v31 = vld [vmem:[%s8455_s27 + $0x5e] sm:$0xff] }
 0x444   :  { %v2942_v48 = vpop.f32.mrf.mxu0 }
 0x445   :  { %v2710_v17 = vpop.f32.mrf.mxu3 }
 0x446   :  { %v2751_v60 = vadd.f32 %v2710_v17, %v7416_v18  ;;  %v3651_v18 = vld [vmem:[%s8455_s27 + $0x75] sm:$0xff] }
 0x447   :  { %v7818_v46 = vpop.f32.mrf.mxu2  ;;  %v3150_v7 = vpop.f32.mrf.mxu1 }
 0x448   :  { %v2971_v33 = vadd.f32 %v2930_v0, %v2751_v60 }
 0x449   :  { %5192 = vmatmul.msk.f32.gmra.mxu0 %vm124_vm1, %v3651_v18 }
 0x44a   :  { %v7823_v63 = vadd.f32 %v3150_v7, %v2971_v33  ;;  %5163 = vmatmul.msk.f32.gmra.mxu3 %vm124_vm1, %v7450_v50  ;;  %5214 = vmatmul.msk.f32.gmra.mxu1 %vm124_vm1, %v3867_v1  ;;  %v3869_v33 = vld [vmem:[%s8455_s27 + $0x66] sm:$0xff] }
 0x44d   :  { %v2713_v8 = vpop.f32.mrf.mxu3 }
 0x44e   :  { %v2752_v12 = vadd.f32 %v2713_v8, %v7443_v37  ;;  %v2945_v50 = vpop.f32.mrf.mxu0  ;;  %v3652_v37 = vld [vmem:[%s8455_s27 + $0x7d] sm:$0xff] }
 0x44f   :  { %v7833_v62 = vpop.f32.mrf.mxu2  ;;  %v3153_v0 = vpop.f32.mrf.mxu1 }
 0x450   :  { %v2972_v57 = vadd.f32 %v2933_v11, %v2752_v12 }
 0x451   :  { %5193 = vmatmul.msk.f32.gmra.mxu0 %vm124_vm1, %v3652_v37 }
 0x452   :  { %v7838_v17 = vadd.f32 %v3153_v0, %v2972_v57  ;;  %5164 = vmatmul.msk.f32.gmra.mxu3 %vm124_vm1, %v7477_v40  ;;  %5215 = vmatmul.msk.f32.gmra.mxu1 %vm124_vm1, %v3868_v31  ;;  %v3870_v57 = vld [vmem:[%s8455_s27 + $0x6e] sm:$0xff] }
 0x455   :  { %v2716_v60 = vpop.f32.mrf.mxu3 }
 0x456   :  { %v2753_v7 = vadd.f32 %v2716_v60, %v7470_v52  ;;  %v2948_v40 = vpop.f32.mrf.mxu0  ;;  %v3653_v52 = vld [vmem:[%s8455_s27 + $0x85] sm:$0xff] }
 0x457   :  { %v7848_v1 = vpop.f32.mrf.mxu2  ;;  %v3156_v11 = vpop.f32.mrf.mxu1 }
 0x458   :  { %v2973_v18 = vadd.f32 %v2936_v21, %v2753_v7 }
 0x459   :  { %5194 = vmatmul.msk.f32.gmra.mxu0 %vm124_vm1, %v3653_v52 }
 0x45a   :  { %v7853_v8 = vadd.f32 %v3156_v11, %v2973_v18  ;;  %5165 = vmatmul.msk.f32.gmra.mxu3 %vm124_vm1, %v7508_v15  ;;  %5216 = vmatmul.msk.f32.gmra.mxu1 %vm124_vm1, %v3869_v33  ;;  %v3871_v18 = vld [vmem:[%s8455_s27 + $0x76] sm:$0xff] }
 0x45d   :  { %v2719_v12 = vpop.f32.mrf.mxu3 }
 0x45e   :  { %v2754_v0 = vadd.f32 %v2719_v12, %v7501_v58  ;;  %v2951_v15 = vpop.f32.mrf.mxu0  ;;  %v3654_v58 = vld [vmem:[%s8455_s27 + $0x8d] sm:$0xff] }
 0x45f   :  { %v7863_v31 = vpop.f32.mrf.mxu2  ;;  %v3159_v21 = vpop.f32.mrf.mxu1 }
 0x460   :  { %v2974_v37 = vadd.f32 %v2939_v16, %v2754_v0 }
 0x461   :  { %5195 = vmatmul.msk.f32.gmra.mxu0 %vm124_vm1, %v3654_v58 }
 0x462   :  { %v7868_v60 = vadd.f32 %v3159_v21, %v2974_v37  ;;  %5166 = vmatmul.msk.f32.gmra.mxu3 %vm124_vm1, %v7539_v4  ;;  %5217 = vmatmul.msk.f32.gmra.mxu1 %vm124_vm1, %v3870_v57  ;;  %v3872_v37 = vld [vmem:[%s8455_s27 + $0x7e] sm:$0xff] }
 0x465   :  { %v2722_v7 = vpop.f32.mrf.mxu3 }
 0x466   :  { %v2755_v11 = vadd.f32 %v2722_v7, %v7533_v9  ;;  %v3759_v4 = vpop.f32.mrf.mxu0  ;;  %v3655_v9 = vld [vmem:[%s8455_s27 + $0x95] sm:$0xff] }
 0x467   :  { %v7878_v33 = vpop.f32.mrf.mxu2  ;;  %v3162_v16 = vpop.f32.mrf.mxu1 }
 0x468   :  { %v2975_v52 = vadd.f32 %v2942_v48, %v2755_v11 }
 0x469   :  { %5196 = vmatmul.msk.f32.gmra.mxu0 %vm124_vm1, %v3655_v9 }
 0x46a   :  { %v7883_v12 = vadd.f32 %v3162_v16, %v2975_v52  ;;  %5167 = vmatmul.msk.f32.gmra.mxu3 %vm124_vm1, %v7563_v29  ;;  %5218 = vmatmul.msk.f32.gmra.mxu1 %vm124_vm1, %v3871_v18  ;;  %v3873_v52 = vld [vmem:[%s8455_s27 + $0x86] sm:$0xff] }
 0x46d   :  { %v2725_v0 = vpop.f32.mrf.mxu3 }
 0x46e   :  { %v2756_v21 = vadd.f32 %v2725_v0, %v7557_v42  ;;  %v3762_v29 = vpop.f32.mrf.mxu0  ;;  %v3656_v42 = vld [vmem:[%s8455_s27 + $0x9d] sm:$0xff] }
 0x46f   :  { %v7893_v57 = vpop.f32.mrf.mxu2  ;;  %v3165_v48 = vpop.f32.mrf.mxu1 }
 0x470   :  { %v2976_v58 = vadd.f32 %v2945_v50, %v2756_v21 }
 0x471   :  { %5197 = vmatmul.msk.f32.gmra.mxu0 %vm124_vm1, %v3656_v42 }
 0x472   :  { %v7898_v7 = vadd.f32 %v3165_v48, %v2976_v58  ;;  %5168 = vmatmul.msk.f32.gmra.mxu3 %vm124_vm1, %v7587_v34  ;;  %5219 = vmatmul.msk.f32.gmra.mxu1 %vm124_vm1, %v3872_v37 }
 0x475   :  { %v2728_v11 = vpop.f32.mrf.mxu3 }
 0x476   :  { %v2757_v16 = vadd.f32 %v2728_v11, %v7581_v22  ;;  %v3765_v34 = vpop.f32.mrf.mxu0  ;;  %v3657_v22 = vld [vmem:[%s8455_s27 + $0xa5] sm:$0xff] }
 0x477   :  { %v7908_v18 = vpop.f32.mrf.mxu2  ;;  %v3168_v50 = vpop.f32.mrf.mxu1 }
 0x478   :  { %v2977_v9 = vadd.f32 %v2948_v40, %v2757_v16  ;;  %v3874_v40 = vld [vmem:[%s8455_s27 + $0x8e] sm:$0xff] }
 0x479   :  { %5198 = vmatmul.msk.f32.gmra.mxu0 %vm124_vm1, %v3657_v22 }
 0x47a   :  { %v7913_v0 = vadd.f32 %v3168_v50, %v2977_v9  ;;  %5169 = vmatmul.msk.f32.gmra.mxu3 %vm124_vm1, %v7611_v10  ;;  %5220 = vmatmul.msk.f32.gmra.mxu1 %vm124_vm1, %v3873_v52  ;;  %v3875_v9 = vld [vmem:[%s8455_s27 + $0x96] sm:$0xff] }
 0x47d   :  { %v2731_v21 = vpop.f32.mrf.mxu3 }
 0x47e   :  { %v2758_v48 = vadd.f32 %v2731_v21, %v7605_v45  ;;  %v3768_v11 = vpop.f32.mrf.mxu0  ;;  %v3658_v45 = vld [vmem:[%s8455_s27 + $0xad] sm:$0xff] }
 0x47f   :  { %v3367_v37 = vpop.f32.mrf.mxu2  ;;  %v3171_v58 = vpop.f32.mrf.mxu1 }
 0x480   :  { %v2978_v42 = vadd.f32 %v2951_v15, %v2758_v48  ;;  %v7927_v10 = vadd.f32 %v3367_v37, %v7808_v44  ;;  %v3395_v37 = vadd.f32 %v7647_v2, %v7452_v54  ;;  %v3660_v54 = vld [vmem:[%s8455_s27 + $0xbd] sm:$0xff]  ;;  %v3396_v2 = vadd.f32 %v7669_v51, %v7479_v56  ;;  %v3661_v56 = vld [vmem:[%s8455_s27 + $0xc5] sm:$0xff] }
 0x481   :  { %5199 = vmatmul.msk.f32.gmra.mxu0 %vm124_vm1, %v3658_v45  ;;  %v3397_v51 = vadd.f32 %v7691_v36, %v7510_v13  ;;  %v3662_v13 = vld [vmem:[%s8455_s27 + $0xcd] sm:$0xff]  ;;  %v3398_v36 = vadd.f32 %v7713_v19, %v7541_v43  ;;  %v3663_v43 = vld [vmem:[%s8455_s27 + $0xd5] sm:$0xff]  ;;  %v3399_v19 = vadd.f32 %v7735_v35, %v7565_v32  ;;  %v3400_v32 = vadd.f32 %v7757_v47, %v7589_v3 }
 0x482   :  { %v7929_v16 = vadd.f32 %v3171_v58, %v2978_v42  ;;  %5170 = vmatmul.msk.f32.gmra.mxu3 %vm124_vm1, %v7633_v53  ;;  %5221 = vmatmul.msk.f32.gmra.mxu1 %vm124_vm1, %v3874_v40  ;;  %v3876_v40 = vld [vmem:[%s8455_s27 + $0x9e] sm:$0xff] }
 0x485   :  { %v3539_v50 = vpop.f32.mrf.mxu3 }
 0x486   :  { %v3614_v15 = vadd.f32 %v3539_v50, %v7628_v59  ;;  %v3771_v21 = vpop.f32.mrf.mxu0  ;;  %v3659_v59 = vld [vmem:[%s8455_s27 + $0xb5] sm:$0xff] }
 0x487   :  { %v3370_v52 = vpop.f32.mrf.mxu2  ;;  %v3979_v44 = vpop.f32.mrf.mxu1 }
 0x488   :  { %v7943_v22 = vadd.f32 %v3370_v52, %v7823_v63  ;;  %v3834_v53 = vadd.f32 %v3759_v4, %v3614_v15  ;;  %v3877_v52 = vld [vmem:[%s8455_s27 + $0xa6] sm:$0xff] }
 0x489   :  { %5200 = vmatmul.msk.f32.gmra.mxu0 %vm124_vm1, %v3659_v59 }
 0x48a   :  { %v7945_v48 = vadd.f32 %v3979_v44, %v3834_v53  ;;  %5171 = vmatmul.msk.f32.gmra.mxu3 %vm124_vm1, %v7655_v5  ;;  %5222 = vmatmul.msk.f32.gmra.mxu1 %vm124_vm1, %v3875_v9 }
 0x48d   :  { %v3542_v63 = vpop.f32.mrf.mxu3 }
 0x48e   :  { %v3615_v58 = vadd.f32 %v3542_v63, %v3395_v37  ;;  %v3774_v5 = vpop.f32.mrf.mxu0  ;;  %v3878_v37 = vld [vmem:[%s8455_s27 + $0xae] sm:$0xff] }
 0x48f   :  { %v3982_v4 = vpop.f32.mrf.mxu1 }
 0x490   :  { %v3835_v42 = vadd.f32 %v3762_v29, %v3615_v58 }
 0x491   :  { %5201 = vmatmul.msk.f32.gmra.mxu0 %vm124_vm1, %v3660_v54 }
 0x492   :  { %v7959_v45 = vadd.f32 %v3982_v4, %v3835_v42  ;;  %5172 = vmatmul.msk.f32.gmra.mxu3 %vm124_vm1, %v7677_v20  ;;  %5223 = vmatmul.msk.f32.gmra.mxu1 %vm124_vm1, %v3876_v40  ;;  %v3879_v42 = vld [vmem:[%s8455_s27 + $0xb6] sm:$0xff] }
 0x495   :  { %v3545_v50 = vpop.f32.mrf.mxu3 }
 0x496   :  { %v3616_v15 = vadd.f32 %v3545_v50, %v3396_v2  ;;  %v3777_v20 = vpop.f32.mrf.mxu0 }
 0x497   :  { %v3985_v29 = vpop.f32.mrf.mxu1 }
 0x498   :  { %v3836_v44 = vadd.f32 %v3765_v34, %v3616_v15 }
 0x499   :  { %5202 = vmatmul.msk.f32.gmra.mxu0 %vm124_vm1, %v3661_v56 }
 0x49a   :  { %v7973_v9 = vadd.f32 %v3985_v29, %v3836_v44  ;;  %5173 = vmatmul.msk.f32.gmra.mxu3 %vm124_vm1, %v7699_v14  ;;  %5224 = vmatmul.msk.f32.gmra.mxu1 %vm124_vm1, %v3877_v52  ;;  %v3880_v29 = vld [vmem:[%s8455_s27 + $0xbe] sm:$0xff] }
 0x49d   :  { %v3548_v53 = vpop.f32.mrf.mxu3 }
 0x49e   :  { %v3617_v59 = vadd.f32 %v3548_v53, %v3397_v51  ;;  %v3780_v14 = vpop.f32.mrf.mxu0  ;;  %v3881_v53 = vld [vmem:[%s8455_s27 + $0xc6] sm:$0xff] }
 0x49f   :  { %v3988_v34 = vpop.f32.mrf.mxu1 }
 0x4a0   :  { %v3837_v63 = vadd.f32 %v3768_v11, %v3617_v59 }
 0x4a1   :  { %5203 = vmatmul.msk.f32.gmra.mxu0 %vm124_vm1, %v3662_v13 }
 0x4a2   :  { %v7987_v58 = vadd.f32 %v3988_v34, %v3837_v63  ;;  %5174 = vmatmul.msk.f32.gmra.mxu3 %vm124_vm1, %v7721_v23  ;;  %5225 = vmatmul.msk.f32.gmra.mxu1 %vm124_vm1, %v3878_v37  ;;  %v3443_v37 = vld [vmem:[%s8455_s27 + $0xd4] sm:$0xff] }
 0x4a5   :  { %v3551_v4 = vpop.f32.mrf.mxu3 }
 0x4a6   :  { %v3618_v40 = vadd.f32 %v3551_v4, %v3398_v36  ;;  %v3783_v23 = vpop.f32.mrf.mxu0 }
 0x4a7   :  { %v3991_v11 = vpop.f32.mrf.mxu1 }
 0x4a8   :  { %v3838_v54 = vadd.f32 %v3771_v21, %v3618_v40  ;;  %v3883_v40 = vld [vmem:[%s8455_s27 + $0xd6] sm:$0xff] }
 0x4a9   :  { %5204 = vmatmul.msk.f32.gmra.mxu0 %vm124_vm1, %v3663_v43 }
 0x4aa   :  { %v8001_v2 = vadd.f32 %v3991_v11, %v3838_v54  ;;  %5175 = vmatmul.msk.f32.gmra.mxu3 %vm124_vm1, %v7743_v38  ;;  %5226 = vmatmul.msk.f32.gmra.mxu1 %vm124_vm1, %v3879_v42 }
 0x4ad   :  { %v3554_v50 = vpop.f32.mrf.mxu3 }
 0x4ae   :  { %v3619_v15 = vadd.f32 %v3554_v50, %v3399_v19  ;;  %v8015_v38 = vpop.f32.mrf.mxu0 }
 0x4af   :  { %v3994_v21 = vpop.f32.mrf.mxu1 }
 0x4b0   :  { %v3839_v52 = vadd.f32 %v3774_v5, %v3619_v15 }
 0x4b2   :  { %v8017_v44 = vadd.f32 %v3994_v21, %v3839_v52  ;;  %5176 = vmatmul.msk.f32.gmra.mxu3 %vm124_vm1, %v7765_v25  ;;  %5227 = vmatmul.msk.f32.gmra.mxu1 %vm124_vm1, %v3880_v29 }
 0x4b5   :  { %v3557_v35 = vpop.f32.mrf.mxu3 }
 0x4b6   :  { %v3620_v56 = vadd.f32 %v3557_v35, %v3400_v32  ;;  %v8027_v59 = vpop.f32.mrf.mxu0 }
 0x4b7   :  { %v3997_v51 = vpop.f32.mrf.mxu1 }
 0x4b8   :  { %v3840_v5 = vadd.f32 %v3777_v20, %v3620_v56  ;;  %v3882_v20 = vld [vmem:[%s8455_s27 + $0xce] sm:$0xff]  ;;  %s4721_s27 = sshll.u32 %s8346_s18, 4  ;;  %s5357_s18 = smov [#allocation6]   ;;  %s4722_s27 = int_to_ptr.hbm [resolvable:$true] %s4721_s27 }
 0x4b9   :  { %s4741_s19 = sshll.u32 %s5357_s18, 4  ;;  %s4742_s19 = int_to_ptr.vmem [resolvable:$true] %s4741_s19 }
 0x4ba   :  { %v8029_v34 = vadd.f32 %v3997_v51, %v3840_v5  ;;  %5177 = vmatmul.msk.f32.gmra.mxu3 %vm124_vm1, %v7788_v30  ;;  %5228 = vmatmul.msk.f32.gmra.mxu1 %vm124_vm1, %v3881_v53  ;;  %v3408_v5 = vadd.f32 %v7893_v57, %v7767_v24  ;;  %v3404_v24 = vadd.f32 %v7833_v62, %v7679_v6 }
 0x4bd   :  { %v3560_v25 = vpop.f32.mrf.mxu3 }
 0x4be   :  { %v3621_v3 = vadd.f32 %v3560_v25, %v7783_v28  ;;  %v3792_v30 = vpop.f32.mrf.mxu0 }
 0x4bf   :  { %v4000_v47 = vpop.f32.mrf.mxu1 }
 0x4c0   :  { %v3841_v63 = vadd.f32 %v3780_v14, %v3621_v3  ;;  %v3407_v3 = vadd.f32 %v7878_v33, %v7745_v55  ;;  %v3403_v33 = vadd.f32 %v7818_v46, %v7657_v61 }
 0x4c2   :  { %v8041_v13 = vadd.f32 %v4000_v47, %v3841_v63  ;;  %5178 = vmatmul.msk.f32.gmra.mxu3 %vm124_vm1, %v3443_v37  ;;  %5229 = vmatmul.msk.f32.gmra.mxu1 %vm124_vm1, %v3882_v20  ;;  %v3406_v37 = vadd.f32 %v7863_v31, %v7723_v39  ;;  %v3405_v63 = vadd.f32 %v7848_v1, %v7701_v26 }
 0x4c5   :  { %v3563_v36 = vpop.f32.mrf.mxu3 }
 0x4c6   :  { %v3622_v28 = vadd.f32 %v3563_v36, %v7806_v49  ;;  %v3795_v54 = vpop.f32.mrf.mxu0  ;;  %v3409_v36 = vadd.f32 %v7908_v18, %v7790_v41  ;;  %v8069_v41 = vld [vmem:[%s8337_s9] ss:$0 sm:$0xff]  ;;  %s4719_s9 = sshll.u32 %s5355_s8, 4  ;;  %s4720_s9 = int_to_ptr.vmem [resolvable:$true] %s4719_s9 }
 0x4c7   :  { %v4003_v4 = vpop.f32.mrf.mxu1 }
 0x4c8   :  { %v3842_v11 = vadd.f32 %v3783_v23, %v3622_v28 }
 0x4ca   :  { %v8049_v42 = vadd.f32 %v4003_v4, %v3842_v11  ;;  %5230 = vmatmul.msk.f32.gmra.mxu1 %vm124_vm1, %v3883_v40 }
 0x4cd   :  { %v3566_v14 = vpop.f32.mrf.mxu3 }
 0x4ce   :  { %v3798_v15 = vpop.f32.mrf.mxu0 }
 0x4cf   :  { %v4006_v43 = vpop.f32.mrf.mxu1 }
 0x4d5   :  { %v3569_v19 = vpop.f32.mrf.mxu3 }
 0x4d6   :  { %v3801_v52 = vpop.f32.mrf.mxu0 }
 0x4d7   :  { %v4009_v50 = vpop.f32.mrf.mxu1 }
 0x4dd   :  { %v3572_v21 = vpop.f32.mrf.mxu3 }
 0x4de   :  { %v3804_v35 = vpop.f32.mrf.mxu0  ;;  %v3625_v57 = vadd.f32 %v3572_v21, %v3405_v63 }
 0x4df   :  { %v4012_v29 = vpop.f32.mrf.mxu1 }
 0x4e0   :  { %v3845_v18 = vadd.f32 %v3792_v30, %v3625_v57 }
 0x4e5   :  { %v3575_v49 = vpop.f32.mrf.mxu3 }
 0x4e6   :  { %v3807_v23 = vpop.f32.mrf.mxu0  ;;  %v3626_v28 = vadd.f32 %v3575_v49, %v3406_v37 }
 0x4e7   :  { %v4015_v32 = vpop.f32.mrf.mxu1 }
 0x4ed   :  { %v3578_v56 = vpop.f32.mrf.mxu3 }
 0x4ee   :  { %v3627_v20 = vadd.f32 %v3578_v56, %v3407_v3  ;;  %v3810_v31 = vpop.f32.mrf.mxu0  ;;  %v3624_v56 = vadd.f32 %v3569_v19, %v3404_v24  ;;  %v8074_v19 = vpop.f32.mrf.mxu2 }
 0x4ef   :  { %v4018_v51 = vpop.f32.mrf.mxu1 }
 0x4f0   :  { %v3847_v11 = vadd.f32 %v3798_v15, %v3627_v20  ;;  %v3844_v15 = vadd.f32 %v8027_v59, %v3624_v56 }
 0x4f2   :  { %v4067_v6 = vadd.f32 %v4018_v51, %v3847_v11  ;;  %v4090_v11 = vadd.f32 %v8069_v41, %v8041_v13  ;;  %v8107_v13 = vld [vmem:[%s8477_s0] sm:$0x3]  ;;  %s4743_s0 = sshll.u32 %s8348_s20, 4  ;;  %s4744_s0 = int_to_ptr.hbm [resolvable:$true] %s4743_s0 }
 0x4f4   :  { %v4096_v49 = vadd.f32 %v8069_v41, %v4067_v6  ;;  %v4086_v6 = vadd.f32 %v8069_v41, %v7987_v58 }
 0x4f5   :  { %v3581_v53 = vpop.f32.mrf.mxu3 }
 0x4f6   :  { %v3628_v47 = vadd.f32 %v3581_v53, %v3408_v5  ;;  %v3846_v53 = vadd.f32 %v3795_v54, %v3626_v28  ;;  %v3623_v5 = vadd.f32 %v3566_v14, %v3403_v33 }
 0x4f7   :  { %v4021_v25 = vpop.f32.mrf.mxu1 }
 0x4f8   :  { %v3848_v4 = vadd.f32 %v3801_v52, %v3628_v47  ;;  %v4066_v21 = vadd.f32 %v4015_v32, %v3846_v53  ;;  %v3843_v54 = vadd.f32 %v8015_v38, %v3623_v5  ;;  %v4065_v52 = vadd.f32 %v4012_v29, %v3845_v18  ;;  %v8080_v47 = vpop.f32.mrf.mxu0 }
 0x4f9   :  { %v4121_v38 = vmax.f32 %v4096_v49, 0.0 }
 0x4fa   :  { %v4068_v26 = vadd.f32 %v4021_v25, %v3848_v4  ;;  %v4064_v25 = vadd.f32 %v4009_v50, %v3844_v15  ;;  %v4095_v59 = vadd.f32 %v8069_v41, %v4066_v21  ;;  %v4063_v37 = vadd.f32 %v4006_v43, %v3843_v54  ;;  %v8088_v4 = vpop.f32.mrf.mxu2 }
 0x4fb   :  { %v4094_v20 = vadd.f32 %v8069_v41, %v4065_v52  ;;  %v4085_v21 = vadd.f32 %v8069_v41, %v7973_v9  ;;  %v4111_v52 = vmax.f32 %v4086_v6, 0.0 }
 0x4fc   :  { %v4097_v61 = vadd.f32 %v8069_v41, %v4068_v26  ;;  %v4093_v29 = vadd.f32 %v8069_v41, %v4064_v25  ;;  %v4092_v50 = vadd.f32 %v8069_v41, %v4063_v37 }
 0x4fd   :  { %v3584_v40 = vpop.f32.mrf.mxu3  ;;  %v4119_v28 = vmax.f32 %v4094_v20, 0.0  ;;  %v4110_v9 = vmax.f32 %v4085_v21, 0.0 }
 0x4fe   :  { %v3629_v55 = vadd.f32 %v3584_v40, %v3409_v36  ;;  %v4122_v32 = vmax.f32 %v4097_v61, 0.0  ;;  %v4120_v36 = vmax.f32 %v4095_v59, 0.0  ;;  %v4091_v40 = vadd.f32 %v8069_v41, %v8049_v42 }
 0x4ff   :  { %v4024_v39 = vpop.f32.mrf.mxu1  ;;  %v4118_v24 = vmax.f32 %v4093_v29, 0.0  ;;  %v4088_v42 = vadd.f32 %v8069_v41, %v8017_v44 }
 0x500   :  { %v3849_v1 = vadd.f32 %v3804_v35, %v3629_v55  ;;  %v4117_v55 = vmax.f32 %v4092_v50, 0.0  ;;  %v4116_v56 = vmax.f32 %v4091_v40, 0.0 }
 0x502   :  { %v4069_v62 = vadd.f32 %v4024_v39, %v3849_v1  ;;  %v8096_v39 = vpop.f32.mrf.mxu0  ;;  %v8112_v1 = vmul.f32 0.70710677, %v8107_v13  ;;  %v8116_v18 = vpop.f32.mrf.mxu2 }
 0x504   :  { %v4098_v46 = vadd.f32 %v8069_v41, %v4069_v62  ;;  %v4215_v44 = vmul.f32 %v8112_v1, %v8112_v1  ;;  %v4113_v62 = vmax.f32 %v4088_v42, 0.0 }
 0x505   :  { %v3587_v14 = vpop.f32.mrf.mxu3 }
 0x506   :  { %v4123_v35 = vmax.f32 %v4098_v46, 0.0  ;;  %v3630_v30 = vadd.f32 %v3587_v14, %v7927_v10  ;;  %v8122_v15 = vmin.f32 %v4215_v44, 16.0  ;;  %v4084_v14 = vadd.f32 %v8069_v41, %v7959_v45 }
 0x507   :  { %v4027_v51 = vpop.f32.mrf.mxu1 }
 0x508   :  { %v3850_v3 = vadd.f32 %v3807_v23, %v3630_v30  ;;  %4139 = vmatpush.msra.mxu2 %v4123_v35  ;;  %v4228_v54 = vmul.f32 3.8918573e-05, %v8122_v15  ;;  %v4083_v35 = vadd.f32 %v8069_v41, %v7945_v48 }
 0x50a   :  { %v8083_v63 = vadd.f32 %v4027_v51, %v3850_v3  ;;  %4140 = vmatpush.msra.mxu2 %v4122_v32  ;;  %v8128_v46 = vpop.f32.mrf.mxu0  ;;  %v4229_v49 = vadd.f32 0.001143296, %v4228_v54  ;;  %v4109_v51 = vmax.f32 %v4084_v14, 0.0  ;;  %v3382_v25 = vpop.f32.mrf.mxu2  ;;  %v4108_v32 = vmax.f32 %v4083_v35, 0.0 }
 0x50b   :  { %v3415_v14 = vadd.f32 %v3382_v25, %v7883_v12  ;;  %v3413_v12 = vadd.f32 %v8088_v4, %v7853_v8 }
 0x50c   :  { %4141 = vmatpush.msra.mxu2 %v4121_v38  ;;  %v4230_v30 = vmul.f32 %v4229_v49, %v8122_v15  ;;  %v4134_v49 = vld.sshfl [vmem:[#allocation1] sm:$0xff pattern:$0x73625140] }
 0x50d   :  { %v3590_v10 = vpop.f32.mrf.mxu3 }
 0x50e   :  { %v3631_v23 = vadd.f32 %v3590_v10, %v7943_v22  ;;  %4142 = vmatpush.msra.mxu2 %v4120_v36  ;;  %v4089_v22 = vadd.f32 %v8069_v41, %v8029_v34  ;;  %v4087_v34 = vadd.f32 %v8069_v41, %v8001_v2  ;;  %v4231_v59 = vadd.f32 0.014752088, %v4230_v30 }
 0x50f   :  { %v4030_v43 = vpop.f32.mrf.mxu1  ;;  %v4217_v10 = vmul.f32 2.1237322e-06, %v8122_v15 }
 0x510   :  { %v3851_v57 = vadd.f32 %v3810_v31, %v3631_v23  ;;  %4143 = vmatpush.msra.mxu2 %v4119_v28  ;;  %v4115_v31 = vmax.f32 %v4090_v11, 0.0  ;;  %v4114_v5 = vmax.f32 %v4089_v22, 0.0  ;;  %v4112_v61 = vmax.f32 %v4087_v34, 0.0 }
 0x511   :  { %v4232_v45 = vmul.f32 %v4231_v59, %v8122_v15 }
 0x512   :  { %v8094_v33 = vadd.f32 %v4030_v43, %v3851_v57  ;;  %4144 = vmatpush.msra.mxu2 %v4118_v24  ;;  %v3822_v20 = vpop.f32.mrf.mxu0  ;;  %v3385_v29 = vpop.f32.mrf.mxu2  ;;  %v4218_v43 = vadd.f32 0.00028619796, %v4217_v10 }
 0x513   :  { %v4233_v38 = vadd.f32 0.112945676, %v4232_v45 }
 0x514   :  { %4145 = vmatpush.msra.mxu2 %v4117_v55  ;;  %v4219_v57 = vmul.f32 %v4218_v43, %v8122_v15 }
 0x515   :  { %v8100_v53 = vpop.f32.mrf.mxu3  ;;  %v4234_v48 = vmul.f32 %v4233_v38, %v8122_v15 }
 0x516   :  { %4146 = vmatpush.msra.mxu2 %v4116_v56  ;;  %v4220_v56 = vadd.f32 0.0036580483, %v4219_v57 }
 0x517   :  { %v8109_v26 = vpop.f32.mrf.mxu1  ;;  %v4235_v50 = vadd.f32 0.4994258, %v4234_v48  ;;  %v3412_v48 = vadd.f32 %v8074_v19, %v7838_v17 }
 0x518   :  { %4147 = vmatpush.msra.mxu2 %v4115_v31  ;;  %v4221_v34 = vmul.f32 %v4220_v56, %v8122_v15 }
 0x519   :  { %v4236_v40 = vmul.f32 %v4235_v50, %v8122_v15  ;;  %v3632_v50 = vadd.f32 %v8100_v53, %v3412_v48 }
 0x51a   :  { %4148 = vmatpush.msra.mxu2 %v4114_v5  ;;  %v3825_v23 = vpop.f32.mrf.mxu0  ;;  %v3388_v55 = vpop.f32.mrf.mxu2  ;;  %v4222_v54 = vadd.f32 0.05243302, %v4221_v34 }
 0x51b   :  { %v8145_v11 = vadd.f32 1.0, %v4236_v40  ;;  %v3417_v5 = vadd.f32 %v3388_v55, %v7913_v0 }
 0x51c   :  { %4149 = vmatpush.msra.mxu2 %v4113_v62  ;;  %v3416_v62 = vadd.f32 %v3385_v29, %v7898_v7 }
 0x51d   :  { %v8126_v2 = vpop.f32.mrf.mxu3  ;;  %5264 = vrcp.f32 %v8145_v11  ;;  %vm4243_vm4 = vweird.f32 %v8145_v11  ;;  %v4247_v55 = vand.u32 2147483647, %v8145_v11 }
 0x51e   :  { %4150 = vmatpush.msra.mxu2 %v4112_v61 }
 0x51f   :  { %v8133_v58 = vpop.f32.mrf.mxu1  ;;  %vm4248_vm7 = vcmp.eq.f32.partialorder %v4247_v55, 8.507059e+37 }
 0x520   :  { %4151 = vmatpush.msra.mxu2 %v4111_v52 }
 0x522   :  { %4152 = vmatpush.msra.mxu2 %v4110_v9  ;;  %v3828_v42 = vpop.f32.mrf.mxu0  ;;  %v3391_v61 = vpop.f32.mrf.mxu2  ;;  %v3414_v9 = vadd.f32 %v8116_v18, %v7868_v60  ;;  %v3633_v60 = vadd.f32 %v8126_v2, %v3413_v12  ;;  %v3852_v2 = vadd.f32 %v8080_v47, %v3632_v50  ;;  %v4179_v12 = vld [vmem:[%s8338_s10] sm:$0xff] }
 0x523   :  { %v8150_v6 = vpop.eup %5264  ;;  %v3418_v0 = vadd.f32 %v3391_v61, %v7929_v16 }
 0x524   :  { %4153 = vmatpush.msra.mxu2 %v4109_v51  ;;  %v4239_v35 = vmul.f32 %v8150_v6, %v8145_v11  ;;  %vm4244_vm5 = vweird.f32 %v8150_v6 }
 0x525   :  { %v3599_v3 = vpop.f32.mrf.mxu3  ;;  %vm8182_vm6 = vmor %vm4243_vm4, %vm4244_vm5 }
 0x526   :  { %4154 = vmatpush.msra.mxu2 %v4108_v32  ;;  %v4223_v32 = vmul.f32 %v4222_v54, %v8122_v15  ;;  %v3634_v25 = vadd.f32 %v3599_v3, %v3414_v9  ;;  %v4240_v10 = vsub.f32 1.0, %v4239_v35  ;;  %v3853_v3 = vadd.f32 %v8096_v39, %v3633_v60  ;;  %v5258_v60 = vld [vmem:[%s8335_s7] ss:$0 sm:$0xff] }
 0x527   :  { %v8139_v37 = vpop.f32.mrf.mxu1  ;;  %4155 = vmatmul.f32.vlgmr.msra.gmra.mxu2 %v4134_v49  ;;  %v4249_v39 = vand.u32 2147483648, %v8145_v11  ;;  %v4100_v54 = vadd.f32 %v8069_v41, %v8094_v33  ;;  %v4213_v33 = vmul.f32 0.5, %v8107_v13 }
 0x528   :  { %v4224_v43 = vadd.f32 0.18741608, %v4223_v32  ;;  %v3854_v40 = vadd.f32 %v8128_v46, %v3634_v25  ;;  %v4241_v4 = vmul.f32 %v8150_v6, %v4240_v10  ;;  %v4180_v32 = vld [vmem:[%s8338_s10 + $0x8] sm:$0xff]  ;;  %v8227_v25 = vld [vmem:[%s8342_s14 + $0x10] sm:$0xff] }
 0x529   :  { %v4125_v35 = vmax.f32 %v4100_v54, 0.0 }
 0x52a   :  { %v3831_v7 = vpop.f32.mrf.mxu0  ;;  %v4074_v53 = vadd.f32 %v8139_v37, %v3854_v40  ;;  %v4288_v40 = vsub.f32 0.0, %v8107_v13 }
 0x52d   :  { %v3602_v36 = vpop.f32.mrf.mxu3 }
 0x52e   :  { %v3635_v30 = vadd.f32 %v3602_v36, %v3415_v14 }
 0x52f   :  { %v4042_v28 = vpop.f32.mrf.mxu1 }
 0x530   :  { %v3855_v16 = vadd.f32 %v3822_v20, %v3635_v30  ;;  %v4225_v20 = vmul.f32 %v4224_v43, %v8122_v15  ;;  %v4211_v30 = vld [vmem:[%s8340_s12] sm:$0xf] }
 0x532   :  { %v4226_v37 = vadd.f32 1.1283791, %v4225_v20 }
 0x535   :  { %v3605_v24 = vpop.f32.mrf.mxu3 }
 0x536   :  { %v3636_v52 = vadd.f32 %v3605_v24, %v3416_v62  ;;  %v4227_v62 = vmul.f32 %v4226_v37, %v8112_v1 }
 0x537   :  { %v4045_v22 = vpop.f32.mrf.mxu1 }
 0x538   :  { %v3856_v45 = vadd.f32 %v3825_v23, %v3636_v52  ;;  %v4075_v23 = vadd.f32 %v4042_v28, %v3855_v16  ;;  %v4242_v28 = vadd.f32 %v8150_v6, %v4241_v4  ;;  %v8250_v16 = vld [vmem:[%s8341_s13] ss:$0 sm:$0xff] }
 0x53a   :  { %v4076_v24 = vadd.f32 %v4045_v22, %v3856_v45  ;;  %v4073_v22 = vadd.f32 %v8133_v58, %v3853_v3  ;;  %v4104_v47 = vadd.f32 %v8069_v41, %v4075_v23  ;;  %v4246_v58 = vsel %vm8182_vm6, %v8150_v6, %v4242_v28  ;;  %v8233_v45 = vld [vmem:[%s8342_s14 + $0x8] sm:$0xff]  ;;  %v5262_v28 = vld [vmem:[%s8339_s11] ss:$0 sm:$0xff] }
 0x53b   :  { %v4099_v6 = vadd.f32 %v8069_v41, %v8083_v63  ;;  %v4182_v63 = vld [vmem:[%s8338_s10 + $0x18] sm:$0xff] }
 0x53c   :  { %v4105_v46 = vadd.f32 %v8069_v41, %v4076_v24  ;;  %v4102_v11 = vadd.f32 %v8069_v41, %v4073_v22  ;;  %4202 = vmatpush.msrb.mxu2 %v4182_v63  ;;  %v4290_v24 = vmul.f32 0.70710677, %v4288_v40 }
 0x53d   :  { %v3608_v31 = vpop.f32.mrf.mxu3  ;;  %v4124_v1 = vmax.f32 %v4099_v6, 0.0 }
 0x53e   :  { %v3637_v21 = vadd.f32 %v3608_v31, %v3417_v5  ;;  %v4103_v31 = vadd.f32 %v8069_v41, %v4074_v53  ;;  %v4130_v34 = vmax.f32 %v4105_v46, 0.0  ;;  %v4250_v5 = vor.u32 1.1754944e-38, %v4249_v39 }
 0x53f   :  { %v4048_v44 = vpop.f32.mrf.mxu1  ;;  %v4127_v14 = vmax.f32 %v4102_v11, 0.0 }
 0x540   :  { %v3857_v51 = vadd.f32 %v3828_v42, %v3637_v21  ;;  %v4072_v42 = vadd.f32 %v8109_v26, %v3852_v2  ;;  %v4128_v61 = vmax.f32 %v4103_v31, 0.0  ;;  %v4251_v26 = vsel %vm4248_vm7, %v4250_v5, %v4246_v58  ;;  %v8269_v31 = vld [vmem:[%s8343_s15] ss:$0 sm:$0xff] }
 0x541   :  { %v4252_v52 = vmul.f32 %v4251_v26, %v4227_v62 }
 0x542   :  { %v4077_v18 = vadd.f32 %v4048_v44, %v3857_v51  ;;  %v4129_v44 = vmax.f32 %v4104_v47, 0.0  ;;  %v4101_v21 = vadd.f32 %v8069_v41, %v4072_v42 }
 0x543   :  { %v5233_v9 = vclamps-f32 %v4252_v52, 1.0 }
 0x544   :  { %v4106_v17 = vadd.f32 %v8069_v41, %v4077_v18  ;;  %v4126_v49 = vmax.f32 %v4101_v21, 0.0 }
 0x545   :  { %v3611_v59 = vpop.f32.mrf.mxu3  ;;  %v4255_v51 = vadd.f32 1.0, %v5233_v9 }
 0x546   :  { %v3638_v38 = vadd.f32 %v3611_v59, %v3418_v0  ;;  %v4131_v15 = vmax.f32 %v4106_v17, 0.0  ;;  %v4135_v0 = vld.sshfl [vmem:[#allocation1 + $0x8] sm:$0xff pattern:$0x73625140]  ;;  %v4181_v59 = vld [vmem:[%s8338_s10 + $0x10] sm:$0xff] }
 0x547   :  { %v4051_v29 = vpop.f32.mrf.mxu1  ;;  %4203 = vmatpush.msrb.mxu2 %v4181_v59 }
 0x548   :  { %v3858_v36 = vadd.f32 %v3831_v7, %v3638_v38  ;;  %v8214_v7 = vld [vmem:[%s8342_s14 + $0x18] sm:$0xff]  ;;  %v8239_v38 = vld [vmem:[%s8342_s14] sm:$0xff] }
 0x549   :  { %4204 = vmatpush.msrb.mxu2 %v4180_v32 }
 0x54a   :  { %v4078_v8 = vadd.f32 %v4051_v29, %v3858_v36  ;;  %v8255_v36 = vadd.f32 %v5258_v60, %v7388_v27 }
 0x54b   :  { %4205 = vmatpush.msrb.mxu2 %v4179_v12  ;;  %v4289_v12 = vmul.f32 0.5, %v4288_v40 }
 0x54c   :  { %v4107_v19 = vadd.f32 %v8069_v41, %v4078_v8  ;;  %v4256_v41 = vmul.f32 %v4255_v51, %v4213_v33  ;;  %v4291_v8 = vmul.f32 %v4290_v24, %v4290_v24 }
 0x54d   :  { %5237 = vmatpush.msk.msra.mxu2 %vm4264_vm8, %v4211_v30 }
 0x54e   :  { %v4132_v57 = vmax.f32 %v4107_v19, 0.0  ;;  %v4292_v4 = vmin.f32 %v4291_v8, 16.0 }
 0x550   :  { %4166 = vmatpush.msra.mxu3 %v4132_v57  ;;  %v4304_v3 = vmul.f32 3.8918573e-05, %v4292_v4  ;;  %v4293_v46 = vmul.f32 2.1237322e-06, %v4292_v4 }
 0x552   :  { %4167 = vmatpush.msra.mxu3 %v4131_v15  ;;  %v4305_v23 = vadd.f32 0.001143296, %v4304_v3  ;;  %v4294_v39 = vadd.f32 0.00028619796, %v4293_v46 }
 0x554   :  { %4168 = vmatpush.msra.mxu3 %v4130_v34  ;;  %v4306_v17 = vmul.f32 %v4305_v23, %v4292_v4  ;;  %v4295_v13 = vmul.f32 %v4294_v39, %v4292_v4 }
 0x556   :  { %4169 = vmatpush.msra.mxu3 %v4129_v44  ;;  %v4307_v19 = vadd.f32 0.014752088, %v4306_v17  ;;  %v4296_v47 = vadd.f32 0.0036580483, %v4295_v13 }
 0x558   :  { %4170 = vmatpush.msra.mxu3 %v4128_v61  ;;  %v4308_v2 = vmul.f32 %v4307_v19, %v4292_v4  ;;  %v4297_v56 = vmul.f32 %v4296_v47, %v4292_v4 }
 0x55a   :  { %4171 = vmatpush.msra.mxu3 %v4127_v14  ;;  %v4309_v27 = vadd.f32 0.112945676, %v4308_v2  ;;  %v4298_v37 = vadd.f32 0.05243302, %v4297_v56 }
 0x55c   :  { %4172 = vmatpush.msra.mxu3 %v4126_v49  ;;  %v4310_v20 = vmul.f32 %v4309_v27, %v4292_v4  ;;  %v4299_v34 = vmul.f32 %v4298_v37, %v4292_v4 }
 0x55e   :  { %4173 = vmatpush.msra.mxu3 %v4125_v35  ;;  %v4311_v53 = vadd.f32 0.4994258, %v4310_v20  ;;  %v4300_v58 = vadd.f32 0.18741608, %v4299_v34 }
 0x560   :  { %4174 = vmatpush.msra.mxu3 %v4124_v1  ;;  %v4312_v57 = vmul.f32 %v4311_v53, %v4292_v4  ;;  %v4301_v21 = vmul.f32 %v4300_v58, %v4292_v4 }
 0x561   :  { %5231 = vmatmul.msk.f32.vlgmr.msra.gmra.mxu3 %vm2065_vm2, %v4135_v0 }
 0x562   :  { %5234 = vmatpush.msk.msrb.mxu3 %vm4264_vm8, %v4211_v30  ;;  %v4313_v55 = vadd.f32 1.0, %v4312_v57  ;;  %v4302_v14 = vadd.f32 1.1283791, %v4301_v21 }
 0x564   :  { %4385 = vmatpush.msra.mxu3 %v8214_v7  ;;  %5266 = vrcp.f32 %v4313_v55  ;;  %v4325_v26 = vand.u32 2147483648, %v4313_v55  ;;  %vm4319_vm11 = vweird.f32 %v4313_v55  ;;  %v4323_v6 = vand.u32 2147483647, %v4313_v55 }
 0x565   :  { %v4303_v9 = vmul.f32 %v4302_v14, %v4290_v24 }
 0x566   :  { %4386 = vmatpush.msra.mxu3 %v8227_v25  ;;  %v4326_v49 = vor.u32 1.1754944e-38, %v4325_v26  ;;  %vm4324_vm14 = vcmp.eq.f32.partialorder %v4323_v6, 8.507059e+37 }
 0x568   :  { %4387 = vmatpush.msra.mxu3 %v8233_v45 }
 0x569   :  { %5235 = vmatmul.msk.f32.vlgmr.msrb.gmra.mxu3 %vm4260_vm9, %v4256_v41 }
 0x56a   :  { %4388 = vmatpush.msra.mxu3 %v8239_v38  ;;  %v5267_v42 = vpop.eup %5266 }
 0x56b   :  { %v4315_v5 = vmul.f32 %v5267_v42, %v4313_v55  ;;  %vm4320_vm12 = vweird.f32 %v5267_v42 }
 0x56c   :  { %vm4321_vm13 = vmor %vm4319_vm11, %vm4320_vm12 }
 0x56d   :  { %v4316_v11 = vsub.f32 1.0, %v4315_v5 }
 0x56f   :  { %v4317_v61 = vmul.f32 %v5267_v42, %v4316_v11 }
 0x571   :  { %v4318_v52 = vadd.f32 %v5267_v42, %v4317_v61 }
 0x573   :  { %v4322_v1 = vsel %vm4321_vm13, %v5267_v42, %v4318_v52 }
 0x574   :  { %v4327_v30 = vsel %vm4324_vm14, %v4326_v49, %v4322_v1 }
 0x575   :  { %v4328_v33 = vmul.f32 %v4327_v30, %v4303_v9 }
 0x577   :  { %v5236_v63 = vclamps-f32 %v4328_v33, 1.0  ;;  %v4363_v33 = vld [vmem:[%s8344_s16 + $0x10] sm:$0xff] }
 0x5aa   :  { %v4156_v48 = vpop.f32.mrf.mxu2 }
 0x5e4   :  { %v4176_v29 = vpop.f32.mrf.mxu3 }
 0x5e5   :  { %v4177_v10 = vadd.f32 %v4176_v29, %v4156_v48  ;;  %v4331_v48 = vadd.f32 1.0, %v5236_v63 }
 0x5e7   :  { %5232 = vmatmul.msk.f32.vlgmr.msrb.gmra.mxu2 %vm2116_vm3, %v4177_v10  ;;  %v4332_v60 = vmul.f32 %v4331_v48, %v4289_v12 }
 0x5e8   :  { %4452 = vmatpush.msrb.mxu2 %v8214_v7 }
 0x5ea   :  { %4453 = vmatpush.msrb.mxu2 %v8227_v25 }
 0x5ec   :  { %v4285_v18 = vpop.f32.mrf.mxu3  ;;  %4454 = vmatpush.msrb.mxu2 %v8233_v45 }
 0x5ed   :  { %v4286_v50 = vadd.f32 %v8250_v16, %v4285_v18 }
 0x5ee   :  { %4455 = vmatpush.msrb.mxu2 %v8239_v38 }
 0x5ef   :  { %v4366_v43 = vadd.f32 %v4286_v50, %v8255_v36  ;;  %5238 = vmatmul.msk.f32.vlgmr.msra.gmra.mxu2 %vm4260_vm9, %v4332_v60 }
 0x5f0   :  { %4546 = vmatpush.msra.mxu2 %v8214_v7 }
 0x5f1   :  { %5239 = vmatmul.msk.f32.vlgmr.msra.gmra.mxu3 %vm2116_vm3, %v4366_v43 }
 0x5f2   :  { %4547 = vmatpush.msra.mxu2 %v8227_v25 }
 0x5f4   :  { %4548 = vmatpush.msra.mxu2 %v8233_v45 }
 0x5f6   :  { %4549 = vmatpush.msra.mxu2 %v8239_v38 }
 0x66a   :  { %v4207_v22 = vpop.f32.mrf.mxu2 }
 0x66b   :  { %v4208_v15 = vadd.f32 %v5262_v28, %v4207_v22 }
 0x66d   :  { %4690 = vst.msk [vmem:[#allocation2] sm:$0x3] %vm4689_vm10, %v4208_v15 }
 0x66e   :  { %4724 = dma.vmem_to_hbm [thread:$0]  %s4720_s9, 32, %s4722_s27, [#allocation3]  }
 0x672   :  { %v8282_v11 = vpop.f32.mrf.mxu2 }
 0x674   :  { %v4390_v44 = vpop.f32.mrf.mxu3 }
 0x675   :  { %v8272_v62 = vadd.f32 %v8269_v31, %v4390_v44 }
 0x677   :  { %v4394_v54 = vmul.f32 0.70710677, %v8272_v62  ;;  %v4393_v34 = vmul.f32 0.5, %v8272_v62  ;;  %v4364_v62 = vld [vmem:[%s8344_s16 + $0x18] sm:$0xff] }
 0x678   :  { %4522 = vmatpush.msrb.mxu3 %v4364_v62 }
 0x679   :  { %v4395_v35 = vmul.f32 %v4394_v54, %v4394_v54 }
 0x67a   :  { %4523 = vmatpush.msrb.mxu3 %v4363_v33 }
 0x67b   :  { %v4396_v0 = vmin.f32 %v4395_v35, 16.0 }
 0x67d   :  { %v4397_v51 = vmul.f32 2.1237322e-06, %v4396_v0  ;;  %v4408_v41 = vmul.f32 3.8918573e-05, %v4396_v0 }
 0x67f   :  { %v4398_v59 = vadd.f32 0.00028619796, %v4397_v51  ;;  %v4409_v32 = vadd.f32 0.001143296, %v4408_v41  ;;  %v4362_v41 = vld [vmem:[%s8344_s16 + $0x8] sm:$0xff] }
 0x680   :  { %4524 = vmatpush.msrb.mxu3 %v4362_v41 }
 0x681   :  { %v4399_v29 = vmul.f32 %v4398_v59, %v4396_v0  ;;  %v4410_v10 = vmul.f32 %v4409_v32, %v4396_v0  ;;  %v4361_v59 = vld [vmem:[%s8344_s16] sm:$0xff] }
 0x682   :  { %4525 = vmatpush.msrb.mxu3 %v4361_v59 }
 0x683   :  { %v4411_v18 = vadd.f32 0.014752088, %v4410_v10  ;;  %v4400_v50 = vadd.f32 0.0036580483, %v4399_v29 }
 0x684   :  { %4613 = vmatpush.msra.mxu3 %v8214_v7 }
 0x685   :  { %v4412_v43 = vmul.f32 %v4411_v18, %v4396_v0  ;;  %v4401_v8 = vmul.f32 %v4400_v50, %v4396_v0 }
 0x686   :  { %4614 = vmatpush.msra.mxu3 %v8227_v25 }
 0x687   :  { %v4413_v24 = vadd.f32 0.112945676, %v4412_v43  ;;  %v4402_v40 = vadd.f32 0.05243302, %v4401_v8 }
 0x688   :  { %4615 = vmatpush.msra.mxu3 %v8233_v45 }
 0x689   :  { %v4414_v4 = vmul.f32 %v4413_v24, %v4396_v0  ;;  %v4403_v19 = vmul.f32 %v4402_v40, %v4396_v0 }
 0x68a   :  { %4616 = vmatpush.msra.mxu3 %v8239_v38 }
 0x68b   :  { %v4415_v3 = vadd.f32 0.4994258, %v4414_v4  ;;  %v4404_v2 = vadd.f32 0.18741608, %v4403_v19 }
 0x68d   :  { %v4416_v23 = vmul.f32 %v4415_v3, %v4396_v0  ;;  %v4405_v20 = vmul.f32 %v4404_v2, %v4396_v0 }
 0x68f   :  { %v4417_v17 = vadd.f32 1.0, %v4416_v23  ;;  %v4406_v39 = vadd.f32 1.1283791, %v4405_v20 }
 0x691   :  { %5268 = vrcp.f32 %v4417_v17  ;;  %v4429_v57 = vand.u32 2147483648, %v4417_v17  ;;  %v4427_v55 = vand.u32 2147483647, %v4417_v17  ;;  %vm4423_vm0 = vweird.f32 %v4417_v17 }
 0x692   :  { %v4407_v47 = vmul.f32 %v4406_v39, %v4394_v54  ;;  %v4354_v39 = vadd.f32 %v8250_v16, %v8282_v11 }
 0x693   :  { %v4430_v22 = vor.u32 1.1754944e-38, %v4429_v57  ;;  %vm4428_vm2 = vcmp.eq.f32.partialorder %v4427_v55, 8.507059e+37 }
 0x697   :  { %v5269_v27 = vpop.eup %5268 }
 0x698   :  { %v4419_v53 = vmul.f32 %v5269_v27, %v4417_v17  ;;  %vm4424_vm15 = vweird.f32 %v5269_v27 }
 0x699   :  { %vm4425_vm1 = vmor %vm4423_vm0, %vm4424_vm15 }
 0x69a   :  { %v4420_v46 = vsub.f32 1.0, %v4419_v53 }
 0x69c   :  { %v4421_v28 = vmul.f32 %v5269_v27, %v4420_v46  ;;  %v8305_v46 = vld [vmem:[%s8345_s17] ss:$0 sm:$0xff]  ;;  %s5354_s17 = smov [#allocation4]  }
 0x69d   :  { %s4730_s3 = sshll.u32 %s5354_s17, 4  ;;  %s4731_s3 = int_to_ptr.vmem [resolvable:$true] %s4730_s3 }
 0x69e   :  { %v4422_v13 = vadd.f32 %v5269_v27, %v4421_v28 }
 0x6a0   :  { %v4426_v15 = vsel %vm4425_vm1, %v5269_v27, %v4422_v13 }
 0x6a1   :  { %v4431_v56 = vsel %vm4428_vm2, %v4430_v22, %v4426_v15 }
 0x6a2   :  { %v4432_v37 = vmul.f32 %v4431_v56, %v4407_v47 }
 0x6a4   :  { %v5240_v42 = vclamps-f32 %v4432_v37, 1.0 }
 0x6a6   :  { %v4435_v5 = vadd.f32 1.0, %v5240_v42 }
 0x6a8   :  { %v4436_v58 = vmul.f32 %v4435_v5, %v4393_v34 }
 0x6aa   :  { %5241 = vmatmul.msk.f32.vlgmr.msrb.gmra.mxu2 %vm2116_vm3, %v4436_v58 }
 0x6ab   :  { %4680 = vmatpush.msrb.mxu2 %v4364_v62 }
 0x6ad   :  { %4681 = vmatpush.msrb.mxu2 %v4363_v33 }
 0x6af   :  { %4682 = vmatpush.msrb.mxu2 %v4362_v41 }
 0x6b1   :  { %4683 = vmatpush.msrb.mxu2 %v4361_v59 }
 0x72d   :  { %v4457_v44 = vpop.f32.mrf.mxu2 }
 0x72e   :  { %v4458_v21 = vadd.f32 %v8269_v31, %v4457_v44 }
 0x730   :  { %v4461_v61 = vmul.f32 0.70710677, %v4458_v21  ;;  %v4460_v27 = vmul.f32 0.5, %v4458_v21 }
 0x732   :  { %v4462_v26 = vmul.f32 %v4461_v61, %v4461_v61 }
 0x734   :  { %v4463_v14 = vmin.f32 %v4462_v26, 16.0 }
 0x736   :  { %v4464_v54 = vmul.f32 2.1237322e-06, %v4463_v14  ;;  %v4475_v52 = vmul.f32 3.8918573e-05, %v4463_v14 }
 0x738   :  { %v4465_v6 = vadd.f32 0.00028619796, %v4464_v54  ;;  %v4476_v49 = vadd.f32 0.001143296, %v4475_v52 }
 0x73a   :  { %v4466_v35 = vmul.f32 %v4465_v6, %v4463_v14  ;;  %v4477_v9 = vmul.f32 %v4476_v49, %v4463_v14 }
 0x73c   :  { %v4478_v1 = vadd.f32 0.014752088, %v4477_v9  ;;  %v4467_v0 = vadd.f32 0.0036580483, %v4466_v35 }
 0x73e   :  { %v4479_v30 = vmul.f32 %v4478_v1, %v4463_v14  ;;  %v4468_v63 = vmul.f32 %v4467_v0, %v4463_v14 }
 0x740   :  { %v4480_v51 = vadd.f32 0.112945676, %v4479_v30  ;;  %v4469_v48 = vadd.f32 0.05243302, %v4468_v63 }
 0x742   :  { %v4481_v32 = vmul.f32 %v4480_v51, %v4463_v14  ;;  %v4470_v60 = vmul.f32 %v4469_v48, %v4463_v14 }
 0x744   :  { %v4482_v12 = vadd.f32 0.4994258, %v4481_v32  ;;  %v4471_v18 = vadd.f32 0.18741608, %v4470_v60 }
 0x746   :  { %v4483_v29 = vmul.f32 %v4482_v12, %v4463_v14  ;;  %v4472_v43 = vmul.f32 %v4471_v18, %v4463_v14 }
 0x748   :  { %v4484_v10 = vadd.f32 1.0, %v4483_v29  ;;  %v4473_v3 = vadd.f32 1.1283791, %v4472_v43 }
 0x74a   :  { %5270 = vrcp.f32 %v4484_v10  ;;  %v4496_v4 = vand.u32 2147483648, %v4484_v10  ;;  %v4494_v7 = vand.u32 2147483647, %v4484_v10  ;;  %vm4490_vm5 = vweird.f32 %v4484_v10 }
 0x74b   :  { %v4474_v17 = vmul.f32 %v4473_v3, %v4461_v61 }
 0x74c   :  { %v4497_v25 = vor.u32 1.1754944e-38, %v4496_v4  ;;  %vm4495_vm7 = vcmp.eq.f32.partialorder %v4494_v7, 8.507059e+37 }
 0x750   :  { %v5271_v50 = vpop.eup %5270 }
 0x751   :  { %v4486_v24 = vmul.f32 %v5271_v50, %v4484_v10  ;;  %vm4491_vm4 = vweird.f32 %v5271_v50 }
 0x752   :  { %vm4492_vm6 = vmor %vm4490_vm5, %vm4491_vm4 }
 0x753   :  { %v4487_v8 = vsub.f32 1.0, %v4486_v24 }
 0x755   :  { %v4488_v40 = vmul.f32 %v5271_v50, %v4487_v8 }
 0x757   :  { %v4489_v23 = vadd.f32 %v5271_v50, %v4488_v40 }
 0x759   :  { %v4493_v45 = vsel %vm4492_vm6, %v5271_v50, %v4489_v23 }
 0x75a   :  { %v4498_v19 = vsel %vm4495_vm7, %v4497_v25, %v4493_v45 }
 0x75b   :  { %v4499_v2 = vmul.f32 %v4498_v19, %v4474_v17 }
 0x75d   :  { %v5242_v38 = vclamps-f32 %v4499_v2, 1.0 }
 0x75f   :  { %v4502_v20 = vadd.f32 1.0, %v5242_v38 }
 0x761   :  { %v4503_v53 = vmul.f32 %v4502_v20, %v4460_v27 }
 0x763   :  { %5243 = vmatmul.msk.f32.vlgmr.msrb.gmra.mxu3 %vm2116_vm3, %v4503_v53 }
 0x7e6   :  { %v4527_v57 = vpop.f32.mrf.mxu3 }
 0x7e7   :  { %v4528_v28 = vadd.f32 %v8305_v46, %v4527_v57 }
 0x7e9   :  { %v4530_v55 = vadd.f32 %v4528_v28, %v4354_v39  ;;  %4691 = vst.msk [vmem:[#allocation4] sm:$0x3] %vm4689_vm10, %v4528_v28 }
 0x7ea   :  { %4735 = dma.vmem_to_hbm [thread:$0]  %s4731_s3, 32, %s4733_s23, [#allocation5]  }
 0x7eb   :  { %5244 = vmatmul.msk.f32.vlgmr.msra.gmra.mxu2 %vm2116_vm3, %v4530_v55 }
 0x86e   :  { %v4551_v13 = vpop.f32.mrf.mxu2 }
 0x86f   :  { %v4552_v22 = vadd.f32 %v8269_v31, %v4551_v13 }
 0x871   :  { %v4555_v47 = vmul.f32 0.70710677, %v4552_v22  ;;  %v4554_v18 = vmul.f32 0.5, %v4552_v22 }
 0x873   :  { %v4556_v15 = vmul.f32 %v4555_v47, %v4555_v47 }
 0x875   :  { %v4557_v56 = vmin.f32 %v4556_v15, 16.0 }
 0x877   :  { %v4558_v37 = vmul.f32 2.1237322e-06, %v4557_v56  ;;  %v4569_v42 = vmul.f32 3.8918573e-05, %v4557_v56 }
 0x879   :  { %v4559_v34 = vadd.f32 0.00028619796, %v4558_v37  ;;  %v4570_v5 = vadd.f32 0.001143296, %v4569_v42 }
 0x87b   :  { %v4560_v58 = vmul.f32 %v4559_v34, %v4557_v56  ;;  %v4571_v44 = vmul.f32 %v4570_v5, %v4557_v56 }
 0x87d   :  { %v4572_v16 = vadd.f32 0.014752088, %v4571_v44  ;;  %v4561_v11 = vadd.f32 0.0036580483, %v4560_v58 }
 0x87f   :  { %v4573_v21 = vmul.f32 %v4572_v16, %v4557_v56  ;;  %v4562_v26 = vmul.f32 %v4561_v11, %v4557_v56 }
 0x881   :  { %v4574_v61 = vadd.f32 0.112945676, %v4573_v21  ;;  %v4563_v52 = vadd.f32 0.05243302, %v4562_v26 }
 0x883   :  { %v4575_v14 = vmul.f32 %v4574_v61, %v4557_v56  ;;  %v4564_v35 = vmul.f32 %v4563_v52, %v4557_v56 }
 0x885   :  { %v4576_v54 = vadd.f32 0.4994258, %v4575_v14  ;;  %v4565_v9 = vadd.f32 0.18741608, %v4564_v35 }
 0x887   :  { %v4577_v6 = vmul.f32 %v4576_v54, %v4557_v56  ;;  %v4566_v62 = vmul.f32 %v4565_v9, %v4557_v56 }
 0x889   :  { %v4578_v49 = vadd.f32 1.0, %v4577_v6  ;;  %v4567_v51 = vadd.f32 1.1283791, %v4566_v62 }
 0x88b   :  { %5272 = vrcp.f32 %v4578_v49  ;;  %v4590_v33 = vand.u32 2147483648, %v4578_v49  ;;  %v4588_v63 = vand.u32 2147483647, %v4578_v49  ;;  %vm4584_vm9 = vweird.f32 %v4578_v49 }
 0x88c   :  { %v4568_v12 = vmul.f32 %v4567_v51, %v4555_v47 }
 0x88d   :  { %v4591_v32 = vor.u32 1.1754944e-38, %v4590_v33  ;;  %vm4589_vm12 = vcmp.eq.f32.partialorder %v4588_v63, 8.507059e+37  ;;  %v5356_v63 = vmov 64.0  }
 0x891   :  { %v5273_v1 = vpop.eup %5272 }
 0x892   :  { %v4580_v0 = vmul.f32 %v5273_v1, %v4578_v49  ;;  %vm4585_vm8 = vweird.f32 %v5273_v1 }
 0x893   :  { %vm4586_vm11 = vmor %vm4584_vm9, %vm4585_vm8 }
 0x894   :  { %v4581_v30 = vsub.f32 1.0, %v4580_v0 }
 0x896   :  { %v4582_v41 = vmul.f32 %v5273_v1, %v4581_v30 }
 0x898   :  { %v4583_v59 = vadd.f32 %v5273_v1, %v4582_v41 }
 0x89a   :  { %v4587_v48 = vsel %vm4586_vm11, %v5273_v1, %v4583_v59 }
 0x89b   :  { %v4592_v29 = vsel %vm4589_vm12, %v4591_v32, %v4587_v48 }
 0x89c   :  { %v4593_v10 = vmul.f32 %v4592_v29, %v4568_v12 }
 0x89e   :  { %v5245_v60 = vclamps-f32 %v4593_v10, 1.0 }
 0x8a0   :  { %v4596_v50 = vadd.f32 1.0, %v5245_v60 }
 0x8a2   :  { %v4597_v43 = vmul.f32 %v4596_v50, %v4554_v18 }
 0x8a4   :  { %5246 = vmatmul.msk.f32.vlgmr.msra.gmra.mxu3 %vm2116_vm3, %v4597_v43 }
 0x927   :  { %v4618_v24 = vpop.f32.mrf.mxu3 }
 0x928   :  { %v4619_v8 = vadd.f32 %v8269_v31, %v4618_v24 }
 0x92a   :  { %v4622_v4 = vmul.f32 0.70710677, %v4619_v8  ;;  %v4621_v54 = vmul.f32 0.5, %v4619_v8 }
 0x92c   :  { %v4623_v3 = vmul.f32 %v4622_v4, %v4622_v4 }
 0x92e   :  { %v4624_v40 = vmin.f32 %v4623_v3, 16.0 }
 0x930   :  { %v4625_v7 = vmul.f32 2.1237322e-06, %v4624_v40  ;;  %v4636_v23 = vmul.f32 3.8918573e-05, %v4624_v40 }
 0x932   :  { %v4626_v25 = vadd.f32 0.00028619796, %v4625_v7  ;;  %v4637_v17 = vadd.f32 0.001143296, %v4636_v23 }
 0x934   :  { %v4627_v45 = vmul.f32 %v4626_v25, %v4624_v40  ;;  %v4638_v19 = vmul.f32 %v4637_v17, %v4624_v40 }
 0x936   :  { %v4639_v2 = vadd.f32 0.014752088, %v4638_v19  ;;  %v4628_v38 = vadd.f32 0.0036580483, %v4627_v45 }
 0x938   :  { %v4640_v27 = vmul.f32 %v4639_v2, %v4624_v40  ;;  %v4629_v53 = vmul.f32 %v4628_v38, %v4624_v40 }
 0x93a   :  { %v4641_v20 = vadd.f32 0.112945676, %v4640_v27  ;;  %v4630_v28 = vadd.f32 0.05243302, %v4629_v53 }
 0x93c   :  { %v4642_v57 = vmul.f32 %v4641_v20, %v4624_v40  ;;  %v4631_v31 = vmul.f32 %v4630_v28, %v4624_v40 }
 0x93e   :  { %v4643_v39 = vadd.f32 0.4994258, %v4642_v57  ;;  %v4632_v22 = vadd.f32 0.18741608, %v4631_v31 }
 0x940   :  { %v4644_v55 = vmul.f32 %v4643_v39, %v4624_v40  ;;  %v4633_v15 = vmul.f32 %v4632_v22, %v4624_v40 }
 0x942   :  { %v4645_v13 = vadd.f32 1.0, %v4644_v55  ;;  %v4634_v34 = vadd.f32 1.1283791, %v4633_v15 }
 0x944   :  { %5274 = vrcp.f32 %v4645_v13  ;;  %v4657_v42 = vand.u32 2147483648, %v4645_v13  ;;  %v4655_v58 = vand.u32 2147483647, %v4645_v13  ;;  %vm4651_vm14 = vweird.f32 %v4645_v13 }
 0x945   :  { %v4635_v11 = vmul.f32 %v4634_v34, %v4622_v4  ;;  %5276 = vrcp.f32 %v5356_v63 }
 0x946   :  { %v4658_v16 = vor.u32 1.1754944e-38, %v4657_v42  ;;  %vm4656_vm0 = vcmp.eq.f32.partialorder %v4655_v58, 8.507059e+37 }
 0x94a   :  { %v5275_v47 = vpop.eup %5274 }
 0x94b   :  { %v4647_v56 = vmul.f32 %v5275_v47, %v4645_v13  ;;  %vm4652_vm13 = vweird.f32 %v5275_v47  ;;  %v5277_v59 = vpop.eup %5276 }
 0x94c   :  { %vm4653_vm15 = vmor %vm4651_vm14, %vm4652_vm13  ;;  %v4705_v32 = vmul.f32 64.0, %v5277_v59 }
 0x94d   :  { %v4648_v37 = vsub.f32 1.0, %v4647_v56 }
 0x94e   :  { %v4706_v12 = vsub.f32 1.0, %v4705_v32 }
 0x94f   :  { %v4649_v5 = vmul.f32 %v5275_v47, %v4648_v37 }
 0x950   :  { %v4707_v48 = vmul.f32 %v5277_v59, %v4706_v12 }
 0x951   :  { %v4650_v44 = vadd.f32 %v5275_v47, %v4649_v5 }
 0x952   :  { %v4708_v29 = vadd.f32 %v5277_v59, %v4707_v48 }
 0x953   :  { %v4654_v21 = vsel %vm4653_vm15, %v5275_v47, %v4650_v44 }
 0x954   :  { %v4659_v61 = vsel %vm4656_vm0, %v4658_v16, %v4654_v21 }
 0x955   :  { %v4660_v26 = vmul.f32 %v4659_v61, %v4635_v11 }
 0x957   :  { %v5247_v14 = vclamps-f32 %v4660_v26, 1.0 }
 0x959   :  { %v4663_v52 = vadd.f32 1.0, %v5247_v14 }
 0x95b   :  { %v4664_v6 = vmul.f32 %v4663_v52, %v4621_v54 }
 0x95d   :  { %5248 = vmatmul.msk.f32.vlgmr.msrb.gmra.mxu2 %vm2116_vm3, %v4664_v6  ;;  %vm4709_vm3 = vweird.f32 %v5277_v59 }
 0x95e   :  { %v4710_v10 = vsel %vm4709_vm3, %v5277_v59, %v4708_v29 }
 0x9e0   :  { %v4685_v49 = vpop.f32.mrf.mxu2 }
 0x9e1   :  { %v4686_v35 = vadd.f32 %v8305_v46, %v4685_v49 }
 0x9e3   :  { %v4688_v9 = vsub.f32 %v4686_v35, %v8255_v36 }
 0x9e5   :  { %v4692_v1 = vmul.f32 %v4688_v9, %v4688_v9 }
 0x9e7   :  { %v4693_v62 = vsel %vm4689_vm10, %v4692_v1, 0.0  ;;  %vm4712_vm10 = vcmask 0  }
 0x9e8   :  { %4694 = vadd.xlane.f32.xlu0 %v4693_v62 }
 0xa5b   :  { %v4695_v36 = vpop.xlane.xlu0 %4694 }
 0xa5c   :  { %v4696_v46 = vrot.slane %v4695_v36, 4 }
 0xa5e   :  { %v4697_v0 = vadd.f32 %v4696_v46, %v4695_v36 }
 0xa60   :  { %v4698_v30 = vrot.slane %v4697_v0, 2 }
 0xa62   :  { %v4699_v33 = vadd.f32 %v4698_v30, %v4697_v0 }
 0xa64   :  { %v4700_v51 = vrot.slane %v4699_v33, 1 }
 0xa66   :  { %v4701_v41 = vadd.f32 %v4700_v51, %v4699_v33 }
 0xa68   :  { %5251 = vpush %v4701_v41 }
 0xa99   :  { %s5252_s26 = spop %5251 }
 0xa9a   :  { %v4703_v60 = vstv %s5252_s26 }
 0xa9b   :  { %v4711_v18 = vmul.f32 %v4710_v10, %v4703_v60 }
 0xa9d   :  { %4713 = vst.msk [vmem:[#allocation6] sm:$0x1] %vm4712_vm10, %v4711_v18 }
 0xa9e   :  { %4746 = dma.vmem_to_hbm [thread:$0]  %s4742_s19, 16, %s4744_s0, [#allocation5]  }
 0xa9f   :  { %5350 = dma.done.wait [#allocation3], 32  }
 0xaa0   :  { %5351 = vsyncadd [#allocation3], 4294967264 }
 0xaa1   :  { %5352 = dma.done.wait [#allocation5], 48  }
 0xaa2   :  { %5353 = vsyncadd [#allocation5], 4294967248 }
 0xaa3   :  { %4759 = vsyncpa [#allocation3], 1 }
 0xaa4   :  { %4760 = vsyncpa [#allocation5], 1 }

</bundles_post_ra>
